<compile_context>
chip_gen: v7x
topology: tpu7x:2x2x1
jax: 0.10.0
libtpu: 0.0.40
codegen_flags: <defaults>
</compile_context>

<pallas_src>
import functools

import jax
import jax.numpy as jnp
from jax.experimental import pallas as pl
from jax.experimental.pallas import tpu as pltpu

K = 8           # self.K
R = 59          # self.R
C_IN = 512      # fc1_* input features  -> input channels
D_HID = 128     # fc1_* output features
MAX_HW_BLOCK = 2048   # spatial chunk (lane axis) per pipeline step


def _fcnn_kernel(x_ref, w1_ref, b1_ref, wo1_ref, bo1_ref, wo2_ref, bo2_ref,
                 selk_ref, seli_ref, mi64_ref, selr_ref, mk_ref,
                 out_ref, acc_ref, *, inv_hw):
    hc = pl.program_id(1)
    n_hw = pl.num_programs(1)

    # ---- stage 1: spatial sum accumulation (== AdaptiveAvgPool2d((1,1))) ----
    @pl.when(hc == 0)
    def _():
        acc_ref[...] = jnp.zeros_like(acc_ref)

    acc_ref[...] += jnp.sum(x_ref[0], axis=1, keepdims=True)          # (C, 1)

    # ---- stage 2: MLPs + broadcast add + softmax, on the last spatial chunk ----
    @pl.when(hc == n_hw - 1)
    def _():
        pooled = acc_ref[...] * inv_hw                                 # (C, 1)

        # fused fc1_1|fc1_2: one (256,512)@(512,1) MXU matmul + ReLU
        h = jnp.dot(w1_ref[...], pooled,
                    preferred_element_type=jnp.float32) + b1_ref[...]
        h = jnp.maximum(h, 0.0)                                        # (256, 1)
        h1 = h[:D_HID, :]                                              # (128, 1)
        h2 = h[D_HID:, :]                                              # (128, 1)

        o1c = jnp.dot(wo1_ref[...], h1,
                      preferred_element_type=jnp.float32) + bo1_ref[...]   # (64, 1)
        o2c = jnp.dot(wo2_ref[...], h2,
                      preferred_element_type=jnp.float32) + bo2_ref[...]   # (472, 1)

        # flat column -> matrix form via constant 0/1 selector matmuls
        #   o1mT[k, i] = o1c[i*K + k]      o2m[r, k] = o2c[r*K + k]
        o1mT = jnp.dot(selk_ref[...], o1c * mi64_ref[...],
                       preferred_element_type=jnp.float32)             # (K, K)   [k, i]
        o2m = jnp.dot(selr_ref[...], o2c * mk_ref[...],
                      preferred_element_type=jnp.float32)              # (R, K)   [r, k]

        # factorized shifted softmax over k:
        #   p[r,i,k] = E1[i,k]*E2[r,k] / sum_k' E1[i,k']*E2[r,k']
        a1 = jnp.max(o1mT, axis=0, keepdims=True)                      # (1, K)  per-i max
        e1T = jnp.exp(o1mT - a1)                                       # (K, K)  [k, i]
        a2 = jnp.max(o2m, axis=1, keepdims=True)                       # (R, 1)  per-r max
        e2 = jnp.exp(o2m - a2)                                         # (R, K)  [r, k]

        dT = jnp.dot(e2, e1T, preferred_element_type=jnp.float32)      # (R, K) = D[r, i]
        r0 = pl.reciprocal(dT, approx=True)                            # EUP reciprocal
        inv_d = r0 * (2.0 - dT * r0)                                   # Newton -> ~f32 exact

        # numerator[r, i*K+k] = E2[r,k] * E1[i,k]
        z = jnp.dot(e1T, seli_ref[...],
                    preferred_element_type=jnp.float32) * selk_ref[...]    # (K, K*K)
        num = jnp.dot(e2, z, preferred_element_type=jnp.float32)           # (R, K*K)
        den = jnp.dot(inv_d, seli_ref[...],
                      preferred_element_type=jnp.float32)                  # (R, K*K)
        out_ref[0] = num * den                                  # single lane-dense store


def _selector_constants():
    k_idx = jnp.arange(K, dtype=jnp.int32)
    r_idx = jnp.arange(R, dtype=jnp.int32)
    c64 = jnp.arange(K * K, dtype=jnp.int32)
    c472 = jnp.arange(R * K, dtype=jnp.int32)
    selk = (c64[None, :] % K == k_idx[:, None]).astype(jnp.float32)     # (K, K*K)
    seli = (c64[None, :] // K == k_idx[:, None]).astype(jnp.float32)    # (K, K*K)
    mi64 = (c64[:, None] // K == k_idx[None, :]).astype(jnp.float32)    # (K*K, K)
    selr = (c472[None, :] // K == r_idx[:, None]).astype(jnp.float32)   # (R, R*K)
    mk = (c472[:, None] % K == k_idx[None, :]).astype(jnp.float32)      # (R*K, K)
    return selk, seli, mi64, selr, mk


@jax.jit
def fcnn_t_forward(x_nchw, params):
    # params are in PyTorch layout: weights (out_features, in_features), biases (out,)
    w11, b11, w12, b12, wo1, bo1, wo2, bo2 = params
    B, C, H, W = x_nchw.shape
    HW = H * W
    x3 = x_nchw.reshape(B, C, HW)                            # free reshape, no transpose

    # pack fc1_1 | fc1_2 so one matmul yields both hidden vectors
    w1 = jnp.concatenate([w11, w12], axis=0)                 # (256, 512)
    b1 = jnp.concatenate([b11, b12], axis=0)[:, None]        # (256, 1)
    bo1c = bo1[:, None]                                      # (64, 1)
    bo2c = bo2[:, None]                                      # (472, 1)
    selk, seli, mi64, selr, mk = _selector_constants()

    if HW > MAX_HW_BLOCK and HW % MAX_HW_BLOCK == 0:
        hw_blk = MAX_HW_BLOCK
    else:
        hw_blk = HW
    n_hw = HW // hw_blk

    def const_spec(shape):
        return pl.BlockSpec(shape, lambda b, h: (0, 0))

    out = pl.pallas_call(
        functools.partial(_fcnn_kernel, inv_hw=1.0 / float(HW)),
        grid=(B, n_hw),
        in_specs=[
            pl.BlockSpec((1, C, hw_blk), lambda b, h: (b, 0, h)),   # x (chunked over HW)
            const_spec((2 * D_HID, C)),      # w1   (fc1_1 | fc1_2)
            const_spec((2 * D_HID, 1)),      # b1
            const_spec((K * K, D_HID)),      # wo1  (out_1)
            const_spec((K * K, 1)),          # bo1
            const_spec((R * K, D_HID)),      # wo2  (out_2)
            const_spec((R * K, 1)),          # bo2
            const_spec((K, K * K)),          # selk
            const_spec((K, K * K)),          # seli
            const_spec((K * K, K)),          # mi64
            const_spec((R, R * K)),          # selr
            const_spec((R * K, K)),          # mk
        ],
        out_specs=pl.BlockSpec((1, R, K * K), lambda b, h: (b, 0, 0)),
        out_shape=jax.ShapeDtypeStruct((B, R, K * K), jnp.float32),
        scratch_shapes=[pltpu.VMEM((C, 1), jnp.float32)],
        compiler_params=pltpu.CompilerParams(
            dimension_semantics=("parallel", "arbitrary")),
    )(x3, w1, b1, wo1, bo1c, wo2, bo2c, selk, seli, mi64, selr, mk)

    return out.reshape(B, R, K, K)                           # free row-major reshape


# ----------------------------------------------------------------------------
# Deterministic init (PyTorch weight layout) and a pure-JAX reference.
# ----------------------------------------------------------------------------
def init_params(key):
    ks = jax.random.split(key, 8)

    def linear(kw, kb, fan_out, fan_in):
        bound = float(fan_in) ** -0.5
        w = jax.random.uniform(kw, (fan_out, fan_in), jnp.float32, -bound, bound)
        b = jax.random.uniform(kb, (fan_out,), jnp.float32, -bound, bound)
        return w, b

    w11, b11 = linear(ks[0], ks[1], D_HID, C_IN)      # fc1_1
    w12, b12 = linear(ks[2], ks[3], D_HID, C_IN)      # fc1_2
    wo1, bo1 = linear(ks[4], ks[5], K * K, D_HID)     # out_1
    wo2, bo2 = linear(ks[6], ks[7], K * R, D_HID)     # out_2
    return (w11, b11, w12, b12, wo1, bo1, wo2, bo2)


def ref_forward(x_nchw, params):
    w11, b11, w12, b12, wo1, bo1, wo2, bo2 = params
    B = x_nchw.shape[0]
    pooled = jnp.mean(x_nchw, axis=(2, 3))                   # (B, 512)
    h1 = jax.nn.relu(pooled @ w11.T + b11)
    o1 = (h1 @ wo1.T + bo1).reshape(B, K, K)
    h2 = jax.nn.relu(pooled @ w12.T + b12)
    o2 = (h2 @ wo2.T + bo2).reshape(B, R, K)
    out = o1[:, None, :, :] + o2[:, :, None, :]
    return jax.nn.softmax(out, axis=3)


if __name__ == "__main__":
    key = jax.random.PRNGKey(0)
    kx, kp = jax.random.split(key)
    # channels must be 512 (fc1_* input); batch=2, 16x16 spatial
    x = jax.random.normal(kx, (2, C_IN, 16, 16), jnp.float32)
    params = init_params(kp)

    prob = fcnn_t_forward(x, params)
    prob = jax.block_until_ready(prob)

    ref = ref_forward(x, params)
    assert prob.shape == (2, R, K, K), prob.shape
    max_err = float(jnp.max(jnp.abs(prob - ref)))
    assert max_err < 5e-4, f"max abs error {max_err}"
    print("KERNEL_OK")
</pallas_src>

<mosaic_0001>
module attributes {stable_mosaic.version = 11 : i64} {
  func.func @_fcnn_kernel(%arg0: i32, %arg1: i32, %arg2: memref<1x512x256xf32, #tpu.memory_space<vmem>>, %arg3: memref<256x512xf32, #tpu.memory_space<vmem>>, %arg4: memref<256x1xf32, #tpu.memory_space<vmem>>, %arg5: memref<64x128xf32, #tpu.memory_space<vmem>>, %arg6: memref<64x1xf32, #tpu.memory_space<vmem>>, %arg7: memref<472x128xf32, #tpu.memory_space<vmem>>, %arg8: memref<472x1xf32, #tpu.memory_space<vmem>>, %arg9: memref<8x64xf32, #tpu.memory_space<vmem>>, %arg10: memref<8x64xf32, #tpu.memory_space<vmem>>, %arg11: memref<64x8xf32, #tpu.memory_space<vmem>>, %arg12: memref<59x472xf32, #tpu.memory_space<vmem>>, %arg13: memref<472x8xf32, #tpu.memory_space<vmem>>, %arg14: memref<1x59x64xf32, #tpu.memory_space<vmem>>, %arg15: memref<512x1xf32, #tpu.memory_space<vmem>>) attributes {dimension_semantics = [#tpu.dimension_semantics<parallel>, #tpu.dimension_semantics<arbitrary>], iteration_bounds = array<i64: 2, 1>, scalar_prefetch = 0 : i64, scratch_operands = 1 : i64, tpu.core_type = #tpu.core_type<tc>, window_params = [{transform_indices = @transform_0, window_bounds = array<i64: 1, 512, 256>}, {pipeline_mode = #tpu.pipeline_mode<synchronous>, transform_indices = @transform_1, window_bounds = array<i64: 256, 512>}, {pipeline_mode = #tpu.pipeline_mode<synchronous>, transform_indices = @transform_2, window_bounds = array<i64: 256, 1>}, {pipeline_mode = #tpu.pipeline_mode<synchronous>, transform_indices = @transform_3, window_bounds = array<i64: 64, 128>}, {pipeline_mode = #tpu.pipeline_mode<synchronous>, transform_indices = @transform_4, window_bounds = array<i64: 64, 1>}, {pipeline_mode = #tpu.pipeline_mode<synchronous>, transform_indices = @transform_5, window_bounds = array<i64: 472, 128>}, {pipeline_mode = #tpu.pipeline_mode<synchronous>, transform_indices = @transform_6, window_bounds = array<i64: 472, 1>}, {pipeline_mode = #tpu.pipeline_mode<synchronous>, transform_indices = @transform_7, window_bounds = array<i64: 8, 64>}, {pipeline_mode = #tpu.pipeline_mode<synchronous>, transform_indices = @transform_8, window_bounds = array<i64: 8, 64>}, {pipeline_mode = #tpu.pipeline_mode<synchronous>, transform_indices = @transform_9, window_bounds = array<i64: 64, 8>}, {pipeline_mode = #tpu.pipeline_mode<synchronous>, transform_indices = @transform_10, window_bounds = array<i64: 59, 472>}, {pipeline_mode = #tpu.pipeline_mode<synchronous>, transform_indices = @transform_11, window_bounds = array<i64: 472, 8>}, {transform_indices = @transform_12, window_bounds = array<i64: 1, 59, 64>}]} {
    %c0_i32 = arith.constant 0 : i32
    %0 = arith.cmpi eq, %arg1, %c0_i32 : i32
    %1 = arith.extui %0 : i1 to i32
    %c0_i32_0 = arith.constant 0 : i32
    %2 = arith.cmpi ne, %1, %c0_i32_0 : i32
    scf.if %2 {
      %cst_9 = arith.constant 0.000000e+00 : f32
      %13 = vector.broadcast %cst_9 : f32 to vector<512x1xf32>
      %c0_10 = arith.constant 0 : index
      %c0_11 = arith.constant 0 : index
      %14 = vector.load %arg15[%c0_10, %c0_11] : memref<512x1xf32, #tpu.memory_space<vmem>>, vector<512x1xf32>
      tpu.vector_store %arg15[%c0_10, %c0_11], %13 {strides = array<i32>} : memref<512x1xf32, #tpu.memory_space<vmem>>, vector<512x1xf32>,
    } else {
    }
    %c0 = arith.constant 0 : index
    %c0_1 = arith.constant 0 : index
    %3 = vector.load %arg15[%c0, %c0_1] : memref<512x1xf32, #tpu.memory_space<vmem>>, vector<512x1xf32>
    %c0_2 = arith.constant 0 : index
    %c0_3 = arith.constant 0 : index
    %c0_4 = arith.constant 0 : index
    %4 = vector.load %arg2[%c0_2, %c0_3, %c0_4] : memref<1x512x256xf32, #tpu.memory_space<vmem>>, vector<1x512x256xf32>
    %5 = vector.shape_cast %4 : vector<1x512x256xf32> to vector<512x256xf32>
    %cst = arith.constant dense<0.000000e+00> : vector<512xf32>
    %6 = vector.multi_reduction <add>, %5, %cst [1] : vector<512x256xf32> to vector<512xf32>
    %7 = vector.shape_cast %6 : vector<512xf32> to vector<512x1xf32>
    %8 = arith.addf %3, %7 : vector<512x1xf32>
    %c0_5 = arith.constant 0 : index
    %c0_6 = arith.constant 0 : index
    %9 = vector.load %arg15[%c0_5, %c0_6] : memref<512x1xf32, #tpu.memory_space<vmem>>, vector<512x1xf32>
    tpu.vector_store %arg15[%c0_5, %c0_6], %8 {strides = array<i32>} : memref<512x1xf32, #tpu.memory_space<vmem>>, vector<512x1xf32>,
    %c0_i32_7 = arith.constant 0 : i32
    %10 = arith.cmpi eq, %arg1, %c0_i32_7 : i32
    %11 = arith.extui %10 : i1 to i32
    %c0_i32_8 = arith.constant 0 : i32
    %12 = arith.cmpi ne, %11, %c0_i32_8 : i32
    scf.if %12 {
      %c0_9 = arith.constant 0 : index
      %c0_10 = arith.constant 0 : index
      %13 = vector.load %arg15[%c0_9, %c0_10] : memref<512x1xf32, #tpu.memory_space<vmem>>, vector<512x1xf32>
      %cst_11 = arith.constant 3.906250e-03 : f32
      %14 = vector.broadcast %cst_11 : f32 to vector<512x1xf32>
      %15 = arith.mulf %13, %14 : vector<512x1xf32>
      %c0_12 = arith.constant 0 : index
      %c0_13 = arith.constant 0 : index
      %16 = vector.load %arg3[%c0_12, %c0_13] : memref<256x512xf32, #tpu.memory_space<vmem>>, vector<256x512xf32>
      %cst_14 = arith.constant dense<0.000000e+00> : vector<256x1xf32>
      %17 = tpu.matmul %16, %15, %cst_14 {dimension_numbers = #tpu.dot_dimension_numbers<[1], [0], [0], [1], [0, 0, 1, 1], [], []>} : vector<256x512xf32>, vector<512x1xf32>, vector<256x1xf32> -> vector<256x1xf32>
      %c0_15 = arith.constant 0 : index
      %c0_16 = arith.constant 0 : index
      %18 = vector.load %arg4[%c0_15, %c0_16] : memref<256x1xf32, #tpu.memory_space<vmem>>, vector<256x1xf32>
      %19 = arith.addf %17, %18 : vector<256x1xf32>
      %cst_17 = arith.constant 0.000000e+00 : f32
      %20 = vector.broadcast %cst_17 : f32 to vector<256x1xf32>
      %21 = arith.maximumf %19, %20 : vector<256x1xf32>
      %22 = vector.extract_strided_slice %21 {offsets = [0, 0], sizes = [128, 1], strides = [1, 1]} : vector<256x1xf32> to vector<128x1xf32>
      %23 = vector.extract_strided_slice %21 {offsets = [128, 0], sizes = [128, 1], strides = [1, 1]} : vector<256x1xf32> to vector<128x1xf32>
      %c0_18 = arith.constant 0 : index
      %c0_19 = arith.constant 0 : index
      %24 = vector.load %arg5[%c0_18, %c0_19] : memref<64x128xf32, #tpu.memory_space<vmem>>, vector<64x128xf32>
      %cst_20 = arith.constant dense<0.000000e+00> : vector<64x1xf32>
      %25 = tpu.matmul %24, %22, %cst_20 {dimension_numbers = #tpu.dot_dimension_numbers<[1], [0], [0], [1], [0, 0, 1, 1], [], []>} : vector<64x128xf32>, vector<128x1xf32>, vector<64x1xf32> -> vector<64x1xf32>
      %c0_21 = arith.constant 0 : index
      %c0_22 = arith.constant 0 : index
      %26 = vector.load %arg6[%c0_21, %c0_22] : memref<64x1xf32, #tpu.memory_space<vmem>>, vector<64x1xf32>
      %27 = arith.addf %25, %26 : vector<64x1xf32>
      %c0_23 = arith.constant 0 : index
      %c0_24 = arith.constant 0 : index
      %28 = vector.load %arg7[%c0_23, %c0_24] : memref<472x128xf32, #tpu.memory_space<vmem>>, vector<472x128xf32>
      %cst_25 = arith.constant dense<0.000000e+00> : vector<472x1xf32>
      %29 = tpu.matmul %28, %23, %cst_25 {dimension_numbers = #tpu.dot_dimension_numbers<[1], [0], [0], [1], [0, 0, 1, 1], [], []>} : vector<472x128xf32>, vector<128x1xf32>, vector<472x1xf32> -> vector<472x1xf32>
      %c0_26 = arith.constant 0 : index
      %c0_27 = arith.constant 0 : index
      %30 = vector.load %arg8[%c0_26, %c0_27] : memref<472x1xf32, #tpu.memory_space<vmem>>, vector<472x1xf32>
      %31 = arith.addf %29, %30 : vector<472x1xf32>
      %c0_28 = arith.constant 0 : index
      %c0_29 = arith.constant 0 : index
      %32 = vector.load %arg9[%c0_28, %c0_29] : memref<8x64xf32, #tpu.memory_space<vmem>>, vector<8x64xf32>
      %c0_30 = arith.constant 0 : index
      %c0_31 = arith.constant 0 : index
      %33 = vector.load %arg11[%c0_30, %c0_31] : memref<64x8xf32, #tpu.memory_space<vmem>>, vector<64x8xf32>
      %34 = vector.broadcast %27 : vector<64x1xf32> to vector<64x8xf32>
      %35 = arith.mulf %34, %33 : vector<64x8xf32>
      %cst_32 = arith.constant dense<0.000000e+00> : vector<8x8xf32>
      %36 = tpu.matmul %32, %35, %cst_32 {dimension_numbers = #tpu.dot_dimension_numbers<[1], [0], [0], [1], [0, 0, 1, 1], [], []>} : vector<8x64xf32>, vector<64x8xf32>, vector<8x8xf32> -> vector<8x8xf32>
      %c0_33 = arith.constant 0 : index
      %c0_34 = arith.constant 0 : index
      %37 = vector.load %arg12[%c0_33, %c0_34] : memref<59x472xf32, #tpu.memory_space<vmem>>, vector<59x472xf32>
      %c0_35 = arith.constant 0 : index
      %c0_36 = arith.constant 0 : index
      %38 = vector.load %arg13[%c0_35, %c0_36] : memref<472x8xf32, #tpu.memory_space<vmem>>, vector<472x8xf32>
      %39 = vector.broadcast %31 : vector<472x1xf32> to vector<472x8xf32>
      %40 = arith.mulf %39, %38 : vector<472x8xf32>
      %cst_37 = arith.constant dense<0.000000e+00> : vector<59x8xf32>
      %41 = tpu.matmul %37, %40, %cst_37 {dimension_numbers = #tpu.dot_dimension_numbers<[1], [0], [0], [1], [0, 0, 1, 1], [], []>} : vector<59x472xf32>, vector<472x8xf32>, vector<59x8xf32> -> vector<59x8xf32>
      %cst_38 = arith.constant dense<0xFF800000> : vector<8xf32>
      %42 = vector.multi_reduction <maximumf>, %36, %cst_38 [0] : vector<8x8xf32> to vector<8xf32>
      %43 = vector.shape_cast %42 : vector<8xf32> to vector<1x8xf32>
      %44 = vector.broadcast %43 : vector<1x8xf32> to vector<8x8xf32>
      %45 = arith.subf %36, %44 : vector<8x8xf32>
      %46 = math.exp %45 : vector<8x8xf32>
      %cst_39 = arith.constant dense<0xFF800000> : vector<59xf32>
      %47 = vector.multi_reduction <maximumf>, %41, %cst_39 [1] : vector<59x8xf32> to vector<59xf32>
      %48 = vector.shape_cast %47 : vector<59xf32> to vector<59x1xf32>
      %49 = vector.broadcast %48 : vector<59x1xf32> to vector<59x8xf32>
      %50 = arith.subf %41, %49 : vector<59x8xf32>
      %51 = math.exp %50 : vector<59x8xf32>
      %cst_40 = arith.constant dense<0.000000e+00> : vector<59x8xf32>
      %52 = tpu.matmul %51, %46, %cst_40 {dimension_numbers = #tpu.dot_dimension_numbers<[1], [0], [0], [1], [0, 0, 1, 1], [], []>} : vector<59x8xf32>, vector<8x8xf32>, vector<59x8xf32> -> vector<59x8xf32>
      %53 = tpu.reciprocal %52 {approx = true} : vector<59x8xf32> -> vector<59x8xf32>
      %54 = arith.mulf %52, %53 : vector<59x8xf32>
      %cst_41 = arith.constant 2.000000e+00 : f32
      %55 = vector.broadcast %cst_41 : f32 to vector<59x8xf32>
      %56 = arith.subf %55, %54 : vector<59x8xf32>
      %57 = arith.mulf %53, %56 : vector<59x8xf32>
      %c0_42 = arith.constant 0 : index
      %c0_43 = arith.constant 0 : index
      %58 = vector.load %arg10[%c0_42, %c0_43] : memref<8x64xf32, #tpu.memory_space<vmem>>, vector<8x64xf32>
      %cst_44 = arith.constant dense<0.000000e+00> : vector<8x64xf32>
      %59 = tpu.matmul %46, %58, %cst_44 {dimension_numbers = #tpu.dot_dimension_numbers<[1], [0], [0], [1], [0, 0, 1, 1], [], []>} : vector<8x8xf32>, vector<8x64xf32>, vector<8x64xf32> -> vector<8x64xf32>
      %c0_45 = arith.constant 0 : index
      %c0_46 = arith.constant 0 : index
      %60 = vector.load %arg9[%c0_45, %c0_46] : memref<8x64xf32, #tpu.memory_space<vmem>>, vector<8x64xf32>
      %61 = arith.mulf %59, %60 : vector<8x64xf32>
      %cst_47 = arith.constant dense<0.000000e+00> : vector<59x64xf32>
      %62 = tpu.matmul %51, %61, %cst_47 {dimension_numbers = #tpu.dot_dimension_numbers<[1], [0], [0], [1], [0, 0, 1, 1], [], []>} : vector<59x8xf32>, vector<8x64xf32>, vector<59x64xf32> -> vector<59x64xf32>
      %c0_48 = arith.constant 0 : index
      %c0_49 = arith.constant 0 : index
      %63 = vector.load %arg10[%c0_48, %c0_49] : memref<8x64xf32, #tpu.memory_space<vmem>>, vector<8x64xf32>
      %cst_50 = arith.constant dense<0.000000e+00> : vector<59x64xf32>
      %64 = tpu.matmul %57, %63, %cst_50 {dimension_numbers = #tpu.dot_dimension_numbers<[1], [0], [0], [1], [0, 0, 1, 1], [], []>} : vector<59x8xf32>, vector<8x64xf32>, vector<59x64xf32> -> vector<59x64xf32>
      %65 = arith.mulf %62, %64 : vector<59x64xf32>
      %c0_51 = arith.constant 0 : index
      %c0_52 = arith.constant 0 : index
      %c0_53 = arith.constant 0 : index
      %66 = vector.load %arg14[%c0_51, %c0_52, %c0_53] : memref<1x59x64xf32, #tpu.memory_space<vmem>>, vector<1x59x64xf32>
      %67 = vector.shape_cast %66 : vector<1x59x64xf32> to vector<59x64xf32>
      %68 = vector.shape_cast %65 : vector<59x64xf32> to vector<1x59x64xf32>
      tpu.vector_store %arg14[%c0_51, %c0_52, %c0_53], %68 {strides = array<i32>} : memref<1x59x64xf32, #tpu.memory_space<vmem>>, vector<1x59x64xf32>,
    } else {
    }
    return
  }
  func.func @transform_0(%arg0: i32, %arg1: i32) -> (i32, i32, i32) {
    %c0_i32 = arith.constant 0 : i32
    %c0_i32_0 = arith.constant 0 : i32
    return %arg0, %c0_i32, %arg1 : i32, i32, i32
  }
  func.func @transform_1(%arg0: i32, %arg1: i32) -> (i32, i32) {
    %c0_i32 = arith.constant 0 : i32
    %c0_i32_0 = arith.constant 0 : i32
    %c0_i32_1 = arith.constant 0 : i32
    return %c0_i32, %c0_i32_0 : i32, i32
  }
  func.func @transform_2(%arg0: i32, %arg1: i32) -> (i32, i32) {
    %c0_i32 = arith.constant 0 : i32
    %c0_i32_0 = arith.constant 0 : i32
    %c0_i32_1 = arith.constant 0 : i32
    return %c0_i32, %c0_i32_0 : i32, i32
  }
  func.func @transform_3(%arg0: i32, %arg1: i32) -> (i32, i32) {
    %c0_i32 = arith.constant 0 : i32
    %c0_i32_0 = arith.constant 0 : i32
    %c0_i32_1 = arith.constant 0 : i32
    return %c0_i32, %c0_i32_0 : i32, i32
  }
  func.func @transform_4(%arg0: i32, %arg1: i32) -> (i32, i32) {
    %c0_i32 = arith.constant 0 : i32
    %c0_i32_0 = arith.constant 0 : i32
    %c0_i32_1 = arith.constant 0 : i32
    return %c0_i32, %c0_i32_0 : i32, i32
  }
  func.func @transform_5(%arg0: i32, %arg1: i32) -> (i32, i32) {
    %c0_i32 = arith.constant 0 : i32
    %c0_i32_0 = arith.constant 0 : i32
    %c0_i32_1 = arith.constant 0 : i32
    return %c0_i32, %c0_i32_0 : i32, i32
  }
  func.func @transform_6(%arg0: i32, %arg1: i32) -> (i32, i32) {
    %c0_i32 = arith.constant 0 : i32
    %c0_i32_0 = arith.constant 0 : i32
    %c0_i32_1 = arith.constant 0 : i32
    return %c0_i32, %c0_i32_0 : i32, i32
  }
  func.func @transform_7(%arg0: i32, %arg1: i32) -> (i32, i32) {
    %c0_i32 = arith.constant 0 : i32
    %c0_i32_0 = arith.constant 0 : i32
    %c0_i32_1 = arith.constant 0 : i32
    return %c0_i32, %c0_i32_0 : i32, i32
  }
  func.func @transform_8(%arg0: i32, %arg1: i32) -> (i32, i32) {
    %c0_i32 = arith.constant 0 : i32
    %c0_i32_0 = arith.constant 0 : i32
    %c0_i32_1 = arith.constant 0 : i32
    return %c0_i32, %c0_i32_0 : i32, i32
  }
  func.func @transform_9(%arg0: i32, %arg1: i32) -> (i32, i32) {
    %c0_i32 = arith.constant 0 : i32
    %c0_i32_0 = arith.constant 0 : i32
    %c0_i32_1 = arith.constant 0 : i32
    return %c0_i32, %c0_i32_0 : i32, i32
  }
  func.func @transform_10(%arg0: i32, %arg1: i32) -> (i32, i32) {
    %c0_i32 = arith.constant 0 : i32
    %c0_i32_0 = arith.constant 0 : i32
    %c0_i32_1 = arith.constant 0 : i32
    return %c0_i32, %c0_i32_0 : i32, i32
  }
  func.func @transform_11(%arg0: i32, %arg1: i32) -> (i32, i32) {
    %c0_i32 = arith.constant 0 : i32
    %c0_i32_0 = arith.constant 0 : i32
    %c0_i32_1 = arith.constant 0 : i32
    return %c0_i32, %c0_i32_0 : i32, i32
  }
  func.func @transform_12(%arg0: i32, %arg1: i32) -> (i32, i32, i32) {
    %c0_i32 = arith.constant 0 : i32
    %c0_i32_0 = arith.constant 0 : i32
    %c0_i32_1 = arith.constant 0 : i32
    return %arg0, %c0_i32, %c0_i32_0 : i32, i32, i32
  }
}

</mosaic_0001>

<bundles_post_ra>
// kernel: fcnn_t_forward.1
= control target key start
LH: loop header
LB: loop body
LE: loop exit
PB: predicated region body
PF: predicated region fallthrough
CT: control target
= control target key end

     0   :  { %s4873_s21 = smov 0   ;;  %s4875_s22 = smov 0   ;;  %s6741_s0 = inlined_call_operand.vmem [shape: f32[2,512,256], index: 0, kind: input, shape index: {}]   ;;  %s6742_s1 = inlined_call_operand.vmem [shape: f32[256,512], index: 1, kind: input, shape index: {}]   ;;  %s6743_s2 = inlined_call_operand.vmem [shape: f32[256,1], index: 2, kind: input, shape index: {}]   ;;  %s6744_s3 = inlined_call_operand.vmem [shape: f32[64,128], index: 3, kind: input, shape index: {}]   ;;  %s6745_s4 = inlined_call_operand.vmem [shape: f32[64,1], index: 4, kind: input, shape index: {}]   ;;  %s6746_s5 = inlined_call_operand.vmem [shape: f32[472,128], index: 5, kind: input, shape index: {}]   ;;  %s6747_s6 = inlined_call_operand.vmem [shape: f32[472,1], index: 6, kind: input, shape index: {}]   ;;  %s6748_s7 = inlined_call_operand.vmem [shape: f32[8,64], index: 7, kind: input, shape index: {}]   ;;  %s6749_s8 = inlined_call_operand.vmem [shape: f32[8,64], index: 8, kind: input, shape index: {}]   ;;  %s6750_s9 = inlined_call_operand.vmem [shape: f32[64,8], index: 9, kind: input, shape index: {}]   ;;  %s6751_s10 = inlined_call_operand.vmem [shape: f32[59,472], index: 10, kind: input, shape index: {}]   ;;  %s6752_s11 = inlined_call_operand.vmem [shape: f32[472,8], index: 11, kind: input, shape index: {}]   ;;  %s6753_s12 = inlined_call_operand.vmem [shape: f32[2,59,64], index: 12, kind: output, shape index: {}]  }
   0x1   :  { %s4877_s23 = smov 0  }
   0x2 LB: > { %s34_s24 = sadd.s32 1, %s4798_s22  ;;  %p3827_p0 = scmp.ge.s32.totalorder %s4802_s23, 1  ;;  %s4802_s23 = sphi %s4877_s23, %s22_s23   ;;  %s4798_s22 = sphi %s4875_s22, %s6755_s22   ;;  %s4794_s21 = sphi %s4873_s21, %s6754_s21  }
   0x3   : > { %p36_p1 = scmp.ge.s32.totalorder %s34_s24, 2  ;;  %p381_p2 = scmp.lt.s32.totalorder %s4802_s23, 3 }
   0x5   : > { %s6757_s24 = smov (%p36_p1, %s34_s24), 0  ;;  %p382_p3 = pnand %p3827_p0, %p381_p2 }
   0x6   : > { %p428_p4 = scmp.lt.s32.totalorder (!%p382_p3), %s4794_s21, 1  ;;  %vm446_vm0 = vcmask (!%p382_p3), 7168   ;;  %v4804_v0 = vmov (!%p382_p3), 0.0   ;;  %v4805_v59 = vmov (!%p382_p3), 0.0|0.0   ;;  %vm4806_vm1 = vmmov (!%p382_p3), 0  }
   0x7   : > { %385 = sbr.rel (%p382_p3) target bundleno = 2148 (0x864), region = 68  ;;  %449 = vst.msk [vmem:[#allocation2 + $0x10] sm:$0xff] (!%p382_p3), %vm446_vm0, %v4804_v0  ;;  %447 = vst.msk [vmem:[#allocation2] sm:$0xff] (!%p382_p3), %vm446_vm0, %v4804_v0  ;;  %4382 = vmatprep.subr.bf16.mxu0 (!%p382_p3), %v4805_v59  ;;  %vm2453_vm2 = vcmask (!%p382_p3), 523264   ;;  %vm2972_vm3 = vcmask (!%p382_p3), 719872   ;;  %vm3207_vm4 = vcmask (!%p382_p3), 64512  }
   0x8   : > { %448 = vst.msk [vmem:[#allocation2 + $0x8] sm:$0xff] (!%p382_p3), %vm446_vm0, %v4804_v0  ;;  %450 = vst.msk [vmem:[#allocation2 + $0x18] sm:$0xff] (!%p382_p3), %vm446_vm0, %v4804_v0  ;;  %vm3239_vm5 = vcmask (!%p382_p3), 59392   ;;  %vm3752_vm6 = vcmask (!%p382_p3), 518144  }
   0x9   : > { %451 = vst.msk [vmem:[#allocation2 + $0x20] sm:$0xff] (!%p382_p3), %vm446_vm0, %v4804_v0  ;;  %452 = vst.msk [vmem:[#allocation2 + $0x28] sm:$0xff] (!%p382_p3), %vm446_vm0, %v4804_v0 }
   0xa   : > { %453 = vst.msk [vmem:[#allocation2 + $0x30] sm:$0xff] (!%p382_p3), %vm446_vm0, %v4804_v0  ;;  %454 = vst.msk [vmem:[#allocation2 + $0x38] sm:$0xff] (!%p382_p3), %vm446_vm0, %v4804_v0 }
   0xb   : > { %455 = vst.msk [vmem:[#allocation2 + $0x40] sm:$0xff] (!%p382_p3), %vm446_vm0, %v4804_v0  ;;  %456 = vst.msk [vmem:[#allocation2 + $0x48] sm:$0xff] (!%p382_p3), %vm446_vm0, %v4804_v0 }
   0xc   : > { %457 = vst.msk [vmem:[#allocation2 + $0x50] sm:$0xff] (!%p382_p3), %vm446_vm0, %v4804_v0  ;;  %458 = vst.msk [vmem:[#allocation2 + $0x58] sm:$0xff] (!%p382_p3), %vm446_vm0, %v4804_v0 }
   0xd   : > { %459 = vst.msk [vmem:[#allocation2 + $0x60] sm:$0xff] (!%p382_p3), %vm446_vm0, %v4804_v0  ;;  %460 = vst.msk [vmem:[#allocation2 + $0x68] sm:$0xff] (!%p382_p3), %vm446_vm0, %v4804_v0 }
   0xe   : > { %461 = vst.msk [vmem:[#allocation2 + $0x70] sm:$0xff] %vm446_vm0, %v4804_v0  ;;  %462 = vst.msk [vmem:[#allocation2 + $0x78] sm:$0xff] %vm446_vm0, %v4804_v0  ;;  %s6759_s21 = smov (!%p428_p4, %s4794_s21), 1 }
   0xf   : > { %463 = vst.msk [vmem:[#allocation2 + $0x80] sm:$0xff] %vm446_vm0, %v4804_v0  ;;  %464 = vst.msk [vmem:[#allocation2 + $0x88] sm:$0xff] %vm446_vm0, %v4804_v0  ;;  %s3868_s25 = sshll.u32 %s6759_s21, 10  ;;  %s3869_s19 = sshll.u32 %s6759_s21, 6 }
  0x10   : > { %465 = vst.msk [vmem:[#allocation2 + $0x90] sm:$0xff] %vm446_vm0, %v4804_v0  ;;  %466 = vst.msk [vmem:[#allocation2 + $0x98] sm:$0xff] %vm446_vm0, %v4804_v0  ;;  %s5031_s28 = scalar_lea.vmem %s6741_s0, %s3868_s25  ;;  %s441_s26 = scalar_lea.vmem %s6753_s12, %s3869_s19 }
  0x11   : > { %467 = vst.msk [vmem:[#allocation2 + $0xa0] sm:$0xff] %vm446_vm0, %v4804_v0  ;;  %468 = vst.msk [vmem:[#allocation2 + $0xa8] sm:$0xff] %vm446_vm0, %v4804_v0  ;;  %v579_v1 = vld [vmem:[%s5031_s28 + $0x20] sm:$0xff]  ;;  %v580_v2 = vld [vmem:[%s5031_s28 + $0x28] sm:$0xff] }
  0x12   : > { %469 = vst.msk [vmem:[#allocation2 + $0xb0] sm:$0xff] %vm446_vm0, %v4804_v0  ;;  %470 = vst.msk [vmem:[#allocation2 + $0xb8] sm:$0xff] %vm446_vm0, %v4804_v0  ;;  %v575_v3 = vld [vmem:[%s5031_s28] sm:$0xff]  ;;  %v709_v4 = vadd.f32 %v580_v2, %v579_v1  ;;  %v576_v5 = vld [vmem:[%s5031_s28 + $0x8] sm:$0xff] }
  0x13   : > { %471 = vst.msk [vmem:[#allocation2 + $0xc0] sm:$0xff] %vm446_vm0, %v4804_v0  ;;  %472 = vst.msk [vmem:[#allocation2 + $0xc8] sm:$0xff] %vm446_vm0, %v4804_v0  ;;  %v581_v6 = vld [vmem:[%s5031_s28 + $0x30] sm:$0xff]  ;;  %v582_v7 = vld [vmem:[%s5031_s28 + $0x38] sm:$0xff]  ;;  %v703_v8 = vadd.f32 %v576_v5, %v575_v3 }
  0x14   : > { %473 = vst.msk [vmem:[#allocation2 + $0xd0] sm:$0xff] %vm446_vm0, %v4804_v0  ;;  %474 = vst.msk [vmem:[#allocation2 + $0xd8] sm:$0xff] %vm446_vm0, %v4804_v0  ;;  %v577_v9 = vld [vmem:[%s5031_s28 + $0x10] sm:$0xff]  ;;  %v578_v10 = vld [vmem:[%s5031_s28 + $0x18] sm:$0xff]  ;;  %710 = vadd.xlane.f32.xlu1 %v709_v4  ;;  %v712_v11 = vadd.f32 %v582_v7, %v581_v6 }
  0x15   : > { %475 = vst.msk [vmem:[#allocation2 + $0xe0] sm:$0xff] %vm446_vm0, %v4804_v0  ;;  %476 = vst.msk [vmem:[#allocation2 + $0xe8] sm:$0xff] %vm446_vm0, %v4804_v0  ;;  %704 = vadd.xlane.f32.xlu0 %v703_v8  ;;  %v706_v12 = vadd.f32 %v578_v10, %v577_v9  ;;  %v585_v13 = vld [vmem:[%s5031_s28 + $0x50] sm:$0xff]  ;;  %v586_v14 = vld [vmem:[%s5031_s28 + $0x58] sm:$0xff] }
  0x16   : > { %477 = vst.msk [vmem:[#allocation2 + $0xf0] sm:$0xff] %vm446_vm0, %v4804_v0  ;;  %478 = vst.msk [vmem:[#allocation2 + $0xf8] sm:$0xff] %vm446_vm0, %v4804_v0  ;;  %v583_v15 = vld [vmem:[%s5031_s28 + $0x40] sm:$0xff]  ;;  %v584_v16 = vld [vmem:[%s5031_s28 + $0x48] sm:$0xff]  ;;  %v718_v17 = vadd.f32 %v586_v14, %v585_v13 }
  0x17   : > { %479 = vst.msk [vmem:[#allocation2 + $0x100] sm:$0xff] %vm446_vm0, %v4804_v0  ;;  %480 = vst.msk [vmem:[#allocation2 + $0x108] sm:$0xff] %vm446_vm0, %v4804_v0  ;;  %v715_v18 = vadd.f32 %v584_v16, %v583_v15  ;;  %v589_v19 = vld [vmem:[%s5031_s28 + $0x70] sm:$0xff]  ;;  %v590_v20 = vld [vmem:[%s5031_s28 + $0x78] sm:$0xff] }
  0x18   : > { %481 = vst.msk [vmem:[#allocation2 + $0x110] sm:$0xff] %vm446_vm0, %v4804_v0  ;;  %482 = vst.msk [vmem:[#allocation2 + $0x118] sm:$0xff] %vm446_vm0, %v4804_v0  ;;  %713 = vadd.xlane.f32.xlu1 %v712_v11  ;;  %v587_v21 = vld [vmem:[%s5031_s28 + $0x60] sm:$0xff]  ;;  %v588_v22 = vld [vmem:[%s5031_s28 + $0x68] sm:$0xff]  ;;  %v724_v23 = vadd.f32 %v590_v20, %v589_v19 }
  0x19   : > { %483 = vst.msk [vmem:[#allocation2 + $0x120] sm:$0xff] %vm446_vm0, %v4804_v0  ;;  %484 = vst.msk [vmem:[#allocation2 + $0x128] sm:$0xff] %vm446_vm0, %v4804_v0  ;;  %707 = vadd.xlane.f32.xlu0 %v706_v12  ;;  %v721_v24 = vadd.f32 %v588_v22, %v587_v21  ;;  %v593_v25 = vld [vmem:[%s5031_s28 + $0x90] sm:$0xff]  ;;  %v594_v26 = vld [vmem:[%s5031_s28 + $0x98] sm:$0xff] }
  0x1a   : > { %485 = vst.msk [vmem:[#allocation2 + $0x130] sm:$0xff] %vm446_vm0, %v4804_v0  ;;  %486 = vst.msk [vmem:[#allocation2 + $0x138] sm:$0xff] %vm446_vm0, %v4804_v0  ;;  %v591_v27 = vld [vmem:[%s5031_s28 + $0x80] sm:$0xff]  ;;  %v592_v28 = vld [vmem:[%s5031_s28 + $0x88] sm:$0xff]  ;;  %v730_v29 = vadd.f32 %v594_v26, %v593_v25 }
  0x1b   : > { %487 = vst.msk [vmem:[#allocation2 + $0x140] sm:$0xff] %vm446_vm0, %v4804_v0  ;;  %488 = vst.msk [vmem:[#allocation2 + $0x148] sm:$0xff] %vm446_vm0, %v4804_v0  ;;  %v727_v30 = vadd.f32 %v592_v28, %v591_v27  ;;  %v597_v31 = vld [vmem:[%s5031_s28 + $0xb0] sm:$0xff]  ;;  %v598_v32 = vld [vmem:[%s5031_s28 + $0xb8] sm:$0xff] }
  0x1c   : > { %489 = vst.msk [vmem:[#allocation2 + $0x150] sm:$0xff] %vm446_vm0, %v4804_v0  ;;  %490 = vst.msk [vmem:[#allocation2 + $0x158] sm:$0xff] %vm446_vm0, %v4804_v0  ;;  %719 = vadd.xlane.f32.xlu1 %v718_v17  ;;  %v595_v33 = vld [vmem:[%s5031_s28 + $0xa0] sm:$0xff]  ;;  %v596_v34 = vld [vmem:[%s5031_s28 + $0xa8] sm:$0xff]  ;;  %v736_v35 = vadd.f32 %v598_v32, %v597_v31 }
  0x1d   : > { %491 = vst.msk [vmem:[#allocation2 + $0x160] sm:$0xff] %vm446_vm0, %v4804_v0  ;;  %492 = vst.msk [vmem:[#allocation2 + $0x168] sm:$0xff] %vm446_vm0, %v4804_v0  ;;  %716 = vadd.xlane.f32.xlu0 %v715_v18  ;;  %v733_v36 = vadd.f32 %v596_v34, %v595_v33  ;;  %v601_v37 = vld [vmem:[%s5031_s28 + $0xd0] sm:$0xff]  ;;  %v602_v38 = vld [vmem:[%s5031_s28 + $0xd8] sm:$0xff] }
  0x1e   : > { %493 = vst.msk [vmem:[#allocation2 + $0x170] sm:$0xff] %vm446_vm0, %v4804_v0  ;;  %494 = vst.msk [vmem:[#allocation2 + $0x178] sm:$0xff] %vm446_vm0, %v4804_v0  ;;  %v599_v39 = vld [vmem:[%s5031_s28 + $0xc0] sm:$0xff]  ;;  %v600_v40 = vld [vmem:[%s5031_s28 + $0xc8] sm:$0xff]  ;;  %v742_v41 = vadd.f32 %v602_v38, %v601_v37 }
  0x1f   : > { %495 = vst.msk [vmem:[#allocation2 + $0x180] sm:$0xff] %vm446_vm0, %v4804_v0  ;;  %496 = vst.msk [vmem:[#allocation2 + $0x188] sm:$0xff] %vm446_vm0, %v4804_v0  ;;  %v739_v42 = vadd.f32 %v600_v40, %v599_v39  ;;  %v605_v43 = vld [vmem:[%s5031_s28 + $0xf0] sm:$0xff]  ;;  %v606_v44 = vld [vmem:[%s5031_s28 + $0xf8] sm:$0xff] }
  0x20   : > { %497 = vst.msk [vmem:[#allocation2 + $0x190] sm:$0xff] %vm446_vm0, %v4804_v0  ;;  %498 = vst.msk [vmem:[#allocation2 + $0x198] sm:$0xff] %vm446_vm0, %v4804_v0  ;;  %725 = vadd.xlane.f32.xlu1 %v724_v23  ;;  %v603_v45 = vld [vmem:[%s5031_s28 + $0xe0] sm:$0xff]  ;;  %v604_v46 = vld [vmem:[%s5031_s28 + $0xe8] sm:$0xff]  ;;  %v748_v47 = vadd.f32 %v606_v44, %v605_v43 }
  0x21   : > { %499 = vst.msk [vmem:[#allocation2 + $0x1a0] sm:$0xff] %vm446_vm0, %v4804_v0  ;;  %500 = vst.msk [vmem:[#allocation2 + $0x1a8] sm:$0xff] %vm446_vm0, %v4804_v0  ;;  %722 = vadd.xlane.f32.xlu0 %v721_v24  ;;  %v745_v48 = vadd.f32 %v604_v46, %v603_v45  ;;  %v609_v49 = vld [vmem:[%s5031_s28 + $0x110] sm:$0xff]  ;;  %v610_v50 = vld [vmem:[%s5031_s28 + $0x118] sm:$0xff] }
  0x22   : > { %501 = vst.msk [vmem:[#allocation2 + $0x1b0] sm:$0xff] %vm446_vm0, %v4804_v0  ;;  %502 = vst.msk [vmem:[#allocation2 + $0x1b8] sm:$0xff] %vm446_vm0, %v4804_v0  ;;  %v607_v51 = vld [vmem:[%s5031_s28 + $0x100] sm:$0xff]  ;;  %v608_v52 = vld [vmem:[%s5031_s28 + $0x108] sm:$0xff]  ;;  %v754_v53 = vadd.f32 %v610_v50, %v609_v49 }
  0x23   : > { %503 = vst.msk [vmem:[#allocation2 + $0x1c0] sm:$0xff] %vm446_vm0, %v4804_v0  ;;  %504 = vst.msk [vmem:[#allocation2 + $0x1c8] sm:$0xff] %vm446_vm0, %v4804_v0  ;;  %v751_v54 = vadd.f32 %v608_v52, %v607_v51  ;;  %v613_v55 = vld [vmem:[%s5031_s28 + $0x130] sm:$0xff]  ;;  %v614_v56 = vld [vmem:[%s5031_s28 + $0x138] sm:$0xff] }
  0x24   : > { %505 = vst.msk [vmem:[#allocation2 + $0x1d0] sm:$0xff] %vm446_vm0, %v4804_v0  ;;  %506 = vst.msk [vmem:[#allocation2 + $0x1d8] sm:$0xff] %vm446_vm0, %v4804_v0  ;;  %731 = vadd.xlane.f32.xlu1 %v730_v29  ;;  %v611_v57 = vld [vmem:[%s5031_s28 + $0x120] sm:$0xff]  ;;  %v612_v58 = vld [vmem:[%s5031_s28 + $0x128] sm:$0xff]  ;;  %v760_v60 = vadd.f32 %v614_v56, %v613_v55 }
  0x25   : > { %507 = vst.msk [vmem:[#allocation2 + $0x1e0] sm:$0xff] %vm446_vm0, %v4804_v0  ;;  %508 = vst.msk [vmem:[#allocation2 + $0x1e8] sm:$0xff] %vm446_vm0, %v4804_v0  ;;  %728 = vadd.xlane.f32.xlu0 %v727_v30  ;;  %v757_v61 = vadd.f32 %v612_v58, %v611_v57  ;;  %v617_v62 = vld [vmem:[%s5031_s28 + $0x150] sm:$0xff]  ;;  %v618_v63 = vld [vmem:[%s5031_s28 + $0x158] sm:$0xff] }
  0x26   : > { %509 = vst.msk [vmem:[#allocation2 + $0x1f0] sm:$0xff] %vm446_vm0, %v4804_v0  ;;  %510 = vst.msk [vmem:[#allocation2 + $0x1f8] sm:$0xff] %vm446_vm0, %v4804_v0  ;;  %v615_v1 = vld [vmem:[%s5031_s28 + $0x140] sm:$0xff]  ;;  %v616_v2 = vld [vmem:[%s5031_s28 + $0x148] sm:$0xff]  ;;  %v766_v3 = vadd.f32 %v618_v63, %v617_v62 }
  0x27   : > { %v763_v4 = vadd.f32 %v616_v2, %v615_v1  ;;  %v621_v5 = vld [vmem:[%s5031_s28 + $0x170] sm:$0xff]  ;;  %v622_v6 = vld [vmem:[%s5031_s28 + $0x178] sm:$0xff]  ;;  %v619_v7 = vld [vmem:[%s5031_s28 + $0x160] sm:$0xff] }
  0x28   : > { %737 = vadd.xlane.f32.xlu1 %v736_v35  ;;  %v620_v8 = vld [vmem:[%s5031_s28 + $0x168] sm:$0xff]  ;;  %v772_v9 = vadd.f32 %v622_v6, %v621_v5  ;;  %v625_v11 = vld [vmem:[%s5031_s28 + $0x190] sm:$0xff]  ;;  %v626_v12 = vld [vmem:[%s5031_s28 + $0x198] sm:$0xff] }
  0x29   : > { %734 = vadd.xlane.f32.xlu0 %v733_v36  ;;  %v769_v10 = vadd.f32 %v620_v8, %v619_v7  ;;  %v623_v13 = vld [vmem:[%s5031_s28 + $0x180] sm:$0xff]  ;;  %v624_v14 = vld [vmem:[%s5031_s28 + $0x188] sm:$0xff]  ;;  %v778_v15 = vadd.f32 %v626_v12, %v625_v11  ;;  %v629_v17 = vld [vmem:[%s5031_s28 + $0x1b0] sm:$0xff] }
  0x2a   : > { %v775_v16 = vadd.f32 %v624_v14, %v623_v13  ;;  %v630_v18 = vld [vmem:[%s5031_s28 + $0x1b8] sm:$0xff]  ;;  %v627_v19 = vld [vmem:[%s5031_s28 + $0x1a0] sm:$0xff]  ;;  %v628_v20 = vld [vmem:[%s5031_s28 + $0x1a8] sm:$0xff] }
  0x2b   : > { %v784_v21 = vadd.f32 %v630_v18, %v629_v17  ;;  %v781_v22 = vadd.f32 %v628_v20, %v627_v19  ;;  %v633_v23 = vld [vmem:[%s5031_s28 + $0x1d0] sm:$0xff]  ;;  %v634_v24 = vld [vmem:[%s5031_s28 + $0x1d8] sm:$0xff]  ;;  %v631_v25 = vld [vmem:[%s5031_s28 + $0x1c0] sm:$0xff] }
  0x2c   : > { %743 = vadd.xlane.f32.xlu1 %v742_v41  ;;  %v632_v26 = vld [vmem:[%s5031_s28 + $0x1c8] sm:$0xff]  ;;  %v790_v27 = vadd.f32 %v634_v24, %v633_v23  ;;  %v637_v29 = vld [vmem:[%s5031_s28 + $0x1f0] sm:$0xff]  ;;  %v638_v30 = vld [vmem:[%s5031_s28 + $0x1f8] sm:$0xff] }
  0x2d   : > { %740 = vadd.xlane.f32.xlu0 %v739_v42  ;;  %v787_v28 = vadd.f32 %v632_v26, %v631_v25  ;;  %v635_v31 = vld [vmem:[%s5031_s28 + $0x1e0] sm:$0xff]  ;;  %v636_v32 = vld [vmem:[%s5031_s28 + $0x1e8] sm:$0xff]  ;;  %v796_v33 = vadd.f32 %v638_v30, %v637_v29  ;;  %v641_v35 = vld [vmem:[%s5031_s28 + $0x210] sm:$0xff] }
  0x2e   : > { %v793_v34 = vadd.f32 %v636_v32, %v635_v31  ;;  %v642_v36 = vld [vmem:[%s5031_s28 + $0x218] sm:$0xff]  ;;  %v639_v37 = vld [vmem:[%s5031_s28 + $0x200] sm:$0xff]  ;;  %v640_v38 = vld [vmem:[%s5031_s28 + $0x208] sm:$0xff] }
  0x2f   : > { %v802_v39 = vadd.f32 %v642_v36, %v641_v35  ;;  %v799_v40 = vadd.f32 %v640_v38, %v639_v37  ;;  %v645_v41 = vld [vmem:[%s5031_s28 + $0x230] sm:$0xff]  ;;  %v646_v42 = vld [vmem:[%s5031_s28 + $0x238] sm:$0xff]  ;;  %v643_v43 = vld [vmem:[%s5031_s28 + $0x220] sm:$0xff] }
  0x30   : > { %749 = vadd.xlane.f32.xlu1 %v748_v47  ;;  %v644_v44 = vld [vmem:[%s5031_s28 + $0x228] sm:$0xff]  ;;  %v808_v45 = vadd.f32 %v646_v42, %v645_v41  ;;  %v649_v47 = vld [vmem:[%s5031_s28 + $0x250] sm:$0xff]  ;;  %v647_v49 = vld [vmem:[%s5031_s28 + $0x240] sm:$0xff] }
  0x31   : > { %746 = vadd.xlane.f32.xlu0 %v745_v48  ;;  %v805_v46 = vadd.f32 %v644_v44, %v643_v43  ;;  %v650_v48 = vld [vmem:[%s5031_s28 + $0x258] sm:$0xff]  ;;  %v648_v50 = vld [vmem:[%s5031_s28 + $0x248] sm:$0xff]  ;;  %v651_v55 = vld [vmem:[%s5031_s28 + $0x260] sm:$0xff] }
  0x32   : > { %v814_v51 = vadd.f32 %v650_v48, %v649_v47  ;;  %v811_v52 = vadd.f32 %v648_v50, %v647_v49  ;;  %v652_v56 = vld [vmem:[%s5031_s28 + $0x268] sm:$0xff]  ;;  %v655_v62 = vld [vmem:[%s5031_s28 + $0x280] sm:$0xff]  ;;  %v682_v35 = vld [vmem:[%s5031_s28 + $0x358] sm:$0xff] }
  0x33   : > { %v817_v58 = vadd.f32 %v652_v56, %v651_v55  ;;  %v656_v63 = vld [vmem:[%s5031_s28 + $0x288] sm:$0xff]  ;;  %v659_v5 = vld [vmem:[%s5031_s28 + $0x2a0] sm:$0xff]  ;;  %v686_v41 = vld [vmem:[%s5031_s28 + $0x378] sm:$0xff] }
  0x34   : > { %755 = vadd.xlane.f32.xlu1 %v754_v53  ;;  %v653_v53 = vld [vmem:[%s5031_s28 + $0x270] sm:$0xff]  ;;  %v823_v2 = vadd.f32 %v656_v63, %v655_v62  ;;  %v660_v6 = vld [vmem:[%s5031_s28 + $0x2a8] sm:$0xff]  ;;  %v663_v11 = vld [vmem:[%s5031_s28 + $0x2c0] sm:$0xff] }
  0x35   : > { %752 = vadd.xlane.f32.xlu0 %v751_v54  ;;  %v654_v54 = vld [vmem:[%s5031_s28 + $0x278] sm:$0xff]  ;;  %v829_v8 = vadd.f32 %v660_v6, %v659_v5  ;;  %v664_v12 = vld [vmem:[%s5031_s28 + $0x2c8] sm:$0xff]  ;;  %v667_v17 = vld [vmem:[%s5031_s28 + $0x2e0] sm:$0xff] }
  0x36   : > { %v820_v57 = vadd.f32 %v654_v54, %v653_v53  ;;  %v835_v14 = vadd.f32 %v664_v12, %v663_v11  ;;  %v668_v18 = vld [vmem:[%s5031_s28 + $0x2e8] sm:$0xff]  ;;  %v671_v23 = vld [vmem:[%s5031_s28 + $0x300] sm:$0xff]  ;;  %v690_v47 = vld [vmem:[%s5031_s28 + $0x398] sm:$0xff] }
  0x37   : > { %v841_v20 = vadd.f32 %v668_v18, %v667_v17  ;;  %v672_v24 = vld [vmem:[%s5031_s28 + $0x308] sm:$0xff]  ;;  %v675_v30 = vld [vmem:[%s5031_s28 + $0x320] sm:$0xff]  ;;  %v694_v53 = vld [vmem:[%s5031_s28 + $0x3b8] sm:$0xff] }
  0x38   : > { %761 = vadd.xlane.f32.xlu1 %v760_v60  ;;  %v657_v60 = vld [vmem:[%s5031_s28 + $0x290] sm:$0xff]  ;;  %v847_v26 = vadd.f32 %v672_v24, %v671_v23  ;;  %v1156_v29 = vld [vmem:[%s6742_s1 + $0x8] sm:$0xff]  ;;  %v679_v36 = vld [vmem:[%s5031_s28 + $0x340] sm:$0xff] }
  0x39   : > { %758 = vadd.xlane.f32.xlu0 %v757_v61  ;;  %v658_v61 = vld [vmem:[%s5031_s28 + $0x298] sm:$0xff]  ;;  %v676_v31 = vld [vmem:[%s5031_s28 + $0x328] sm:$0xff]  ;;  %1379 = vmatprep.mubr.f32.mxu0 %v1156_v29  ;;  %v683_v42 = vld [vmem:[%s5031_s28 + $0x360] sm:$0xff] }
  0x3a   : > { %v826_v1 = vadd.f32 %v658_v61, %v657_v60  ;;  %v680_v37 = vld [vmem:[%s5031_s28 + $0x348] sm:$0xff]  ;;  %v687_v48 = vld [vmem:[%s5031_s28 + $0x380] sm:$0xff]  ;;  %v698_v60 = vld [vmem:[%s5031_s28 + $0x3d8] sm:$0xff] }
  0x3b   : > { %v684_v43 = vld [vmem:[%s5031_s28 + $0x368] sm:$0xff]  ;;  %v691_v54 = vld [vmem:[%s5031_s28 + $0x3a0] sm:$0xff] }
  0x3c   : > { %767 = vadd.xlane.f32.xlu1 %v766_v3  ;;  %v661_v3 = vld [vmem:[%s5031_s28 + $0x2b0] sm:$0xff]  ;;  %v688_v49 = vld [vmem:[%s5031_s28 + $0x388] sm:$0xff]  ;;  %v695_v61 = vld [vmem:[%s5031_s28 + $0x3c0] sm:$0xff] }
  0x3d   : > { %764 = vadd.xlane.f32.xlu0 %v763_v4  ;;  %v662_v4 = vld [vmem:[%s5031_s28 + $0x2b8] sm:$0xff]  ;;  %v692_v55 = vld [vmem:[%s5031_s28 + $0x3a8] sm:$0xff] }
  0x3e   : > { %v832_v7 = vadd.f32 %v662_v4, %v661_v3  ;;  %v696_v62 = vld [vmem:[%s5031_s28 + $0x3c8] sm:$0xff]  ;;  %v702_v3 = vld [vmem:[%s5031_s28 + $0x3f8] sm:$0xff]  ;;  %v699_v4 = vld [vmem:[%s5031_s28 + $0x3e0] sm:$0xff] }
  0x3f   : > { %v700_v5 = vld [vmem:[%s5031_s28 + $0x3e8] sm:$0xff] }
  0x40   : > { %773 = vadd.xlane.f32.xlu1 %v772_v9  ;;  %v665_v9 = vld [vmem:[%s5031_s28 + $0x2d0] sm:$0xff] }
  0x41   : > { %770 = vadd.xlane.f32.xlu0 %v769_v10  ;;  %v666_v10 = vld [vmem:[%s5031_s28 + $0x2d8] sm:$0xff] }
  0x42   : > { %v838_v13 = vadd.f32 %v666_v10, %v665_v9  ;;  %v511_v9 = vld [vmem:[#allocation2] sm:$0xff] }
  0x44   : > { %779 = vadd.xlane.f32.xlu1 %v778_v15  ;;  %v669_v15 = vld [vmem:[%s5031_s28 + $0x2f0] sm:$0xff] }
  0x45   : > { %776 = vadd.xlane.f32.xlu0 %v775_v16  ;;  %v670_v16 = vld [vmem:[%s5031_s28 + $0x2f8] sm:$0xff] }
  0x46   : > { %v844_v19 = vadd.f32 %v670_v16, %v669_v15  ;;  %v512_v15 = vld [vmem:[#allocation2 + $0x8] sm:$0xff] }
  0x48   : > { %785 = vadd.xlane.f32.xlu1 %v784_v21  ;;  %v673_v21 = vld [vmem:[%s5031_s28 + $0x310] sm:$0xff] }
  0x49   : > { %782 = vadd.xlane.f32.xlu0 %v781_v22  ;;  %v674_v22 = vld [vmem:[%s5031_s28 + $0x318] sm:$0xff] }
  0x4a   : > { %v850_v25 = vadd.f32 %v674_v22, %v673_v21  ;;  %v515_v21 = vld [vmem:[#allocation2 + $0x20] sm:$0xff] }
  0x4c   : > { %791 = vadd.xlane.f32.xlu1 %v790_v27  ;;  %v677_v27 = vld [vmem:[%s5031_s28 + $0x330] sm:$0xff] }
  0x4d   : > { %788 = vadd.xlane.f32.xlu0 %v787_v28  ;;  %v678_v28 = vld [vmem:[%s5031_s28 + $0x338] sm:$0xff] }
  0x4e   : > { %v856_v32 = vadd.f32 %v678_v28, %v677_v27  ;;  %v517_v27 = vld [vmem:[#allocation2 + $0x30] sm:$0xff] }
  0x50   : > { %797 = vadd.xlane.f32.xlu1 %v796_v33  ;;  %v853_v33 = vadd.f32 %v676_v31, %v675_v30 }
  0x51   : > { %794 = vadd.xlane.f32.xlu0 %v793_v34  ;;  %v681_v34 = vld [vmem:[%s5031_s28 + $0x350] sm:$0xff] }
  0x52   : > { %v862_v38 = vadd.f32 %v682_v35, %v681_v34  ;;  %v519_v34 = vld [vmem:[#allocation2 + $0x40] sm:$0xff] }
  0x54   : > { %803 = vadd.xlane.f32.xlu1 %v802_v39  ;;  %v859_v39 = vadd.f32 %v680_v37, %v679_v36 }
  0x55   : > { %800 = vadd.xlane.f32.xlu0 %v799_v40  ;;  %v685_v40 = vld [vmem:[%s5031_s28 + $0x370] sm:$0xff] }
  0x56   : > { %v868_v44 = vadd.f32 %v686_v41, %v685_v40 }
  0x58   : > { %809 = vadd.xlane.f32.xlu1 %v808_v45  ;;  %v865_v45 = vadd.f32 %v684_v43, %v683_v42 }
  0x59   : > { %806 = vadd.xlane.f32.xlu0 %v805_v46  ;;  %v689_v46 = vld [vmem:[%s5031_s28 + $0x390] sm:$0xff] }
  0x5a   : > { %v874_v50 = vadd.f32 %v690_v47, %v689_v46  ;;  %v522_v47 = vld [vmem:[#allocation2 + $0x58] sm:$0xff] }
  0x5c   : > { %815 = vadd.xlane.f32.xlu1 %v814_v51  ;;  %v871_v51 = vadd.f32 %v688_v49, %v687_v48  ;;  %v521_v49 = vld [vmem:[#allocation2 + $0x50] sm:$0xff] }
  0x5d   : > { %812 = vadd.xlane.f32.xlu0 %v811_v52  ;;  %v693_v52 = vld [vmem:[%s5031_s28 + $0x3b0] sm:$0xff] }
  0x5e   : > { %v880_v56 = vadd.f32 %v694_v53, %v693_v52 }
  0x60   : > { %821 = vadd.xlane.f32.xlu1 %v820_v57  ;;  %v877_v57 = vadd.f32 %v692_v55, %v691_v54 }
  0x61   : > { %818 = vadd.xlane.f32.xlu0 %v817_v58  ;;  %v697_v58 = vld [vmem:[%s5031_s28 + $0x3d0] sm:$0xff] }
  0x62   : > { %v886_v63 = vadd.f32 %v698_v60, %v697_v58  ;;  %v524_v58 = vld [vmem:[#allocation2 + $0x68] sm:$0xff] }
  0x64   : > { %827 = vadd.xlane.f32.xlu1 %v826_v1  ;;  %v883_v1 = vadd.f32 %v696_v62, %v695_v61  ;;  %v523_v61 = vld [vmem:[#allocation2 + $0x60] sm:$0xff] }
  0x65   : > { %824 = vadd.xlane.f32.xlu0 %v823_v2  ;;  %v701_v2 = vld [vmem:[%s5031_s28 + $0x3f0] sm:$0xff] }
  0x66   : > { %v892_v6 = vadd.f32 %v702_v3, %v701_v2 }
  0x68   : > { %833 = vadd.xlane.f32.xlu1 %v832_v7  ;;  %v889_v7 = vadd.f32 %v700_v5, %v699_v4 }
  0x69   : > { %830 = vadd.xlane.f32.xlu0 %v829_v8  ;;  %v513_v8 = vld [vmem:[#allocation2 + $0x10] sm:$0xff] }
  0x6c   : > { %839 = vadd.xlane.f32.xlu1 %v838_v13 }
  0x6d   : > { %836 = vadd.xlane.f32.xlu0 %v835_v14  ;;  %v514_v14 = vld [vmem:[#allocation2 + $0x18] sm:$0xff] }
  0x70   : > { %845 = vadd.xlane.f32.xlu1 %v844_v19 }
  0x71   : > { %842 = vadd.xlane.f32.xlu0 %v841_v20  ;;  %v516_v20 = vld [vmem:[#allocation2 + $0x28] sm:$0xff] }
  0x74   : > { %851 = vadd.xlane.f32.xlu1 %v850_v25 }
  0x75   : > { %848 = vadd.xlane.f32.xlu0 %v847_v26  ;;  %v518_v26 = vld [vmem:[#allocation2 + $0x38] sm:$0xff] }
  0x78   : > { %857 = vadd.xlane.f32.xlu1 %v856_v32 }
  0x79   : > { %854 = vadd.xlane.f32.xlu0 %v853_v33  ;;  %v520_v33 = vld [vmem:[#allocation2 + $0x48] sm:$0xff] }
  0x7c   : > { %863 = vadd.xlane.f32.xlu1 %v862_v38 }
  0x7d   : > { %860 = vadd.xlane.f32.xlu0 %v859_v39 }
  0x80   : > { %869 = vadd.xlane.f32.xlu1 %v868_v44 }
  0x81   : > { %866 = vadd.xlane.f32.xlu0 %v865_v45 }
  0x84   : > { %875 = vadd.xlane.f32.xlu1 %v874_v50 }
  0x85   : > { %872 = vadd.xlane.f32.xlu0 %v871_v51 }
  0x88   : > { %881 = vadd.xlane.f32.xlu1 %v880_v56 }
  0x89   : > { %878 = vadd.xlane.f32.xlu0 %v877_v57 }
  0x8c   : > { %887 = vadd.xlane.f32.xlu1 %v886_v63 }
  0x8d   : > { %884 = vadd.xlane.f32.xlu0 %v883_v1 }
  0x90   : > { %893 = vadd.xlane.f32.xlu1 %v892_v6 }
  0x91   : > { %890 = vadd.xlane.f32.xlu0 %v889_v7  ;;  %v526_v7 = vld [vmem:[#allocation2 + $0x78] sm:$0xff] }
  0xa1   : > { %v711_v10 = vpop.xlane.xlu1 %710 }
  0xa2   : > { %v897_v11 = vadd.f32 %v711_v10, %v513_v8  ;;  %v705_v12 = vpop.xlane.xlu0 %704 }
  0xa3   : > { %v895_v13 = vadd.f32 %v705_v12, %v511_v9  ;;  %v525_v9 = vld [vmem:[#allocation2 + $0x70] sm:$0xff] }
  0xa4   : > { %962 = vst.msk [vmem:[#allocation2 + $0x10] sm:$0xff] %vm446_vm0, %v897_v11 }
  0xa5   : > { %960 = vst.msk [vmem:[#allocation2] sm:$0xff] %vm446_vm0, %v895_v13  ;;  %v714_v16 = vpop.xlane.xlu1 %713 }
  0xa6   : > { %v898_v17 = vadd.f32 %v714_v16, %v514_v14  ;;  %v708_v18 = vpop.xlane.xlu0 %707 }
  0xa7   : > { %v896_v19 = vadd.f32 %v708_v18, %v512_v15  ;;  %v528_v18 = vld [vmem:[#allocation2 + $0x88] sm:$0xff] }
  0xa8   : > { %963 = vst.msk [vmem:[#allocation2 + $0x18] sm:$0xff] %vm446_vm0, %v898_v17 }
  0xa9   : > { %961 = vst.msk [vmem:[#allocation2 + $0x8] sm:$0xff] %vm446_vm0, %v896_v19  ;;  %v720_v22 = vpop.xlane.xlu1 %719 }
  0xaa   : > { %v900_v23 = vadd.f32 %v720_v22, %v516_v20  ;;  %v717_v24 = vpop.xlane.xlu0 %716  ;;  %v527_v20 = vld [vmem:[#allocation2 + $0x80] sm:$0xff] }
  0xab   : > { %v899_v25 = vadd.f32 %v717_v24, %v515_v21  ;;  %v1029_v36 = vld [vmem:[#allocation2 + $0x10] sm:$0xff] }
  0xac   : > { %965 = vst.msk [vmem:[#allocation2 + $0x28] sm:$0xff] %vm446_vm0, %v900_v23  ;;  %v1027_v31 = vld [vmem:[#allocation2] sm:$0xff]  ;;  %v1093_v45 = vmul.f32 0.00390625, %v1029_v36 }
  0xad   : > { %964 = vst.msk [vmem:[#allocation2 + $0x20] sm:$0xff] %vm446_vm0, %v899_v25  ;;  %v726_v28 = vpop.xlane.xlu1 %725  ;;  %v1091_v38 = vmul.f32 0.00390625, %v1027_v31  ;;  %v529_v31 = vld [vmem:[#allocation2 + $0x90] sm:$0xff] }
  0xae   : > { %v902_v29 = vadd.f32 %v726_v28, %v518_v26  ;;  %v723_v30 = vpop.xlane.xlu0 %722 }
  0xaf   : > { %v901_v32 = vadd.f32 %v723_v30, %v517_v27  ;;  %v1030_v37 = vld [vmem:[#allocation2 + $0x18] sm:$0xff] }
  0xb0   : > { %967 = vst.msk [vmem:[#allocation2 + $0x38] sm:$0xff] %vm446_vm0, %v902_v29  ;;  %v1028_v35 = vld [vmem:[#allocation2 + $0x8] sm:$0xff]  ;;  %v1094_v46 = vmul.f32 0.00390625, %v1030_v37  ;;  %v530_v29 = vld [vmem:[#allocation2 + $0x98] sm:$0xff] }
  0xb1   : > { %966 = vst.msk [vmem:[#allocation2 + $0x30] sm:$0xff] %vm446_vm0, %v901_v32  ;;  %v1092_v39 = vmul.f32 0.00390625, %v1028_v35  ;;  %v732_v40 = vpop.xlane.xlu1 %731 }
  0xb2   : > { %v904_v41 = vadd.f32 %v732_v40, %v520_v33  ;;  %v729_v42 = vpop.xlane.xlu0 %728  ;;  %v4386_v56 = vpack.c.bf16 %v1094_v46, %v1093_v45  ;;  %v532_v40 = vld [vmem:[#allocation2 + $0xa8] sm:$0xff] }
  0xb3   : > { %v4383_v43 = vpack.c.bf16 %v1092_v39, %v1091_v38  ;;  %v903_v44 = vadd.f32 %v729_v42, %v519_v34  ;;  %v1032_v48 = vld [vmem:[#allocation2 + $0x28] sm:$0xff]  ;;  %v531_v42 = vld [vmem:[#allocation2 + $0xa0] sm:$0xff] }
  0xb4   : > { %969 = vst.msk [vmem:[#allocation2 + $0x48] sm:$0xff] %vm446_vm0, %v904_v41  ;;  %v1031_v50 = vld [vmem:[#allocation2 + $0x20] sm:$0xff]  ;;  %v1096_v53 = vmul.f32 0.00390625, %v1032_v48 }
  0xb5   : > { %4384 = vmatpush1.bf16.msra.mxu0 %v4383_v43  ;;  %968 = vst.msk [vmem:[#allocation2 + $0x40] sm:$0xff] %vm446_vm0, %v903_v44  ;;  %v738_v51 = vpop.xlane.xlu1 %737  ;;  %v1095_v52 = vmul.f32 0.00390625, %v1031_v50 }
  0xb6   : > { %4385 = vmatprep.subr.bf16.mxu0 %v4805_v59  ;;  %v906_v54 = vadd.f32 %v738_v51, %v522_v47  ;;  %v735_v55 = vpop.xlane.xlu0 %734  ;;  %v534_v51 = vld [vmem:[#allocation2 + $0xb8] sm:$0xff] }
  0xb7   : > { %v905_v57 = vadd.f32 %v735_v55, %v521_v49  ;;  %v1034_v60 = vld [vmem:[#allocation2 + $0x38] sm:$0xff]  ;;  %v4389_v63 = vpack.c.bf16 %v1096_v53, %v1095_v52  ;;  %v533_v53 = vld [vmem:[#allocation2 + $0xb0] sm:$0xff] }
  0xb8   : > { %971 = vst.msk [vmem:[#allocation2 + $0x58] sm:$0xff] %vm446_vm0, %v906_v54  ;;  %v1033_v62 = vld [vmem:[#allocation2 + $0x30] sm:$0xff]  ;;  %v1098_v3 = vmul.f32 0.00390625, %v1034_v60 }
  0xb9   : > { %4387 = vmatpush1.bf16.msra.mxu0 %v4386_v56  ;;  %970 = vst.msk [vmem:[#allocation2 + $0x50] sm:$0xff] %vm446_vm0, %v905_v57  ;;  %v744_v1 = vpop.xlane.xlu1 %743  ;;  %v1097_v2 = vmul.f32 0.00390625, %v1033_v62 }
  0xba   : > { %4388 = vmatprep.subr.bf16.mxu0 %v4805_v59  ;;  %v908_v4 = vadd.f32 %v744_v1, %v524_v58  ;;  %v741_v5 = vpop.xlane.xlu0 %740 }
  0xbb   : > { %v907_v6 = vadd.f32 %v741_v5, %v523_v61  ;;  %v1036_v8 = vld [vmem:[#allocation2 + $0x48] sm:$0xff]  ;;  %v4392_v11 = vpack.c.bf16 %v1098_v3, %v1097_v2  ;;  %v535_v2 = vld [vmem:[#allocation2 + $0xc0] sm:$0xff] }
  0xbc   : > { %973 = vst.msk [vmem:[#allocation2 + $0x68] sm:$0xff] %vm446_vm0, %v908_v4  ;;  %v1035_v10 = vld [vmem:[#allocation2 + $0x40] sm:$0xff]  ;;  %v1100_v14 = vmul.f32 0.00390625, %v1036_v8 }
  0xbd   : > { %4390 = vmatpush1.bf16.msra.mxu0 %v4389_v63  ;;  %972 = vst.msk [vmem:[#allocation2 + $0x60] sm:$0xff] %vm446_vm0, %v907_v6  ;;  %v750_v12 = vpop.xlane.xlu1 %749  ;;  %v1099_v13 = vmul.f32 0.00390625, %v1035_v10  ;;  %v536_v63 = vld [vmem:[#allocation2 + $0xc8] sm:$0xff] }
  0xbe   : > { %4391 = vmatprep.subr.bf16.mxu0 %v4805_v59  ;;  %v910_v15 = vadd.f32 %v750_v12, %v526_v7  ;;  %v747_v16 = vpop.xlane.xlu0 %746 }
  0xbf   : > { %v909_v17 = vadd.f32 %v747_v16, %v525_v9  ;;  %v1038_v19 = vld [vmem:[#allocation2 + $0x58] sm:$0xff]  ;;  %v4395_v22 = vpack.c.bf16 %v1100_v14, %v1099_v13  ;;  %v537_v13 = vld [vmem:[#allocation2 + $0xd0] sm:$0xff] }
  0xc0   : > { %975 = vst.msk [vmem:[#allocation2 + $0x78] sm:$0xff] %vm446_vm0, %v910_v15  ;;  %v1037_v21 = vld [vmem:[#allocation2 + $0x50] sm:$0xff]  ;;  %v1102_v25 = vmul.f32 0.00390625, %v1038_v19 }
  0xc1   : > { %4393 = vmatpush1.bf16.msra.mxu0 %v4392_v11  ;;  %974 = vst.msk [vmem:[#allocation2 + $0x70] sm:$0xff] %vm446_vm0, %v909_v17  ;;  %v756_v23 = vpop.xlane.xlu1 %755  ;;  %v1101_v24 = vmul.f32 0.00390625, %v1037_v21  ;;  %v538_v11 = vld [vmem:[#allocation2 + $0xd8] sm:$0xff] }
  0xc2   : > { %4394 = vmatprep.subr.bf16.mxu0 %v4805_v59  ;;  %v912_v26 = vadd.f32 %v756_v23, %v528_v18  ;;  %v753_v27 = vpop.xlane.xlu0 %752 }
  0xc3   : > { %v911_v28 = vadd.f32 %v753_v27, %v527_v20  ;;  %v1040_v30 = vld [vmem:[#allocation2 + $0x68] sm:$0xff]  ;;  %v4398_v33 = vpack.c.bf16 %v1102_v25, %v1101_v24  ;;  %v539_v24 = vld [vmem:[#allocation2 + $0xe0] sm:$0xff] }
  0xc4   : > { %977 = vst.msk [vmem:[#allocation2 + $0x88] sm:$0xff] %vm446_vm0, %v912_v26  ;;  %v1039_v32 = vld [vmem:[#allocation2 + $0x60] sm:$0xff]  ;;  %v1104_v36 = vmul.f32 0.00390625, %v1040_v30 }
  0xc5   : > { %4396 = vmatpush1.bf16.msra.mxu0 %v4395_v22  ;;  %976 = vst.msk [vmem:[#allocation2 + $0x80] sm:$0xff] %vm446_vm0, %v911_v28  ;;  %v762_v34 = vpop.xlane.xlu1 %761  ;;  %v1103_v35 = vmul.f32 0.00390625, %v1039_v32  ;;  %v540_v22 = vld [vmem:[#allocation2 + $0xe8] sm:$0xff] }
  0xc6   : > { %4397 = vmatprep.subr.bf16.mxu0 %v4805_v59  ;;  %v914_v37 = vadd.f32 %v762_v34, %v530_v29  ;;  %v759_v38 = vpop.xlane.xlu0 %758 }
  0xc7   : > { %v913_v39 = vadd.f32 %v759_v38, %v529_v31  ;;  %v1042_v41 = vld [vmem:[#allocation2 + $0x78] sm:$0xff]  ;;  %v4401_v44 = vpack.c.bf16 %v1104_v36, %v1103_v35  ;;  %v541_v35 = vld [vmem:[#allocation2 + $0xf0] sm:$0xff] }
  0xc8   : > { %979 = vst.msk [vmem:[#allocation2 + $0x98] sm:$0xff] %vm446_vm0, %v914_v37  ;;  %v1041_v43 = vld [vmem:[#allocation2 + $0x70] sm:$0xff]  ;;  %v1106_v47 = vmul.f32 0.00390625, %v1042_v41 }
  0xc9   : > { %4399 = vmatpush1.bf16.msra.mxu0 %v4398_v33  ;;  %978 = vst.msk [vmem:[#allocation2 + $0x90] sm:$0xff] %vm446_vm0, %v913_v39  ;;  %v768_v45 = vpop.xlane.xlu1 %767  ;;  %v1105_v46 = vmul.f32 0.00390625, %v1041_v43  ;;  %v542_v33 = vld [vmem:[#allocation2 + $0xf8] sm:$0xff] }
  0xca   : > { %4400 = vmatprep.subr.bf16.mxu0 %v4805_v59  ;;  %v916_v48 = vadd.f32 %v768_v45, %v532_v40  ;;  %v765_v49 = vpop.xlane.xlu0 %764 }
  0xcb   : > { %v915_v50 = vadd.f32 %v765_v49, %v531_v42  ;;  %v1044_v52 = vld [vmem:[#allocation2 + $0x88] sm:$0xff]  ;;  %v4404_v55 = vpack.c.bf16 %v1106_v47, %v1105_v46  ;;  %v543_v46 = vld [vmem:[#allocation2 + $0x100] sm:$0xff] }
  0xcc   : > { %981 = vst.msk [vmem:[#allocation2 + $0xa8] sm:$0xff] %vm446_vm0, %v916_v48  ;;  %v1043_v54 = vld [vmem:[#allocation2 + $0x80] sm:$0xff]  ;;  %v1108_v58 = vmul.f32 0.00390625, %v1044_v52 }
  0xcd   : > { %4402 = vmatpush1.bf16.msra.mxu0 %v4401_v44  ;;  %980 = vst.msk [vmem:[#allocation2 + $0xa0] sm:$0xff] %vm446_vm0, %v915_v50  ;;  %v774_v56 = vpop.xlane.xlu1 %773  ;;  %v1107_v57 = vmul.f32 0.00390625, %v1043_v54  ;;  %v544_v44 = vld [vmem:[#allocation2 + $0x108] sm:$0xff] }
  0xce   : > { %4403 = vmatprep.subr.bf16.mxu0 %v4805_v59  ;;  %v918_v60 = vadd.f32 %v774_v56, %v534_v51  ;;  %v771_v61 = vpop.xlane.xlu0 %770  ;;  %v546_v56 = vld [vmem:[#allocation2 + $0x118] sm:$0xff] }
  0xcf   : > { %v917_v62 = vadd.f32 %v771_v61, %v533_v53  ;;  %v1046_v1 = vld [vmem:[#allocation2 + $0x98] sm:$0xff]  ;;  %v4407_v4 = vpack.c.bf16 %v1108_v58, %v1107_v57  ;;  %v545_v58 = vld [vmem:[#allocation2 + $0x110] sm:$0xff] }
  0xd0   : > { %983 = vst.msk [vmem:[#allocation2 + $0xb8] sm:$0xff] %vm446_vm0, %v918_v60  ;;  %v1045_v3 = vld [vmem:[#allocation2 + $0x90] sm:$0xff]  ;;  %v1110_v7 = vmul.f32 0.00390625, %v1046_v1 }
  0xd1   : > { %4405 = vmatpush1.bf16.msra.mxu0 %v4404_v55  ;;  %982 = vst.msk [vmem:[#allocation2 + $0xb0] sm:$0xff] %vm446_vm0, %v917_v62  ;;  %v780_v5 = vpop.xlane.xlu1 %779  ;;  %v1109_v6 = vmul.f32 0.00390625, %v1045_v3 }
  0xd2   : > { %4406 = vmatprep.subr.bf16.mxu0 %v4805_v59  ;;  %v920_v8 = vadd.f32 %v780_v5, %v536_v63  ;;  %v777_v9 = vpop.xlane.xlu0 %776  ;;  %v548_v5 = vld [vmem:[#allocation2 + $0x128] sm:$0xff] }
  0xd3   : > { %v919_v10 = vadd.f32 %v777_v9, %v535_v2  ;;  %v1048_v12 = vld [vmem:[#allocation2 + $0xa8] sm:$0xff]  ;;  %v4410_v15 = vpack.c.bf16 %v1110_v7, %v1109_v6  ;;  %v547_v7 = vld [vmem:[#allocation2 + $0x120] sm:$0xff] }
  0xd4   : > { %985 = vst.msk [vmem:[#allocation2 + $0xc8] sm:$0xff] %vm446_vm0, %v920_v8  ;;  %v1047_v14 = vld [vmem:[#allocation2 + $0xa0] sm:$0xff]  ;;  %v1112_v18 = vmul.f32 0.00390625, %v1048_v12 }
  0xd5   : > { %4408 = vmatpush1.bf16.msra.mxu0 %v4407_v4  ;;  %984 = vst.msk [vmem:[#allocation2 + $0xc0] sm:$0xff] %vm446_vm0, %v919_v10  ;;  %v786_v16 = vpop.xlane.xlu1 %785  ;;  %v1111_v17 = vmul.f32 0.00390625, %v1047_v14 }
  0xd6   : > { %4409 = vmatprep.subr.bf16.mxu0 %v4805_v59  ;;  %v922_v19 = vadd.f32 %v786_v16, %v538_v11  ;;  %v783_v20 = vpop.xlane.xlu0 %782  ;;  %v550_v16 = vld [vmem:[#allocation2 + $0x138] sm:$0xff] }
  0xd7   : > { %v921_v21 = vadd.f32 %v783_v20, %v537_v13  ;;  %v1050_v23 = vld [vmem:[#allocation2 + $0xb8] sm:$0xff]  ;;  %v4413_v26 = vpack.c.bf16 %v1112_v18, %v1111_v17  ;;  %v549_v18 = vld [vmem:[#allocation2 + $0x130] sm:$0xff] }
  0xd8   : > { %987 = vst.msk [vmem:[#allocation2 + $0xd8] sm:$0xff] %vm446_vm0, %v922_v19  ;;  %v1049_v25 = vld [vmem:[#allocation2 + $0xb0] sm:$0xff]  ;;  %v1114_v29 = vmul.f32 0.00390625, %v1050_v23 }
  0xd9   : > { %4411 = vmatpush1.bf16.msra.mxu0 %v4410_v15  ;;  %986 = vst.msk [vmem:[#allocation2 + $0xd0] sm:$0xff] %vm446_vm0, %v921_v21  ;;  %v792_v27 = vpop.xlane.xlu1 %791  ;;  %v1113_v28 = vmul.f32 0.00390625, %v1049_v25 }
  0xda   : > { %4412 = vmatprep.subr.bf16.mxu0 %v4805_v59  ;;  %v924_v30 = vadd.f32 %v792_v27, %v540_v22  ;;  %v789_v31 = vpop.xlane.xlu0 %788  ;;  %v552_v27 = vld [vmem:[#allocation2 + $0x148] sm:$0xff] }
  0xdb   : > { %v923_v32 = vadd.f32 %v789_v31, %v539_v24  ;;  %v1052_v34 = vld [vmem:[#allocation2 + $0xc8] sm:$0xff]  ;;  %v4416_v37 = vpack.c.bf16 %v1114_v29, %v1113_v28  ;;  %v551_v29 = vld [vmem:[#allocation2 + $0x140] sm:$0xff] }
  0xdc   : > { %989 = vst.msk [vmem:[#allocation2 + $0xe8] sm:$0xff] %vm446_vm0, %v924_v30  ;;  %v1051_v36 = vld [vmem:[#allocation2 + $0xc0] sm:$0xff]  ;;  %v1116_v40 = vmul.f32 0.00390625, %v1052_v34 }
  0xdd   : > { %4414 = vmatpush1.bf16.msra.mxu0 %v4413_v26  ;;  %988 = vst.msk [vmem:[#allocation2 + $0xe0] sm:$0xff] %vm446_vm0, %v923_v32  ;;  %v798_v38 = vpop.xlane.xlu1 %797  ;;  %v1115_v39 = vmul.f32 0.00390625, %v1051_v36  ;;  %v1155_v30 = vld [vmem:[%s6742_s1] sm:$0xff] }
  0xde   : > { %4415 = vmatprep.subr.bf16.mxu0 %v4805_v59  ;;  %v926_v41 = vadd.f32 %v798_v38, %v542_v33  ;;  %v795_v42 = vpop.xlane.xlu0 %794 }
  0xdf   : > { %v925_v43 = vadd.f32 %v795_v42, %v541_v35  ;;  %v1054_v45 = vld [vmem:[#allocation2 + $0xd8] sm:$0xff]  ;;  %v4419_v48 = vpack.c.bf16 %v1116_v40, %v1115_v39  ;;  %v1160_v35 = vld [vmem:[%s6742_s1 + $0x28] sm:$0xff]  ;;  %v553_v42 = vld [vmem:[#allocation2 + $0x150] sm:$0xff] }
  0xe0   : > { %991 = vst.msk [vmem:[#allocation2 + $0xf8] sm:$0xff] %vm446_vm0, %v926_v41  ;;  %v1053_v47 = vld [vmem:[#allocation2 + $0xd0] sm:$0xff]  ;;  %v1118_v51 = vmul.f32 0.00390625, %v1054_v45  ;;  %v554_v40 = vld [vmem:[#allocation2 + $0x158] sm:$0xff] }
  0xe1   : > { %4417 = vmatpush1.bf16.msra.mxu0 %v4416_v37  ;;  %990 = vst.msk [vmem:[#allocation2 + $0xf0] sm:$0xff] %vm446_vm0, %v925_v43  ;;  %v804_v49 = vpop.xlane.xlu1 %803  ;;  %v1117_v50 = vmul.f32 0.00390625, %v1053_v47  ;;  %v1159_v43 = vld [vmem:[%s6742_s1 + $0x20] sm:$0xff] }
  0xe2   : > { %4418 = vmatprep.subr.bf16.mxu0 %v4805_v59  ;;  %v928_v52 = vadd.f32 %v804_v49, %v544_v44  ;;  %v801_v53 = vpop.xlane.xlu0 %800 }
  0xe3   : > { %v927_v54 = vadd.f32 %v801_v53, %v543_v46  ;;  %v1056_v55 = vld [vmem:[#allocation2 + $0xe8] sm:$0xff]  ;;  %v4422_v60 = vpack.c.bf16 %v1118_v51, %v1117_v50 }
  0xe4   : > { %993 = vst.msk [vmem:[#allocation2 + $0x108] sm:$0xff] %vm446_vm0, %v928_v52  ;;  %v1055_v57 = vld [vmem:[#allocation2 + $0xe0] sm:$0xff]  ;;  %v1120_v62 = vmul.f32 0.00390625, %v1056_v55  ;;  %v556_v53 = vld [vmem:[#allocation2 + $0x168] sm:$0xff] }
  0xe5   : > { %4420 = vmatpush1.bf16.msra.mxu0 %v4419_v48  ;;  %992 = vst.msk [vmem:[#allocation2 + $0x100] sm:$0xff] %vm446_vm0, %v927_v54  ;;  %v1119_v61 = vmul.f32 0.00390625, %v1055_v57  ;;  %v810_v63 = vpop.xlane.xlu1 %809  ;;  %v1164_v48 = vld [vmem:[%s6742_s1 + $0x48] sm:$0xff]  ;;  %v555_v55 = vld [vmem:[#allocation2 + $0x160] sm:$0xff] }
  0xe6   : > { %4421 = vmatprep.subr.bf16.mxu0 %v4805_v59  ;;  %v930_v1 = vadd.f32 %v810_v63, %v546_v56  ;;  %v807_v2 = vpop.xlane.xlu0 %806  ;;  %v1163_v56 = vld [vmem:[%s6742_s1 + $0x40] sm:$0xff] }
  0xe7   : > { %v929_v3 = vadd.f32 %v807_v2, %v545_v58  ;;  %v1058_v4 = vld [vmem:[#allocation2 + $0xf8] sm:$0xff]  ;;  %v4425_v8 = vpack.c.bf16 %v1120_v62, %v1119_v61  ;;  %v1168_v62 = vld [vmem:[%s6742_s1 + $0x68] sm:$0xff] }
  0xe8   : > { %995 = vst.msk [vmem:[#allocation2 + $0x118] sm:$0xff] %vm446_vm0, %v930_v1  ;;  %v1057_v6 = vld [vmem:[#allocation2 + $0xf0] sm:$0xff]  ;;  %v1122_v10 = vmul.f32 0.00390625, %v1058_v4  ;;  %v558_v4 = vld [vmem:[#allocation2 + $0x178] sm:$0xff] }
  0xe9   : > { %4423 = vmatpush1.bf16.msra.mxu0 %v4422_v60  ;;  %994 = vst.msk [vmem:[#allocation2 + $0x110] sm:$0xff] %vm446_vm0, %v929_v3  ;;  %v1121_v9 = vmul.f32 0.00390625, %v1057_v6  ;;  %v816_v11 = vpop.xlane.xlu1 %815  ;;  %v557_v6 = vld [vmem:[#allocation2 + $0x170] sm:$0xff] }
  0xea   : > { %4424 = vmatprep.subr.bf16.mxu0 %v4805_v59  ;;  %v932_v12 = vadd.f32 %v816_v11, %v548_v5  ;;  %v813_v13 = vpop.xlane.xlu0 %812 }
  0xeb   : > { %v1060_v14 = vld [vmem:[#allocation2 + $0x108] sm:$0xff]  ;;  %v931_v15 = vadd.f32 %v813_v13, %v547_v7  ;;  %v4428_v19 = vpack.c.bf16 %v1122_v10, %v1121_v9  ;;  %v1167_v7 = vld [vmem:[%s6742_s1 + $0x60] sm:$0xff] }
  0xec   : > { %v1059_v17 = vld [vmem:[#allocation2 + $0x100] sm:$0xff]  ;;  %997 = vst.msk [vmem:[#allocation2 + $0x128] sm:$0xff] %vm446_vm0, %v932_v12  ;;  %v1124_v21 = vmul.f32 0.00390625, %v1060_v14  ;;  %v1172_v12 = vld [vmem:[%s6742_s1 + $0x88] sm:$0xff] }
  0xed   : > { %4426 = vmatpush1.bf16.msra.mxu0 %v4425_v8  ;;  %v1123_v20 = vmul.f32 0.00390625, %v1059_v17  ;;  %996 = vst.msk [vmem:[#allocation2 + $0x120] sm:$0xff] %vm446_vm0, %v931_v15  ;;  %v822_v22 = vpop.xlane.xlu1 %821  ;;  %v560_v17 = vld [vmem:[#allocation2 + $0x188] sm:$0xff] }
  0xee   : > { %4427 = vmatprep.subr.bf16.mxu0 %v4805_v59  ;;  %v934_v23 = vadd.f32 %v822_v22, %v550_v16  ;;  %v819_v24 = vpop.xlane.xlu0 %818 }
  0xef   : > { %v1062_v25 = vld [vmem:[#allocation2 + $0x118] sm:$0xff]  ;;  %v933_v26 = vadd.f32 %v819_v24, %v549_v18  ;;  %v4431_v31 = vpack.c.bf16 %v1124_v21, %v1123_v20  ;;  %v1171_v20 = vld [vmem:[%s6742_s1 + $0x80] sm:$0xff] }
  0xf0   : > { %v1061_v28 = vld [vmem:[#allocation2 + $0x110] sm:$0xff]  ;;  %999 = vst.msk [vmem:[#allocation2 + $0x138] sm:$0xff] %vm446_vm0, %v934_v23  ;;  %v1126_v33 = vmul.f32 0.00390625, %v1062_v25  ;;  %v1176_v25 = vld [vmem:[%s6742_s1 + $0xa8] sm:$0xff] }
  0xf1   : > { %4429 = vmatpush1.bf16.msra.mxu0 %v4428_v19  ;;  %v1125_v32 = vmul.f32 0.00390625, %v1061_v28  ;;  %998 = vst.msk [vmem:[#allocation2 + $0x130] sm:$0xff] %vm446_vm0, %v933_v26  ;;  %v828_v34 = vpop.xlane.xlu1 %827  ;;  %v559_v19 = vld [vmem:[#allocation2 + $0x180] sm:$0xff] }
  0xf2   : > { %4430 = vmatprep.subr.bf16.mxu0 %v4805_v59  ;;  %v936_v36 = vadd.f32 %v828_v34, %v552_v27  ;;  %v825_v37 = vpop.xlane.xlu0 %824 }
  0xf3   : > { %v1064_v38 = vld [vmem:[#allocation2 + $0x128] sm:$0xff]  ;;  %v935_v39 = vadd.f32 %v825_v37, %v551_v29  ;;  %v4434_v44 = vpack.c.bf16 %v1126_v33, %v1125_v32  ;;  %v561_v32 = vld [vmem:[#allocation2 + $0x190] sm:$0xff]  ;;  %v1175_v33 = vld [vmem:[%s6742_s1 + $0xa0] sm:$0xff] }
  0xf4   : > { %1380 = vmatmul.mubr.f32.vlgmr.msra.gmra.mrb[0].mxu0 %v1155_v30  ;;  %v1063_v41 = vld [vmem:[#allocation2 + $0x120] sm:$0xff]  ;;  %1001 = vst.msk [vmem:[#allocation2 + $0x148] sm:$0xff] %vm446_vm0, %v936_v36  ;;  %v1128_v46 = vmul.f32 0.00390625, %v1064_v38  ;;  %v562_v30 = vld [vmem:[#allocation2 + $0x198] sm:$0xff]  ;;  %v1180_v38 = vld [vmem:[%s6742_s1 + $0xc8] sm:$0xff] }
  0xf5   : > { %1384 = vmatprep.mubr.f32.mxu0 %v1160_v35  ;;  %4432 = vmatpush1.bf16.msra.mxu0 %v4431_v31  ;;  %v1127_v45 = vmul.f32 0.00390625, %v1063_v41  ;;  %1000 = vst.msk [vmem:[#allocation2 + $0x140] sm:$0xff] %vm446_vm0, %v935_v39  ;;  %v834_v47 = vpop.xlane.xlu1 %833 }
  0xf6   : > { %4433 = vmatprep.subr.bf16.mxu0 %v4805_v59  ;;  %v938_v49 = vadd.f32 %v834_v47, %v554_v40  ;;  %v831_v50 = vpop.xlane.xlu0 %830 }
  0xf7   : > { %v1066_v51 = vld [vmem:[#allocation2 + $0x138] sm:$0xff]  ;;  %v937_v52 = vadd.f32 %v831_v50, %v553_v42  ;;  %v4437_v57 = vpack.c.bf16 %v1128_v46, %v1127_v45  ;;  %v563_v45 = vld [vmem:[#allocation2 + $0x1a0] sm:$0xff] }
  0xf8   : > { %1385 = vmatmul.mubr.f32.gmra.mrb[2].mxu0 %v1159_v43  ;;  %v1065_v54 = vld [vmem:[#allocation2 + $0x130] sm:$0xff]  ;;  %1003 = vst.msk [vmem:[#allocation2 + $0x158] sm:$0xff] %vm446_vm0, %v938_v49  ;;  %v1130_v60 = vmul.f32 0.00390625, %v1066_v51  ;;  %v564_v43 = vld [vmem:[#allocation2 + $0x1a8] sm:$0xff]  ;;  %v1179_v46 = vld [vmem:[%s6742_s1 + $0xc0] sm:$0xff] }
  0xf9   : > { %1389 = vmatprep.mubr.f32.mxu0 %v1164_v48  ;;  %4435 = vmatpush1.bf16.msra.mxu0 %v4434_v44  ;;  %v1129_v58 = vmul.f32 0.00390625, %v1065_v54  ;;  %1002 = vst.msk [vmem:[#allocation2 + $0x150] sm:$0xff] %vm446_vm0, %v937_v52  ;;  %v840_v61 = vpop.xlane.xlu1 %839  ;;  %v1184_v51 = vld [vmem:[%s6742_s1 + $0xe8] sm:$0xff] }
  0xfa   : > { %4436 = vmatprep.subr.bf16.mxu0 %v4805_v59  ;;  %v940_v63 = vadd.f32 %v840_v61, %v556_v53  ;;  %v837_v1 = vpop.xlane.xlu0 %836 }
  0xfb   : > { %v1068_v2 = vld [vmem:[#allocation2 + $0x148] sm:$0xff]  ;;  %v939_v3 = vadd.f32 %v837_v1, %v555_v55  ;;  %v4440_v8 = vpack.c.bf16 %v1130_v60, %v1129_v58  ;;  %v565_v58 = vld [vmem:[#allocation2 + $0x1b0] sm:$0xff]  ;;  %v1183_v60 = vld [vmem:[%s6742_s1 + $0xe0] sm:$0xff] }
  0xfc   : > { %1390 = vmatmul.mubr.f32.gmra.mrb[4].mxu0 %v1163_v56  ;;  %v1067_v5 = vld [vmem:[#allocation2 + $0x140] sm:$0xff]  ;;  %1005 = vst.msk [vmem:[#allocation2 + $0x168] sm:$0xff] %vm446_vm0, %v940_v63  ;;  %v1132_v10 = vmul.f32 0.00390625, %v1068_v2  ;;  %v566_v56 = vld [vmem:[#allocation2 + $0x1b8] sm:$0xff]  ;;  %v1188_v2 = vld [vmem:[%s6742_s1 + $0x108] sm:$0xff] }
  0xfd   : > { %1394 = vmatprep.mubr.f32.mxu0 %v1168_v62  ;;  %4438 = vmatpush1.bf16.msra.mxu0 %v4437_v57  ;;  %v1131_v9 = vmul.f32 0.00390625, %v1067_v5  ;;  %1004 = vst.msk [vmem:[#allocation2 + $0x160] sm:$0xff] %vm446_vm0, %v939_v3  ;;  %v846_v11 = vpop.xlane.xlu1 %845 }
  0xfe   : > { %4439 = vmatprep.subr.bf16.mxu0 %v4805_v59  ;;  %v942_v13 = vadd.f32 %v846_v11, %v558_v4  ;;  %v843_v14 = vpop.xlane.xlu0 %842 }
  0xff   : > { %v1070_v15 = vld [vmem:[#allocation2 + $0x158] sm:$0xff]  ;;  %v941_v16 = vadd.f32 %v843_v14, %v557_v6  ;;  %v4443_v21 = vpack.c.bf16 %v1132_v10, %v1131_v9  ;;  %v567_v9 = vld [vmem:[#allocation2 + $0x1c0] sm:$0xff] }
 0x100   : > { %1395 = vmatmul.mubr.f32.gmra.mrb[6].mxu0 %v1167_v7  ;;  %v1069_v18 = vld [vmem:[#allocation2 + $0x150] sm:$0xff]  ;;  %1007 = vst.msk [vmem:[#allocation2 + $0x178] sm:$0xff] %vm446_vm0, %v942_v13  ;;  %v1134_v23 = vmul.f32 0.00390625, %v1070_v15  ;;  %v568_v7 = vld [vmem:[#allocation2 + $0x1c8] sm:$0xff]  ;;  %v1187_v10 = vld [vmem:[%s6742_s1 + $0x100] sm:$0xff] }
 0x101   : > { %1399 = vmatprep.mubr.f32.mxu0 %v1172_v12  ;;  %4441 = vmatpush1.bf16.msra.mxu0 %v4440_v8  ;;  %v1133_v22 = vmul.f32 0.00390625, %v1069_v18  ;;  %1006 = vst.msk [vmem:[#allocation2 + $0x170] sm:$0xff] %vm446_vm0, %v941_v16  ;;  %v852_v24 = vpop.xlane.xlu1 %851  ;;  %v1192_v15 = vld [vmem:[%s6742_s1 + $0x128] sm:$0xff] }
 0x102   : > { %4442 = vmatprep.subr.bf16.mxu0 %v4805_v59  ;;  %v944_v26 = vadd.f32 %v852_v24, %v560_v17  ;;  %v849_v27 = vpop.xlane.xlu0 %848 }
 0x103   : > { %v1072_v28 = vld [vmem:[#allocation2 + $0x168] sm:$0xff]  ;;  %v943_v29 = vadd.f32 %v849_v27, %v559_v19  ;;  %v4446_v34 = vpack.c.bf16 %v1134_v23, %v1133_v22  ;;  %v569_v22 = vld [vmem:[#allocation2 + $0x1d0] sm:$0xff]  ;;  %v1191_v23 = vld [vmem:[%s6742_s1 + $0x120] sm:$0xff] }
 0x104   : > { %1400 = vmatmul.mubr.f32.gmra.mrb[8].mxu0 %v1171_v20  ;;  %v1071_v31 = vld [vmem:[#allocation2 + $0x160] sm:$0xff]  ;;  %1009 = vst.msk [vmem:[#allocation2 + $0x188] sm:$0xff] %vm446_vm0, %v944_v26  ;;  %v1136_v36 = vmul.f32 0.00390625, %v1072_v28  ;;  %v570_v20 = vld [vmem:[#allocation2 + $0x1d8] sm:$0xff]  ;;  %v1196_v28 = vld [vmem:[%s6742_s1 + $0x148] sm:$0xff] }
 0x105   : > { %1404 = vmatprep.mubr.f32.mxu0 %v1176_v25  ;;  %4444 = vmatpush1.bf16.msra.mxu0 %v4443_v21  ;;  %v1135_v35 = vmul.f32 0.00390625, %v1071_v31  ;;  %1008 = vst.msk [vmem:[#allocation2 + $0x180] sm:$0xff] %vm446_vm0, %v943_v29  ;;  %v858_v37 = vpop.xlane.xlu1 %857 }
 0x106   : > { %4445 = vmatprep.subr.bf16.mxu0 %v4805_v59  ;;  %v946_v39 = vadd.f32 %v858_v37, %v562_v30  ;;  %v855_v40 = vpop.xlane.xlu0 %854 }
 0x107   : > { %v1074_v41 = vld [vmem:[#allocation2 + $0x178] sm:$0xff]  ;;  %v945_v42 = vadd.f32 %v855_v40, %v561_v32  ;;  %v4449_v47 = vpack.c.bf16 %v1136_v36, %v1135_v35  ;;  %v571_v35 = vld [vmem:[#allocation2 + $0x1e0] sm:$0xff] }
 0x108   : > { %1405 = vmatmul.mubr.f32.gmra.mrb[10].mxu0 %v1175_v33  ;;  %v1073_v44 = vld [vmem:[#allocation2 + $0x170] sm:$0xff]  ;;  %1011 = vst.msk [vmem:[#allocation2 + $0x198] sm:$0xff] %vm446_vm0, %v946_v39  ;;  %v1138_v49 = vmul.f32 0.00390625, %v1074_v41  ;;  %v572_v33 = vld [vmem:[#allocation2 + $0x1e8] sm:$0xff]  ;;  %v1195_v36 = vld [vmem:[%s6742_s1 + $0x140] sm:$0xff] }
 0x109   : > { %1409 = vmatprep.mubr.f32.mxu0 %v1180_v38  ;;  %4447 = vmatpush1.bf16.msra.mxu0 %v4446_v34  ;;  %v1137_v48 = vmul.f32 0.00390625, %v1073_v44  ;;  %1010 = vst.msk [vmem:[#allocation2 + $0x190] sm:$0xff] %vm446_vm0, %v945_v42  ;;  %v864_v50 = vpop.xlane.xlu1 %863  ;;  %v1200_v41 = vld [vmem:[%s6742_s1 + $0x168] sm:$0xff] }
 0x10a   : > { %4448 = vmatprep.subr.bf16.mxu0 %v4805_v59  ;;  %v948_v52 = vadd.f32 %v864_v50, %v564_v43  ;;  %v861_v53 = vpop.xlane.xlu0 %860 }
 0x10b   : > { %v1076_v54 = vld [vmem:[#allocation2 + $0x188] sm:$0xff]  ;;  %v947_v55 = vadd.f32 %v861_v53, %v563_v45  ;;  %v4452_v61 = vpack.c.bf16 %v1138_v49, %v1137_v48  ;;  %v573_v48 = vld [vmem:[#allocation2 + $0x1f0] sm:$0xff]  ;;  %v1199_v49 = vld [vmem:[%s6742_s1 + $0x160] sm:$0xff] }
 0x10c   : > { %1410 = vmatmul.mubr.f32.gmra.mrb[12].mxu0 %v1179_v46  ;;  %v1075_v57 = vld [vmem:[#allocation2 + $0x180] sm:$0xff]  ;;  %1013 = vst.msk [vmem:[#allocation2 + $0x1a8] sm:$0xff] %vm446_vm0, %v948_v52  ;;  %v1140_v63 = vmul.f32 0.00390625, %v1076_v54  ;;  %v574_v46 = vld [vmem:[#allocation2 + $0x1f8] sm:$0xff]  ;;  %v1204_v54 = vld [vmem:[%s6742_s1 + $0x188] sm:$0xff] }
 0x10d   : > { %1414 = vmatprep.mubr.f32.mxu0 %v1184_v51  ;;  %4450 = vmatpush1.bf16.msra.mxu0 %v4449_v47  ;;  %v1139_v62 = vmul.f32 0.00390625, %v1075_v57  ;;  %1012 = vst.msk [vmem:[#allocation2 + $0x1a0] sm:$0xff] %vm446_vm0, %v947_v55  ;;  %v870_v1 = vpop.xlane.xlu1 %869 }
 0x10e   : > { %4451 = vmatprep.subr.bf16.mxu0 %v4805_v59  ;;  %v950_v3 = vadd.f32 %v870_v1, %v566_v56  ;;  %v867_v4 = vpop.xlane.xlu0 %866 }
 0x10f   : > { %v1078_v5 = vld [vmem:[#allocation2 + $0x198] sm:$0xff]  ;;  %v949_v6 = vadd.f32 %v867_v4, %v565_v58  ;;  %v4455_v11 = vpack.c.bf16 %v1140_v63, %v1139_v62 }
 0x110   : > { %1415 = vmatmul.mubr.f32.gmra.mrb[14].mxu0 %v1183_v60  ;;  %v1077_v8 = vld [vmem:[#allocation2 + $0x190] sm:$0xff]  ;;  %1015 = vst.msk [vmem:[#allocation2 + $0x1b8] sm:$0xff] %vm446_vm0, %v950_v3  ;;  %v1142_v13 = vmul.f32 0.00390625, %v1078_v5  ;;  %v1207_v5 = vld [vmem:[%s6742_s1 + $0x1a0] sm:$0xff] }
 0x111   : > { %1419 = vmatprep.mubr.f32.mxu0 %v1188_v2  ;;  %4453 = vmatpush1.bf16.msra.mxu0 %v4452_v61  ;;  %v1141_v12 = vmul.f32 0.00390625, %v1077_v8  ;;  %1014 = vst.msk [vmem:[#allocation2 + $0x1b0] sm:$0xff] %vm446_vm0, %v949_v6  ;;  %v876_v14 = vpop.xlane.xlu1 %875  ;;  %v1203_v61 = vld [vmem:[%s6742_s1 + $0x180] sm:$0xff]  ;;  %v1208_v2 = vld [vmem:[%s6742_s1 + $0x1a8] sm:$0xff] }
 0x112   : > { %4454 = vmatprep.subr.bf16.mxu0 %v4805_v59  ;;  %v952_v16 = vadd.f32 %v876_v14, %v568_v7  ;;  %v873_v17 = vpop.xlane.xlu0 %872 }
 0x113   : > { %v1080_v18 = vld [vmem:[#allocation2 + $0x1a8] sm:$0xff]  ;;  %v951_v19 = vadd.f32 %v873_v17, %v567_v9  ;;  %v4458_v24 = vpack.c.bf16 %v1142_v13, %v1141_v12  ;;  %v1211_v12 = vld [vmem:[%s6742_s1 + $0x1c0] sm:$0xff] }
 0x114   : > { %1420 = vmatmul.mubr.f32.gmra.mrb[16].mxu0 %v1187_v10  ;;  %v1079_v21 = vld [vmem:[#allocation2 + $0x1a0] sm:$0xff]  ;;  %1017 = vst.msk [vmem:[#allocation2 + $0x1c8] sm:$0xff] %vm446_vm0, %v952_v16  ;;  %v1144_v26 = vmul.f32 0.00390625, %v1080_v18  ;;  %v1212_v9 = vld [vmem:[%s6742_s1 + $0x1c8] sm:$0xff] }
 0x115   : > { %1424 = vmatprep.mubr.f32.mxu0 %v1192_v15  ;;  %4456 = vmatpush1.bf16.msra.mxu0 %v4455_v11  ;;  %v1143_v25 = vmul.f32 0.00390625, %v1079_v21  ;;  %1016 = vst.msk [vmem:[#allocation2 + $0x1c0] sm:$0xff] %vm446_vm0, %v951_v19  ;;  %v882_v27 = vpop.xlane.xlu1 %881  ;;  %v1216_v16 = vld [vmem:[%s6742_s1 + $0x1e8] sm:$0xff]  ;;  %v1215_v17 = vld [vmem:[%s6742_s1 + $0x1e0] sm:$0xff] }
 0x116   : > { %4457 = vmatprep.subr.bf16.mxu0 %v4805_v59  ;;  %v954_v29 = vadd.f32 %v882_v27, %v570_v20  ;;  %v879_v30 = vpop.xlane.xlu0 %878  ;;  %v1220_v19 = vld [vmem:[%s6742_s1 + $0x208] sm:$0xff]  ;;  %v1219_v20 = vld [vmem:[%s6742_s1 + $0x200] sm:$0xff] }
 0x117   : > { %v1082_v31 = vld [vmem:[#allocation2 + $0x1b8] sm:$0xff]  ;;  %v953_v32 = vadd.f32 %v879_v30, %v569_v22  ;;  %v4461_v37 = vpack.c.bf16 %v1144_v26, %v1143_v25  ;;  %v1224_v21 = vld [vmem:[%s6742_s1 + $0x228] sm:$0xff]  ;;  %v1223_v22 = vld [vmem:[%s6742_s1 + $0x220] sm:$0xff] }
 0x118   : > { %1425 = vmatmul.mubr.f32.gmra.mrb[18].mxu0 %v1191_v23  ;;  %v1081_v34 = vld [vmem:[#allocation2 + $0x1b0] sm:$0xff]  ;;  %1019 = vst.msk [vmem:[#allocation2 + $0x1d8] sm:$0xff] %vm446_vm0, %v954_v29  ;;  %v1146_v39 = vmul.f32 0.00390625, %v1082_v31  ;;  %v1228_v23 = vld [vmem:[%s6742_s1 + $0x248] sm:$0xff]  ;;  %v1231_v26 = vld [vmem:[%s6742_s1 + $0x260] sm:$0xff] }
 0x119   : > { %1429 = vmatprep.mubr.f32.mxu0 %v1196_v28  ;;  %4459 = vmatpush1.bf16.msra.mxu0 %v4458_v24  ;;  %v1145_v38 = vmul.f32 0.00390625, %v1081_v34  ;;  %1018 = vst.msk [vmem:[#allocation2 + $0x1d0] sm:$0xff] %vm446_vm0, %v953_v32  ;;  %v888_v40 = vpop.xlane.xlu1 %887  ;;  %v1227_v24 = vld [vmem:[%s6742_s1 + $0x240] sm:$0xff]  ;;  %v1232_v25 = vld [vmem:[%s6742_s1 + $0x268] sm:$0xff] }
 0x11a   : > { %4460 = vmatprep.subr.bf16.mxu0 %v4805_v59  ;;  %v956_v42 = vadd.f32 %v888_v40, %v572_v33  ;;  %v885_v43 = vpop.xlane.xlu0 %884  ;;  %v1236_v27 = vld [vmem:[%s6742_s1 + $0x288] sm:$0xff]  ;;  %v1235_v28 = vld [vmem:[%s6742_s1 + $0x280] sm:$0xff] }
 0x11b   : > { %v1084_v44 = vld [vmem:[#allocation2 + $0x1c8] sm:$0xff]  ;;  %v955_v45 = vadd.f32 %v885_v43, %v571_v35  ;;  %v4464_v50 = vpack.c.bf16 %v1146_v39, %v1145_v38  ;;  %v1239_v30 = vld [vmem:[%s6742_s1 + $0x2a0] sm:$0xff] }
 0x11c   : > { %1430 = vmatmul.mubr.f32.gmra.mrb[20].mxu0 %v1195_v36  ;;  %v1083_v47 = vld [vmem:[#allocation2 + $0x1c0] sm:$0xff]  ;;  %1021 = vst.msk [vmem:[#allocation2 + $0x1e8] sm:$0xff] %vm446_vm0, %v956_v42  ;;  %v1148_v52 = vmul.f32 0.00390625, %v1084_v44  ;;  %v1240_v29 = vld [vmem:[%s6742_s1 + $0x2a8] sm:$0xff] }
 0x11d   : > { %1434 = vmatprep.mubr.f32.mxu0 %v1200_v41  ;;  %4462 = vmatpush1.bf16.msra.mxu0 %v4461_v37  ;;  %v1147_v51 = vmul.f32 0.00390625, %v1083_v47  ;;  %1020 = vst.msk [vmem:[#allocation2 + $0x1e0] sm:$0xff] %vm446_vm0, %v955_v45  ;;  %v894_v53 = vpop.xlane.xlu1 %893  ;;  %v1244_v31 = vld [vmem:[%s6742_s1 + $0x2c8] sm:$0xff]  ;;  %v1243_v32 = vld [vmem:[%s6742_s1 + $0x2c0] sm:$0xff] }
 0x11e   : > { %4463 = vmatprep.subr.bf16.mxu0 %v4805_v59  ;;  %v958_v55 = vadd.f32 %v894_v53, %v574_v46  ;;  %v891_v56 = vpop.xlane.xlu0 %890  ;;  %v1248_v33 = vld [vmem:[%s6742_s1 + $0x2e8] sm:$0xff]  ;;  %v1247_v34 = vld [vmem:[%s6742_s1 + $0x2e0] sm:$0xff]  ;;  %v1162_v53 = vld [vmem:[%s6742_s1 + $0x38] sm:$0xff] }
 0x11f   : > { %v1086_v57 = vld [vmem:[#allocation2 + $0x1d8] sm:$0xff]  ;;  %v957_v58 = vadd.f32 %v891_v56, %v573_v48  ;;  %v4467_v62 = vpack.c.bf16 %v1148_v52, %v1147_v51  ;;  %v1252_v35 = vld [vmem:[%s6742_s1 + $0x308] sm:$0xff]  ;;  %v1251_v36 = vld [vmem:[%s6742_s1 + $0x300] sm:$0xff] }
 0x120   : > { %1435 = vmatmul.mubr.f32.gmra.mrb[22].mxu0 %v1199_v49  ;;  %v1085_v60 = vld [vmem:[#allocation2 + $0x1d0] sm:$0xff]  ;;  %1023 = vst.msk [vmem:[#allocation2 + $0x1f8] sm:$0xff] %vm446_vm0, %v958_v55  ;;  %v1150_v1 = vmul.f32 0.00390625, %v1086_v57  ;;  %v1256_v37 = vld [vmem:[%s6742_s1 + $0x328] sm:$0xff]  ;;  %v1255_v38 = vld [vmem:[%s6742_s1 + $0x320] sm:$0xff] }
 0x121   : > { %1439 = vmatprep.mubr.f32.mxu0 %v1204_v54  ;;  %4465 = vmatpush1.bf16.msra.mxu0 %v4464_v50  ;;  %v1149_v63 = vmul.f32 0.00390625, %v1085_v60  ;;  %1022 = vst.msk [vmem:[#allocation2 + $0x1f0] sm:$0xff] %vm446_vm0, %v957_v58  ;;  %v1260_v39 = vld [vmem:[%s6742_s1 + $0x348] sm:$0xff]  ;;  %v1259_v40 = vld [vmem:[%s6742_s1 + $0x340] sm:$0xff]  ;;  %v1158_v51 = vld [vmem:[%s6742_s1 + $0x18] sm:$0xff] }
 0x122   : > { %4466 = vmatprep.subr.bf16.mxu0 %v4805_v59  ;;  %v1264_v41 = vld [vmem:[%s6742_s1 + $0x368] sm:$0xff]  ;;  %v1263_v42 = vld [vmem:[%s6742_s1 + $0x360] sm:$0xff]  ;;  %v1157_v52 = vld [vmem:[%s6742_s1 + $0x10] sm:$0xff] }
 0x123   : > { %v1088_v3 = vld [vmem:[#allocation2 + $0x1e8] sm:$0xff]  ;;  %v4470_v6 = vpack.c.bf16 %v1150_v1, %v1149_v63  ;;  %v1267_v44 = vld [vmem:[%s6742_s1 + $0x380] sm:$0xff]  ;;  %v1161_v54 = vld [vmem:[%s6742_s1 + $0x30] sm:$0xff] }
 0x124   : > { %1440 = vmatmul.mubr.f32.gmra.mrb[24].mxu0 %v1203_v61  ;;  %v1087_v4 = vld [vmem:[#allocation2 + $0x1e0] sm:$0xff]  ;;  %v1152_v8 = vmul.f32 0.00390625, %v1088_v3  ;;  %v1268_v43 = vld [vmem:[%s6742_s1 + $0x388] sm:$0xff]  ;;  %v1166_v55 = vld [vmem:[%s6742_s1 + $0x58] sm:$0xff] }
 0x125   : > { %1444 = vmatprep.mubr.f32.mxu0 %v1208_v2  ;;  %4468 = vmatpush1.bf16.msra.mxu0 %v4467_v62  ;;  %v1151_v7 = vmul.f32 0.00390625, %v1087_v4  ;;  %v1272_v45 = vld [vmem:[%s6742_s1 + $0x3a8] sm:$0xff]  ;;  %v1271_v46 = vld [vmem:[%s6742_s1 + $0x3a0] sm:$0xff]  ;;  %v1165_v56 = vld [vmem:[%s6742_s1 + $0x50] sm:$0xff] }
 0x126   : > { %4469 = vmatprep.subr.bf16.mxu0 %v4805_v59  ;;  %v1276_v47 = vld [vmem:[%s6742_s1 + $0x3c8] sm:$0xff]  ;;  %v1275_v48 = vld [vmem:[%s6742_s1 + $0x3c0] sm:$0xff]  ;;  %v1170_v57 = vld [vmem:[%s6742_s1 + $0x78] sm:$0xff] }
 0x127   : > { %v1090_v10 = vld [vmem:[#allocation2 + $0x1f8] sm:$0xff]  ;;  %v4473_v13 = vpack.c.bf16 %v1152_v8, %v1151_v7  ;;  %v1280_v49 = vld [vmem:[%s6742_s1 + $0x3e8] sm:$0xff]  ;;  %v1279_v50 = vld [vmem:[%s6742_s1 + $0x3e0] sm:$0xff] }
 0x128   : > { %1445 = vmatmul.mubr.f32.gmra.mrb[26].mxu0 %v1207_v5  ;;  %v1089_v11 = vld [vmem:[#allocation2 + $0x1f0] sm:$0xff]  ;;  %v1154_v15 = vmul.f32 0.00390625, %v1090_v10  ;;  %v1174_v60 = vld [vmem:[%s6742_s1 + $0x98] sm:$0xff] }
 0x129   : > { %1449 = vmatprep.mubr.f32.mxu0 %v1212_v9  ;;  %4471 = vmatpush1.bf16.msra.mxu0 %v4470_v6  ;;  %v1153_v14 = vmul.f32 0.00390625, %v1089_v11  ;;  %v1169_v58 = vld [vmem:[%s6742_s1 + $0x70] sm:$0xff]  ;;  %v1178_v62 = vld [vmem:[%s6742_s1 + $0xb8] sm:$0xff] }
 0x12a   : > { %4472 = vmatprep.subr.bf16.mxu0 %v4805_v59  ;;  %v1173_v61 = vld [vmem:[%s6742_s1 + $0x90] sm:$0xff]  ;;  %v1182_v1 = vld [vmem:[%s6742_s1 + $0xd8] sm:$0xff] }
 0x12b   : > { %v4476_v18 = vpack.c.bf16 %v1154_v15, %v1153_v14  ;;  %v1177_v63 = vld [vmem:[%s6742_s1 + $0xb0] sm:$0xff]  ;;  %v1186_v3 = vld [vmem:[%s6742_s1 + $0xf8] sm:$0xff] }
 0x12c   : > { %1450 = vmatmul.mubr.f32.gmra.mrb[28].mxu0 %v1211_v12  ;;  %v1181_v2 = vld [vmem:[%s6742_s1 + $0xd0] sm:$0xff]  ;;  %v1190_v5 = vld [vmem:[%s6742_s1 + $0x118] sm:$0xff] }
 0x12d   : > { %1454 = vmatprep.mubr.f32.mxu0 %v1216_v16  ;;  %4474 = vmatpush1.bf16.msra.mxu0 %v4473_v13  ;;  %v1185_v4 = vld [vmem:[%s6742_s1 + $0xf0] sm:$0xff]  ;;  %v1194_v7 = vld [vmem:[%s6742_s1 + $0x138] sm:$0xff] }
 0x12e   : > { %4475 = vmatprep.subr.bf16.mxu0 %v4805_v59  ;;  %v1189_v6 = vld [vmem:[%s6742_s1 + $0x110] sm:$0xff]  ;;  %v1198_v9 = vld [vmem:[%s6742_s1 + $0x158] sm:$0xff] }
 0x12f   : > { %v1193_v8 = vld [vmem:[%s6742_s1 + $0x130] sm:$0xff]  ;;  %v1202_v11 = vld [vmem:[%s6742_s1 + $0x178] sm:$0xff] }
 0x130   : > { %1455 = vmatmul.mubr.f32.gmra.mrb[30].mxu0 %v1215_v17  ;;  %v1197_v10 = vld [vmem:[%s6742_s1 + $0x150] sm:$0xff]  ;;  %v1206_v13 = vld [vmem:[%s6742_s1 + $0x198] sm:$0xff] }
 0x131   : > { %1459 = vmatprep.mubr.f32.mxu0 %v1220_v19  ;;  %4477 = vmatpush1.bf16.msra.mxu0 %v4476_v18  ;;  %v1201_v12 = vld [vmem:[%s6742_s1 + $0x170] sm:$0xff]  ;;  %v1210_v15 = vld [vmem:[%s6742_s1 + $0x1b8] sm:$0xff] }
 0x132   : > { %v1205_v14 = vld [vmem:[%s6742_s1 + $0x190] sm:$0xff]  ;;  %v1214_v17 = vld [vmem:[%s6742_s1 + $0x1d8] sm:$0xff] }
 0x133   : > { %v1209_v16 = vld [vmem:[%s6742_s1 + $0x1b0] sm:$0xff]  ;;  %v1218_v19 = vld [vmem:[%s6742_s1 + $0x1f8] sm:$0xff] }
 0x134   : > { %1460 = vmatmul.mubr.f32.gmra.mrb[32].mxu0 %v1219_v20  ;;  %v1213_v18 = vld [vmem:[%s6742_s1 + $0x1d0] sm:$0xff] }
 0x135   : > { %1464 = vmatprep.mubr.f32.mxu0 %v1224_v21  ;;  %v1217_v20 = vld [vmem:[%s6742_s1 + $0x1f0] sm:$0xff]  ;;  %v1222_v21 = vld [vmem:[%s6742_s1 + $0x218] sm:$0xff] }
 0x138   : > { %1465 = vmatmul.mubr.f32.gmra.mrb[34].mxu0 %v1223_v22  ;;  %v1221_v22 = vld [vmem:[%s6742_s1 + $0x210] sm:$0xff] }
 0x139   : > { %1469 = vmatprep.mubr.f32.mxu0 %v1228_v23  ;;  %v1226_v23 = vld [vmem:[%s6742_s1 + $0x238] sm:$0xff] }
 0x13c   : > { %1470 = vmatmul.mubr.f32.gmra.mrb[36].mxu0 %v1227_v24  ;;  %v1225_v24 = vld [vmem:[%s6742_s1 + $0x230] sm:$0xff] }
 0x13d   : > { %1474 = vmatprep.mubr.f32.mxu0 %v1232_v25  ;;  %v1230_v25 = vld [vmem:[%s6742_s1 + $0x258] sm:$0xff] }
 0x140   : > { %1475 = vmatmul.mubr.f32.gmra.mrb[38].mxu0 %v1231_v26  ;;  %v1229_v26 = vld [vmem:[%s6742_s1 + $0x250] sm:$0xff] }
 0x141   : > { %1479 = vmatprep.mubr.f32.mxu0 %v1236_v27  ;;  %v1234_v27 = vld [vmem:[%s6742_s1 + $0x278] sm:$0xff] }
 0x144   : > { %1480 = vmatmul.mubr.f32.gmra.mrb[40].mxu0 %v1235_v28  ;;  %v1233_v28 = vld [vmem:[%s6742_s1 + $0x270] sm:$0xff] }
 0x145   : > { %1484 = vmatprep.mubr.f32.mxu0 %v1240_v29  ;;  %v1238_v29 = vld [vmem:[%s6742_s1 + $0x298] sm:$0xff] }
 0x148   : > { %1485 = vmatmul.mubr.f32.gmra.mrb[42].mxu0 %v1239_v30  ;;  %v1237_v30 = vld [vmem:[%s6742_s1 + $0x290] sm:$0xff] }
 0x149   : > { %1489 = vmatprep.mubr.f32.mxu0 %v1244_v31  ;;  %v1242_v31 = vld [vmem:[%s6742_s1 + $0x2b8] sm:$0xff] }
 0x14c   : > { %1490 = vmatmul.mubr.f32.gmra.mrb[44].mxu0 %v1243_v32  ;;  %v1241_v32 = vld [vmem:[%s6742_s1 + $0x2b0] sm:$0xff] }
 0x14d   : > { %1494 = vmatprep.mubr.f32.mxu0 %v1248_v33  ;;  %v1246_v33 = vld [vmem:[%s6742_s1 + $0x2d8] sm:$0xff] }
 0x150   : > { %1495 = vmatmul.mubr.f32.gmra.mrb[46].mxu0 %v1247_v34  ;;  %v1245_v34 = vld [vmem:[%s6742_s1 + $0x2d0] sm:$0xff] }
 0x151   : > { %1499 = vmatprep.mubr.f32.mxu0 %v1252_v35  ;;  %v1250_v35 = vld [vmem:[%s6742_s1 + $0x2f8] sm:$0xff] }
 0x154   : > { %1500 = vmatmul.mubr.f32.gmra.mrb[48].mxu0 %v1251_v36  ;;  %v1249_v36 = vld [vmem:[%s6742_s1 + $0x2f0] sm:$0xff] }
 0x155   : > { %1504 = vmatprep.mubr.f32.mxu0 %v1256_v37  ;;  %v1254_v37 = vld [vmem:[%s6742_s1 + $0x318] sm:$0xff] }
 0x158   : > { %1505 = vmatmul.mubr.f32.gmra.mrb[50].mxu0 %v1255_v38  ;;  %v1253_v38 = vld [vmem:[%s6742_s1 + $0x310] sm:$0xff] }
 0x159   : > { %1509 = vmatprep.mubr.f32.mxu0 %v1260_v39  ;;  %v1258_v39 = vld [vmem:[%s6742_s1 + $0x338] sm:$0xff] }
 0x15c   : > { %1510 = vmatmul.mubr.f32.gmra.mrb[52].mxu0 %v1259_v40  ;;  %v1257_v40 = vld [vmem:[%s6742_s1 + $0x330] sm:$0xff] }
 0x15d   : > { %1514 = vmatprep.mubr.f32.mxu0 %v1264_v41  ;;  %v1262_v41 = vld [vmem:[%s6742_s1 + $0x358] sm:$0xff] }
 0x160   : > { %1515 = vmatmul.mubr.f32.gmra.mrb[54].mxu0 %v1263_v42  ;;  %v1261_v42 = vld [vmem:[%s6742_s1 + $0x350] sm:$0xff] }
 0x161   : > { %1519 = vmatprep.mubr.f32.mxu0 %v1268_v43  ;;  %v1266_v43 = vld [vmem:[%s6742_s1 + $0x378] sm:$0xff] }
 0x164   : > { %1520 = vmatmul.mubr.f32.gmra.mrb[56].mxu0 %v1267_v44  ;;  %v1265_v44 = vld [vmem:[%s6742_s1 + $0x370] sm:$0xff] }
 0x165   : > { %1524 = vmatprep.mubr.f32.mxu0 %v1272_v45  ;;  %v1270_v45 = vld [vmem:[%s6742_s1 + $0x398] sm:$0xff] }
 0x168   : > { %1525 = vmatmul.mubr.f32.gmra.mrb[58].mxu0 %v1271_v46  ;;  %v1269_v46 = vld [vmem:[%s6742_s1 + $0x390] sm:$0xff] }
 0x169   : > { %1529 = vmatprep.mubr.f32.mxu0 %v1276_v47  ;;  %v1274_v47 = vld [vmem:[%s6742_s1 + $0x3b8] sm:$0xff] }
 0x16c   : > { %1530 = vmatmul.mubr.f32.gmra.mrb[60].mxu0 %v1275_v48  ;;  %v1273_v48 = vld [vmem:[%s6742_s1 + $0x3b0] sm:$0xff] }
 0x16d   : > { %1534 = vmatprep.mubr.f32.mxu0 %v1280_v49  ;;  %v1278_v49 = vld [vmem:[%s6742_s1 + $0x3d8] sm:$0xff] }
 0x170   : > { %1535 = vmatmul.mubr.f32.gmra.mrb[62].mxu0 %v1279_v50  ;;  %v1277_v50 = vld [vmem:[%s6742_s1 + $0x3d0] sm:$0xff] }
 0x171   : > { %1604 = vmatprep.mubr.f32.mxu0 %v1158_v51  ;;  %v1282_v51 = vld [vmem:[%s6742_s1 + $0x3f8] sm:$0xff] }
 0x174   : > { %1605 = vmatmul.mubr.f32.vlgmr.msra.gmra.mrb[0].mxu0 %v1157_v52  ;;  %v1281_v52 = vld [vmem:[%s6742_s1 + $0x3f0] sm:$0xff] }
 0x175   : > { %1609 = vmatprep.mubr.f32.mxu0 %v1162_v53  ;;  %v1797_v53 = vld [vmem:[%s6744_s3] sm:$0xff] }
 0x176   : > { %4095 = vmatprep.mubr.f32.mxu1 %v1797_v53 }
 0x178   : > { %1610 = vmatmul.mubr.f32.gmra.mrb[2].mxu0 %v1161_v54  ;;  %v1283_v54 = vld [vmem:[%s6743_s2] sm:$0xff] }
 0x179   : > { %1614 = vmatprep.mubr.f32.mxu0 %v1166_v55 }
 0x17c   : > { %1615 = vmatmul.mubr.f32.gmra.mrb[4].mxu0 %v1165_v56 }
 0x17d   : > { %1619 = vmatprep.mubr.f32.mxu0 %v1170_v57  ;;  %v1284_v57 = vld [vmem:[%s6743_s2 + $0x8] sm:$0xff] }
 0x180   : > { %1620 = vmatmul.mubr.f32.gmra.mrb[6].mxu0 %v1169_v58 }
 0x181   : > { %1624 = vmatprep.mubr.f32.mxu0 %v1174_v60 }
 0x184   : > { %1625 = vmatmul.mubr.f32.gmra.mrb[8].mxu0 %v1173_v61 }
 0x185   : > { %1629 = vmatprep.mubr.f32.mxu0 %v1178_v62 }
 0x188   : > { %1630 = vmatmul.mubr.f32.gmra.mrb[10].mxu0 %v1177_v63 }
 0x189   : > { %1634 = vmatprep.mubr.f32.mxu0 %v1182_v1 }
 0x18c   : > { %1635 = vmatmul.mubr.f32.gmra.mrb[12].mxu0 %v1181_v2  ;;  %v1285_v2 = vld [vmem:[%s6743_s2 + $0x10] sm:$0xff] }
 0x18d   : > { %1639 = vmatprep.mubr.f32.mxu0 %v1186_v3 }
 0x190   : > { %1640 = vmatmul.mubr.f32.gmra.mrb[14].mxu0 %v1185_v4 }
 0x191   : > { %1644 = vmatprep.mubr.f32.mxu0 %v1190_v5 }
 0x194   : > { %1645 = vmatmul.mubr.f32.gmra.mrb[16].mxu0 %v1189_v6  ;;  %v1286_v6 = vld [vmem:[%s6743_s2 + $0x18] sm:$0xff] }
 0x195   : > { %1649 = vmatprep.mubr.f32.mxu0 %v1194_v7 }
 0x198   : > { %1650 = vmatmul.mubr.f32.gmra.mrb[18].mxu0 %v1193_v8 }
 0x199   : > { %1654 = vmatprep.mubr.f32.mxu0 %v1198_v9 }
 0x19c   : > { %1655 = vmatmul.mubr.f32.gmra.mrb[20].mxu0 %v1197_v10 }
 0x19d   : > { %1659 = vmatprep.mubr.f32.mxu0 %v1202_v11 }
 0x1a0   : > { %1660 = vmatmul.mubr.f32.gmra.mrb[22].mxu0 %v1201_v12 }
 0x1a1   : > { %1664 = vmatprep.mubr.f32.mxu0 %v1206_v13  ;;  %v1287_v13 = vld [vmem:[%s6743_s2 + $0x20] sm:$0xff] }
 0x1a4   : > { %1665 = vmatmul.mubr.f32.gmra.mrb[24].mxu0 %v1205_v14 }
 0x1a5   : > { %1669 = vmatprep.mubr.f32.mxu0 %v1210_v15 }
 0x1a8   : > { %1670 = vmatmul.mubr.f32.gmra.mrb[26].mxu0 %v1209_v16 }
 0x1a9   : > { %1674 = vmatprep.mubr.f32.mxu0 %v1214_v17  ;;  %v1288_v17 = vld [vmem:[%s6743_s2 + $0x28] sm:$0xff] }
 0x1ac   : > { %1675 = vmatmul.mubr.f32.gmra.mrb[28].mxu0 %v1213_v18 }
 0x1ad   : > { %1679 = vmatprep.mubr.f32.mxu0 %v1218_v19 }
 0x1b0   : > { %1680 = vmatmul.mubr.f32.gmra.mrb[30].mxu0 %v1217_v20 }
 0x1b1   : > { %1684 = vmatprep.mubr.f32.mxu0 %v1222_v21 }
 0x1b4   : > { %1685 = vmatmul.mubr.f32.gmra.mrb[32].mxu0 %v1221_v22 }
 0x1b5   : > { %1689 = vmatprep.mubr.f32.mxu0 %v1226_v23 }
 0x1b8   : > { %1690 = vmatmul.mubr.f32.gmra.mrb[34].mxu0 %v1225_v24  ;;  %v1289_v24 = vld [vmem:[%s6743_s2 + $0x30] sm:$0xff] }
 0x1b9   : > { %1694 = vmatprep.mubr.f32.mxu0 %v1230_v25 }
 0x1bc   : > { %1695 = vmatmul.mubr.f32.gmra.mrb[36].mxu0 %v1229_v26 }
 0x1bd   : > { %1699 = vmatprep.mubr.f32.mxu0 %v1234_v27 }
 0x1c0   : > { %1700 = vmatmul.mubr.f32.gmra.mrb[38].mxu0 %v1233_v28  ;;  %v1290_v28 = vld [vmem:[%s6743_s2 + $0x38] sm:$0xff] }
 0x1c1   : > { %1704 = vmatprep.mubr.f32.mxu0 %v1238_v29 }
 0x1c4   : > { %1705 = vmatmul.mubr.f32.gmra.mrb[40].mxu0 %v1237_v30 }
 0x1c5   : > { %1709 = vmatprep.mubr.f32.mxu0 %v1242_v31 }
 0x1c8   : > { %1710 = vmatmul.mubr.f32.gmra.mrb[42].mxu0 %v1241_v32 }
 0x1c9   : > { %1714 = vmatprep.mubr.f32.mxu0 %v1246_v33 }
 0x1cc   : > { %1715 = vmatmul.mubr.f32.gmra.mrb[44].mxu0 %v1245_v34 }
 0x1cd   : > { %1719 = vmatprep.mubr.f32.mxu0 %v1250_v35  ;;  %v1291_v35 = vld [vmem:[%s6743_s2 + $0x40] sm:$0xff] }
 0x1d0   : > { %1720 = vmatmul.mubr.f32.gmra.mrb[46].mxu0 %v1249_v36 }
 0x1d1   : > { %1724 = vmatprep.mubr.f32.mxu0 %v1254_v37 }
 0x1d4   : > { %1725 = vmatmul.mubr.f32.gmra.mrb[48].mxu0 %v1253_v38 }
 0x1d5   : > { %1729 = vmatprep.mubr.f32.mxu0 %v1258_v39  ;;  %v1292_v39 = vld [vmem:[%s6743_s2 + $0x48] sm:$0xff] }
 0x1d8   : > { %1730 = vmatmul.mubr.f32.gmra.mrb[50].mxu0 %v1257_v40 }
 0x1d9   : > { %1734 = vmatprep.mubr.f32.mxu0 %v1262_v41 }
 0x1dc   : > { %1735 = vmatmul.mubr.f32.gmra.mrb[52].mxu0 %v1261_v42 }
 0x1dd   : > { %1739 = vmatprep.mubr.f32.mxu0 %v1266_v43 }
 0x1e0   : > { %1740 = vmatmul.mubr.f32.gmra.mrb[54].mxu0 %v1265_v44 }
 0x1e1   : > { %1744 = vmatprep.mubr.f32.mxu0 %v1270_v45 }
 0x1e4   : > { %1745 = vmatmul.mubr.f32.gmra.mrb[56].mxu0 %v1269_v46  ;;  %v1293_v46 = vld [vmem:[%s6743_s2 + $0x50] sm:$0xff] }
 0x1e5   : > { %1749 = vmatprep.mubr.f32.mxu0 %v1274_v47 }
 0x1e8   : > { %1750 = vmatmul.mubr.f32.gmra.mrb[58].mxu0 %v1273_v48 }
 0x1e9   : > { %1754 = vmatprep.mubr.f32.mxu0 %v1278_v49 }
 0x1ec   : > { %1755 = vmatmul.mubr.f32.gmra.mrb[60].mxu0 %v1277_v50  ;;  %v1294_v50 = vld [vmem:[%s6743_s2 + $0x58] sm:$0xff] }
 0x1ed   : > { %1759 = vmatprep.mubr.f32.mxu0 %v1282_v51 }
 0x1f0   : > { %1760 = vmatmul.mubr.f32.gmra.mrb[62].mxu0 %v1281_v52 }
 0x247   : > { %v1606_v55 = vpop.f32.mrb[0].mxu0 }
 0x248   : > { %v1608_v56 = vpop.f32.mrb[1].mxu0  ;;  %v4619_v58 = vadd.f32 %v1606_v55, %v1283_v54 }
 0x24a   : > { %v1765_v63 = vmax.f32 %v4619_v58, 0.0 }
 0x24b   : > { %v1611_v60 = vpop.f32.mrb[2].mxu0 }
 0x24c   : > { %v4620_v61 = vadd.f32 %v1611_v60, %v1284_v57  ;;  %v1613_v62 = vpop.f32.mrb[3].mxu0  ;;  %v1295_v57 = vld [vmem:[%s6743_s2 + $0x60] sm:$0xff] }
 0x24d   : > { %v1296_v62 = vld [vmem:[%s6743_s2 + $0x68] sm:$0xff] }
 0x24e   : > { %v1766_v1 = vmax.f32 %v4620_v61, 0.0 }
 0x24f   : > { %v1616_v3 = vpop.f32.mrb[4].mxu0 }
 0x250   : > { %v1618_v4 = vpop.f32.mrb[5].mxu0  ;;  %v4478_v5 = vpack.c.bf16 %v1766_v1, %v1765_v63  ;;  %v4621_v7 = vadd.f32 %v1616_v3, %v1285_v2 }
 0x252   : > { %4479 = vmatprep.subr.bf16.mxu1 %v4478_v5  ;;  %v1767_v11 = vmax.f32 %v4621_v7, 0.0 }
 0x253   : > { %v1621_v8 = vpop.f32.mrb[6].mxu0  ;;  %4481 = vmatpush3.bf16.msra.mxu1 %v4478_v5 }
 0x254   : > { %v4622_v9 = vadd.f32 %v1621_v8, %v1286_v6  ;;  %v1623_v10 = vpop.f32.mrb[7].mxu0  ;;  %v1297_v6 = vld [vmem:[%s6743_s2 + $0x70] sm:$0xff] }
 0x255   : > { %v1298_v10 = vld [vmem:[%s6743_s2 + $0x78] sm:$0xff] }
 0x256   : > { %v1768_v12 = vmax.f32 %v4622_v9, 0.0 }
 0x257   : > { %v1626_v14 = vpop.f32.mrb[8].mxu0 }
 0x258   : > { %v4482_v15 = vpack.c.bf16 %v1768_v12, %v1767_v11  ;;  %v1628_v16 = vpop.f32.mrb[9].mxu0  ;;  %v4623_v18 = vadd.f32 %v1626_v14, %v1287_v13 }
 0x25a   : > { %4483 = vmatprep.subr.bf16.mxu1 %v4482_v15  ;;  %v1769_v22 = vmax.f32 %v4623_v18, 0.0 }
 0x25b   : > { %v1631_v19 = vpop.f32.mrb[10].mxu0  ;;  %4485 = vmatpush3.bf16.msra.mxu1 %v4482_v15 }
 0x25c   : > { %v4624_v20 = vadd.f32 %v1631_v19, %v1288_v17  ;;  %v1633_v21 = vpop.f32.mrb[11].mxu0  ;;  %v1299_v17 = vld [vmem:[%s6743_s2 + $0x80] sm:$0xff] }
 0x25d   : > { %v1300_v21 = vld [vmem:[%s6743_s2 + $0x88] sm:$0xff] }
 0x25e   : > { %v1770_v23 = vmax.f32 %v4624_v20, 0.0 }
 0x25f   : > { %v1636_v25 = vpop.f32.mrb[12].mxu0 }
 0x260   : > { %v4486_v26 = vpack.c.bf16 %v1770_v23, %v1769_v22  ;;  %v1638_v27 = vpop.f32.mrb[13].mxu0  ;;  %v4625_v29 = vadd.f32 %v1636_v25, %v1289_v24  ;;  %v1798_v24 = vld [vmem:[%s6744_s3 + $0x8] sm:$0xff] }
 0x261   : > { %v1799_v27 = vld [vmem:[%s6744_s3 + $0x10] sm:$0xff] }
 0x262   : > { %4487 = vmatprep.subr.bf16.mxu1 %v4486_v26  ;;  %v1771_v33 = vmax.f32 %v4625_v29, 0.0 }
 0x263   : > { %v1641_v30 = vpop.f32.mrb[14].mxu0  ;;  %4489 = vmatpush3.bf16.msra.mxu1 %v4486_v26 }
 0x264   : > { %v4626_v31 = vadd.f32 %v1641_v30, %v1290_v28  ;;  %v1643_v32 = vpop.f32.mrb[15].mxu0  ;;  %v1301_v30 = vld [vmem:[%s6743_s2 + $0x90] sm:$0xff] }
 0x265   : > { %v1800_v32 = vld [vmem:[%s6744_s3 + $0x18] sm:$0xff] }
 0x266   : > { %v1772_v34 = vmax.f32 %v4626_v31, 0.0 }
 0x267   : > { %v1646_v36 = vpop.f32.mrb[16].mxu0 }
 0x268   : > { %v4490_v37 = vpack.c.bf16 %v1772_v34, %v1771_v33  ;;  %v1648_v38 = vpop.f32.mrb[17].mxu0  ;;  %v4627_v40 = vadd.f32 %v1646_v36, %v1291_v35  ;;  %v1801_v35 = vld [vmem:[%s6744_s3 + $0x20] sm:$0xff]  ;;  %v1302_v36 = vld [vmem:[%s6743_s2 + $0x98] sm:$0xff] }
 0x26a   : > { %4491 = vmatprep.subr.bf16.mxu1 %v4490_v37  ;;  %v1773_v44 = vmax.f32 %v4627_v40, 0.0 }
 0x26b   : > { %v1651_v41 = vpop.f32.mrb[18].mxu0  ;;  %4493 = vmatpush3.bf16.msra.mxu1 %v4490_v37 }
 0x26c   : > { %v4628_v42 = vadd.f32 %v1651_v41, %v1292_v39  ;;  %v1653_v43 = vpop.f32.mrb[19].mxu0  ;;  %v1802_v39 = vld [vmem:[%s6744_s3 + $0x28] sm:$0xff] }
 0x26e   : > { %v1774_v45 = vmax.f32 %v4628_v42, 0.0  ;;  %v1803_v42 = vld [vmem:[%s6744_s3 + $0x30] sm:$0xff] }
 0x26f   : > { %v1656_v47 = vpop.f32.mrb[20].mxu0 }
 0x270   : > { %v4494_v48 = vpack.c.bf16 %v1774_v45, %v1773_v44  ;;  %v1658_v49 = vpop.f32.mrb[21].mxu0  ;;  %v4629_v51 = vadd.f32 %v1656_v47, %v1293_v46  ;;  %v1303_v45 = vld [vmem:[%s6743_s2 + $0xa0] sm:$0xff] }
 0x271   : > { %v1804_v49 = vld [vmem:[%s6744_s3 + $0x38] sm:$0xff] }
 0x272   : > { %4495 = vmatprep.subr.bf16.mxu1 %v4494_v48  ;;  %v1775_v55 = vmax.f32 %v4629_v51, 0.0 }
 0x273   : > { %v1661_v52 = vpop.f32.mrb[22].mxu0  ;;  %4497 = vmatpush3.bf16.msra.mxu1 %v4494_v48 }
 0x274   : > { %v4630_v53 = vadd.f32 %v1661_v52, %v1294_v50  ;;  %v1663_v54 = vpop.f32.mrb[23].mxu0  ;;  %v1304_v50 = vld [vmem:[%s6743_s2 + $0xa8] sm:$0xff] }
 0x276   : > { %v1776_v56 = vmax.f32 %v4630_v53, 0.0 }
 0x277   : > { %v1666_v58 = vpop.f32.mrb[24].mxu0 }
 0x278   : > { %v4498_v60 = vpack.c.bf16 %v1776_v56, %v1775_v55  ;;  %v1668_v61 = vpop.f32.mrb[25].mxu0  ;;  %v4631_v63 = vadd.f32 %v1666_v58, %v1295_v57  ;;  %v1305_v57 = vld [vmem:[%s6743_s2 + $0xb0] sm:$0xff] }
 0x27a   : > { %4499 = vmatprep.subr.bf16.mxu1 %v4498_v60  ;;  %v1777_v4 = vmax.f32 %v4631_v63, 0.0 }
 0x27b   : > { %v1671_v1 = vpop.f32.mrb[26].mxu0  ;;  %4501 = vmatpush3.bf16.msra.mxu1 %v4498_v60 }
 0x27c   : > { %v4632_v2 = vadd.f32 %v1671_v1, %v1296_v62  ;;  %v1673_v3 = vpop.f32.mrb[27].mxu0  ;;  %v1306_v62 = vld [vmem:[%s6743_s2 + $0xb8] sm:$0xff] }
 0x27e   : > { %v1778_v5 = vmax.f32 %v4632_v2, 0.0 }
 0x27f   : > { %v1676_v7 = vpop.f32.mrb[28].mxu0 }
 0x280   : > { %v4502_v8 = vpack.c.bf16 %v1778_v5, %v1777_v4  ;;  %v1678_v9 = vpop.f32.mrb[29].mxu0  ;;  %v4633_v11 = vadd.f32 %v1676_v7, %v1297_v6  ;;  %v1307_v6 = vld [vmem:[%s6743_s2 + $0xc0] sm:$0xff] }
 0x282   : > { %4503 = vmatprep.subr.bf16.mxu1 %v4502_v8  ;;  %v1779_v15 = vmax.f32 %v4633_v11, 0.0 }
 0x283   : > { %v1681_v12 = vpop.f32.mrb[30].mxu0  ;;  %4505 = vmatpush3.bf16.msra.mxu1 %v4502_v8 }
 0x284   : > { %v4634_v13 = vadd.f32 %v1681_v12, %v1298_v10  ;;  %v1683_v14 = vpop.f32.mrb[31].mxu0  ;;  %v1308_v10 = vld [vmem:[%s6743_s2 + $0xc8] sm:$0xff] }
 0x286   : > { %v1780_v16 = vmax.f32 %v4634_v13, 0.0 }
 0x287   : > { %v1686_v18 = vpop.f32.mrb[32].mxu0 }
 0x288   : > { %v4506_v19 = vpack.c.bf16 %v1780_v16, %v1779_v15  ;;  %v1688_v20 = vpop.f32.mrb[33].mxu0  ;;  %v4635_v22 = vadd.f32 %v1686_v18, %v1299_v17  ;;  %v1309_v17 = vld [vmem:[%s6743_s2 + $0xd0] sm:$0xff] }
 0x28a   : > { %4507 = vmatprep.subr.bf16.mxu1 %v4506_v19  ;;  %v1781_v28 = vmax.f32 %v4635_v22, 0.0 }
 0x28b   : > { %v1691_v23 = vpop.f32.mrb[34].mxu0  ;;  %4509 = vmatpush3.bf16.msra.mxu1 %v4506_v19 }
 0x28c   : > { %v4636_v25 = vadd.f32 %v1691_v23, %v1300_v21  ;;  %v1693_v26 = vpop.f32.mrb[35].mxu0  ;;  %4510 = vmatprep.subr.bf16.mxu1 %v4805_v59  ;;  %v1310_v21 = vld [vmem:[%s6743_s2 + $0xd8] sm:$0xff] }
 0x28e   : > { %v1782_v29 = vmax.f32 %v4636_v25, 0.0  ;;  %4096 = vmatmul.mubr.f32.vlgmr.msra.gmra.mrb[0].mxu1 %v1798_v24 }
 0x28f   : > { %v1696_v31 = vpop.f32.mrb[36].mxu0  ;;  %4098 = vmatprep.mubr.f32.mxu1 %v1799_v27 }
 0x290   : > { %v4511_v33 = vpack.c.bf16 %v1782_v29, %v1781_v28  ;;  %v1698_v34 = vpop.f32.mrb[37].mxu0  ;;  %v4637_v37 = vadd.f32 %v1696_v31, %v1301_v30  ;;  %v1311_v28 = vld [vmem:[%s6743_s2 + $0xe0] sm:$0xff] }
 0x292   : > { %4099 = vmatmul.mubr.f32.gmra.mrb[2].mxu1 %v1800_v32  ;;  %v1783_v43 = vmax.f32 %v4637_v37, 0.0  ;;  %v1312_v32 = vld [vmem:[%s6743_s2 + $0xe8] sm:$0xff] }
 0x293   : > { %4512 = vmatpush3.bf16.msra.mxu1 %v4511_v33  ;;  %v1701_v38 = vpop.f32.mrb[38].mxu0  ;;  %4101 = vmatprep.mubr.f32.mxu1 %v1801_v35 }
 0x294   : > { %v4638_v40 = vadd.f32 %v1701_v38, %v1302_v36  ;;  %v1703_v41 = vpop.f32.mrb[39].mxu0  ;;  %4513 = vmatprep.subr.bf16.mxu1 %v4805_v59 }
 0x296   : > { %v1784_v44 = vmax.f32 %v4638_v40, 0.0  ;;  %4102 = vmatmul.mubr.f32.gmra.mrb[4].mxu1 %v1802_v39  ;;  %v1313_v39 = vld [vmem:[%s6743_s2 + $0xf0] sm:$0xff] }
 0x297   : > { %v1706_v46 = vpop.f32.mrb[40].mxu0  ;;  %4104 = vmatprep.mubr.f32.mxu1 %v1803_v42 }
 0x298   : > { %v4514_v47 = vpack.c.bf16 %v1784_v44, %v1783_v43  ;;  %v1708_v48 = vpop.f32.mrb[41].mxu0  ;;  %v4639_v51 = vadd.f32 %v1706_v46, %v1303_v45  ;;  %v1314_v43 = vld [vmem:[%s6743_s2 + $0xf8] sm:$0xff] }
 0x29a   : > { %4515 = vmatpush3.bf16.msra.mxu1 %v4514_v47  ;;  %v1785_v55 = vmax.f32 %v4639_v51, 0.0  ;;  %v1918_v51 = vld [vmem:[%s6746_s5] sm:$0xff] }
 0x29b   : > { %v1711_v52 = vpop.f32.mrb[42].mxu0  ;;  %4516 = vmatprep.subr.bf16.mxu1 %v4805_v59  ;;  %4105 = vmatmul.mubr.f32.gmra.mrb[6].mxu1 %v1804_v49 }
 0x29c   : > { %v4640_v53 = vadd.f32 %v1711_v52, %v1304_v50  ;;  %v1713_v54 = vpop.f32.mrb[43].mxu0  ;;  %4139 = vmatprep.mubr.msk.f32.mxu1 %vm4806_vm1, %v4804_v0  ;;  %v1919_v52 = vld [vmem:[%s6746_s5 + $0x8] sm:$0xff] }
 0x29d   : > { %v1921_v54 = vld [vmem:[%s6746_s5 + $0x18] sm:$0xff] }
 0x29e   : > { %v1786_v56 = vmax.f32 %v4640_v53, 0.0  ;;  %v1920_v53 = vld [vmem:[%s6746_s5 + $0x10] sm:$0xff] }
 0x29f   : > { %v1716_v58 = vpop.f32.mrb[44].mxu0 }
 0x2a0   : > { %v4517_v60 = vpack.c.bf16 %v1786_v56, %v1785_v55  ;;  %v1718_v61 = vpop.f32.mrb[45].mxu0  ;;  %v4641_v63 = vadd.f32 %v1716_v58, %v1305_v57  ;;  %v1922_v55 = vld [vmem:[%s6746_s5 + $0x20] sm:$0xff]  ;;  %v1923_v56 = vld [vmem:[%s6746_s5 + $0x28] sm:$0xff]  ;;  %v1924_v57 = vld [vmem:[%s6746_s5 + $0x30] sm:$0xff]  ;;  %v4807_v58 = vmov 0  }
 0x2a1   : > { %4743 = vset.pattern.permute.xlu1 %v4807_v58  ;;  %4744 = vset.pattern.permute.xlu0 %v4807_v58  ;;  %v1926_v61 = vld [vmem:[%s6746_s5 + $0x40] sm:$0xff] }
 0x2a2   : > { %4518 = vmatpush3.bf16.msra.mxu1 %v4517_v60  ;;  %v1787_v4 = vmax.f32 %v4641_v63, 0.0  ;;  %v1925_v60 = vld [vmem:[%s6746_s5 + $0x38] sm:$0xff]  ;;  %v1928_v63 = vld [vmem:[%s6746_s5 + $0x50] sm:$0xff]  ;;  %v1962_v58 = vld [vmem:[%s6746_s5 + $0x160] sm:$0xff] }
 0x2a3   : > { %v1721_v1 = vpop.f32.mrb[46].mxu0  ;;  %4519 = vmatprep.subr.bf16.mxu1 %v4805_v59 }
 0x2a4   : > { %v4642_v2 = vadd.f32 %v1721_v1, %v1306_v62  ;;  %v1723_v3 = vpop.f32.mrb[47].mxu0  ;;  %v1927_v62 = vld [vmem:[%s6746_s5 + $0x48] sm:$0xff]  ;;  %v1929_v1 = vld [vmem:[%s6746_s5 + $0x58] sm:$0xff] }
 0x2a5   : > { %v1931_v3 = vld [vmem:[%s6746_s5 + $0x68] sm:$0xff] }
 0x2a6   : > { %v1788_v5 = vmax.f32 %v4642_v2, 0.0  ;;  %v1930_v2 = vld [vmem:[%s6746_s5 + $0x60] sm:$0xff] }
 0x2a7   : > { %v1726_v7 = vpop.f32.mrb[48].mxu0 }
 0x2a8   : > { %v4520_v8 = vpack.c.bf16 %v1788_v5, %v1787_v4  ;;  %v1728_v9 = vpop.f32.mrb[49].mxu0  ;;  %v4643_v11 = vadd.f32 %v1726_v7, %v1307_v6  ;;  %v1932_v4 = vld [vmem:[%s6746_s5 + $0x70] sm:$0xff]  ;;  %v1933_v5 = vld [vmem:[%s6746_s5 + $0x78] sm:$0xff]  ;;  %v1934_v6 = vld [vmem:[%s6746_s5 + $0x80] sm:$0xff] }
 0x2a9   : > { %v1935_v7 = vld [vmem:[%s6746_s5 + $0x88] sm:$0xff]  ;;  %v1937_v9 = vld [vmem:[%s6746_s5 + $0x98] sm:$0xff] }
 0x2aa   : > { %4521 = vmatpush3.bf16.msra.mxu1 %v4520_v8  ;;  %v1789_v15 = vmax.f32 %v4643_v11, 0.0  ;;  %v1936_v8 = vld [vmem:[%s6746_s5 + $0x90] sm:$0xff]  ;;  %v1939_v11 = vld [vmem:[%s6746_s5 + $0xa8] sm:$0xff] }
 0x2ab   : > { %v1731_v12 = vpop.f32.mrb[50].mxu0  ;;  %4522 = vmatprep.subr.bf16.mxu1 %v4805_v59 }
 0x2ac   : > { %v4644_v13 = vadd.f32 %v1731_v12, %v1308_v10  ;;  %v1733_v14 = vpop.f32.mrb[51].mxu0  ;;  %v1938_v10 = vld [vmem:[%s6746_s5 + $0xa0] sm:$0xff]  ;;  %v1940_v12 = vld [vmem:[%s6746_s5 + $0xb0] sm:$0xff] }
 0x2ad   : > { %v1942_v14 = vld [vmem:[%s6746_s5 + $0xc0] sm:$0xff] }
 0x2ae   : > { %v1790_v16 = vmax.f32 %v4644_v13, 0.0  ;;  %v1941_v13 = vld [vmem:[%s6746_s5 + $0xb8] sm:$0xff] }
 0x2af   : > { %v1736_v18 = vpop.f32.mrb[52].mxu0 }
 0x2b0   : > { %v4523_v19 = vpack.c.bf16 %v1790_v16, %v1789_v15  ;;  %v1738_v20 = vpop.f32.mrb[53].mxu0  ;;  %v4645_v22 = vadd.f32 %v1736_v18, %v1309_v17  ;;  %v1943_v15 = vld [vmem:[%s6746_s5 + $0xc8] sm:$0xff]  ;;  %v1944_v16 = vld [vmem:[%s6746_s5 + $0xd0] sm:$0xff]  ;;  %v1945_v17 = vld [vmem:[%s6746_s5 + $0xd8] sm:$0xff] }
 0x2b1   : > { %v1946_v18 = vld [vmem:[%s6746_s5 + $0xe0] sm:$0xff]  ;;  %v1948_v20 = vld [vmem:[%s6746_s5 + $0xf0] sm:$0xff] }
 0x2b2   : > { %4524 = vmatpush3.bf16.msra.mxu1 %v4523_v19  ;;  %v1791_v26 = vmax.f32 %v4645_v22, 0.0  ;;  %v1947_v19 = vld [vmem:[%s6746_s5 + $0xe8] sm:$0xff]  ;;  %v1950_v22 = vld [vmem:[%s6746_s5 + $0x100] sm:$0xff] }
 0x2b3   : > { %v1741_v23 = vpop.f32.mrb[54].mxu0  ;;  %4525 = vmatprep.subr.bf16.mxu1 %v4805_v59 }
 0x2b4   : > { %v4646_v24 = vadd.f32 %v1741_v23, %v1310_v21  ;;  %v1743_v25 = vpop.f32.mrb[55].mxu0  ;;  %v1949_v21 = vld [vmem:[%s6746_s5 + $0xf8] sm:$0xff]  ;;  %v1951_v23 = vld [vmem:[%s6746_s5 + $0x108] sm:$0xff] }
 0x2b5   : > { %v1953_v25 = vld [vmem:[%s6746_s5 + $0x118] sm:$0xff] }
 0x2b6   : > { %v1792_v27 = vmax.f32 %v4646_v24, 0.0  ;;  %v1952_v24 = vld [vmem:[%s6746_s5 + $0x110] sm:$0xff] }
 0x2b7   : > { %v1746_v29 = vpop.f32.mrb[56].mxu0 }
 0x2b8   : > { %v4526_v30 = vpack.c.bf16 %v1792_v27, %v1791_v26  ;;  %v1748_v31 = vpop.f32.mrb[57].mxu0  ;;  %v4647_v33 = vadd.f32 %v1746_v29, %v1311_v28  ;;  %v1954_v26 = vld [vmem:[%s6746_s5 + $0x120] sm:$0xff]  ;;  %v1955_v27 = vld [vmem:[%s6746_s5 + $0x128] sm:$0xff] }
 0x2b9   : > { %v1806_v28 = vld [vmem:[%s6745_s4 + $0x8] sm:$0xff]  ;;  %v1805_v29 = vld [vmem:[%s6745_s4] sm:$0xff] }
 0x2ba   : > { %4527 = vmatpush3.bf16.msra.mxu1 %v4526_v30  ;;  %v1793_v37 = vmax.f32 %v4647_v33, 0.0  ;;  %v1956_v33 = vld [vmem:[%s6746_s5 + $0x130] sm:$0xff] }
 0x2bb   : > { %v1751_v34 = vpop.f32.mrb[58].mxu0  ;;  %4528 = vmatprep.subr.bf16.mxu1 %v4805_v59 }
 0x2bc   : > { %v4648_v35 = vadd.f32 %v1751_v34, %v1312_v32  ;;  %v1753_v36 = vpop.f32.mrb[59].mxu0 }
 0x2be   : > { %v1794_v38 = vmax.f32 %v4648_v35, 0.0  ;;  %v1808_v35 = vld [vmem:[%s6745_s4 + $0x18] sm:$0xff] }
 0x2bf   : > { %v1756_v40 = vpop.f32.mrb[60].mxu0 }
 0x2c0   : > { %v4529_v41 = vpack.c.bf16 %v1794_v38, %v1793_v37  ;;  %v1758_v42 = vpop.f32.mrb[61].mxu0  ;;  %v4649_v44 = vadd.f32 %v1756_v40, %v1313_v39  ;;  %v1807_v37 = vld [vmem:[%s6745_s4 + $0x10] sm:$0xff]  ;;  %v1957_v40 = vld [vmem:[%s6746_s5 + $0x138] sm:$0xff] }
 0x2c1   : > { %v1810_v42 = vld [vmem:[%s6745_s4 + $0x28] sm:$0xff] }
 0x2c2   : > { %4530 = vmatpush3.bf16.msra.mxu1 %v4529_v41  ;;  %v1795_v48 = vmax.f32 %v4649_v44, 0.0  ;;  %v1958_v44 = vld [vmem:[%s6746_s5 + $0x140] sm:$0xff] }
 0x2c3   : > { %v1761_v45 = vpop.f32.mrb[62].mxu0  ;;  %4531 = vmatprep.subr.bf16.mxu1 %v4805_v59 }
 0x2c4   : > { %v4650_v46 = vadd.f32 %v1761_v45, %v1314_v43  ;;  %v1763_v47 = vpop.f32.mrb[63].mxu0 }
 0x2c5   : > { %v1809_v47 = vld [vmem:[%s6745_s4 + $0x20] sm:$0xff] }
 0x2c6   : > { %v1796_v49 = vmax.f32 %v4650_v46, 0.0 }
 0x2c8   : > { %v4532_v50 = vpack.c.bf16 %v1796_v49, %v1795_v48  ;;  %v1959_v48 = vld [vmem:[%s6746_s5 + $0x148] sm:$0xff] }
 0x2ca   : > { %4533 = vmatpush3.bf16.msra.mxu1 %v4532_v50 }
 0x2cb   : > { %4534 = vmatprep.subr.bf16.mxu1 %v4805_v59 }
 0x2cd   : > { %4140 = vmatmul.mubr.f32.vlgmr.msra.gmra.mrb[8].mxu1 %v1918_v51 }
 0x2ce   : > { %4142 = vmatprep.mubr.msk.f32.mxu1 %vm4806_vm1, %v4804_v0 }
 0x2d1   : > { %4143 = vmatmul.mubr.f32.gmra.mrb[10].mxu1 %v1919_v52  ;;  %v1812_v52 = vld [vmem:[%s6745_s4 + $0x38] sm:$0xff] }
 0x2d2   : > { %4145 = vmatprep.mubr.msk.f32.mxu1 %vm4806_vm1, %v4804_v0 }
 0x2d5   : > { %4146 = vmatmul.mubr.f32.gmra.mrb[12].mxu1 %v1920_v53  ;;  %v1960_v53 = vld [vmem:[%s6746_s5 + $0x150] sm:$0xff] }
 0x2d6   : > { %4148 = vmatprep.mubr.msk.f32.mxu1 %vm4806_vm1, %v4804_v0 }
 0x2d9   : > { %4149 = vmatmul.mubr.f32.gmra.mrb[14].mxu1 %v1921_v54 }
 0x2da   : > { %4151 = vmatprep.mubr.msk.f32.mxu1 %vm4806_vm1, %v4804_v0 }
 0x2dd   : > { %4152 = vmatmul.mubr.f32.gmra.mrb[16].mxu1 %v1922_v55  ;;  %v1811_v55 = vld [vmem:[%s6745_s4 + $0x30] sm:$0xff] }
 0x2de   : > { %4154 = vmatprep.mubr.msk.f32.mxu1 %vm4806_vm1, %v4804_v0 }
 0x2e1   : > { %4155 = vmatmul.mubr.f32.gmra.mrb[18].mxu1 %v1923_v56  ;;  %v1961_v56 = vld [vmem:[%s6746_s5 + $0x158] sm:$0xff] }
 0x2e2   : > { %4157 = vmatprep.mubr.msk.f32.mxu1 %vm4806_vm1, %v4804_v0 }
 0x2e5   : > { %4158 = vmatmul.mubr.f32.gmra.mrb[20].mxu1 %v1924_v57 }
 0x2e6   : > { %4160 = vmatprep.mubr.msk.f32.mxu1 %vm4806_vm1, %v4804_v0 }
 0x2e9   : > { %4161 = vmatmul.mubr.f32.gmra.mrb[22].mxu1 %v1925_v60  ;;  %v1963_v60 = vld [vmem:[%s6746_s5 + $0x168] sm:$0xff] }
 0x2ea   : > { %4163 = vmatprep.mubr.msk.f32.mxu1 %vm4806_vm1, %v4804_v0 }
 0x2ed   : > { %4164 = vmatmul.mubr.f32.gmra.mrb[24].mxu1 %v1926_v61  ;;  %v1964_v61 = vld [vmem:[%s6746_s5 + $0x170] sm:$0xff] }
 0x2ee   : > { %4166 = vmatprep.mubr.msk.f32.mxu1 %vm4806_vm1, %v4804_v0 }
 0x2f1   : > { %4167 = vmatmul.mubr.f32.gmra.mrb[26].mxu1 %v1927_v62  ;;  %v1965_v62 = vld [vmem:[%s6746_s5 + $0x178] sm:$0xff] }
 0x2f2   : > { %4169 = vmatprep.mubr.msk.f32.mxu1 %vm4806_vm1, %v4804_v0 }
 0x2f5   : > { %4170 = vmatmul.mubr.f32.gmra.mrb[28].mxu1 %v1928_v63  ;;  %v1966_v63 = vld [vmem:[%s6746_s5 + $0x180] sm:$0xff] }
 0x2f6   : > { %4172 = vmatprep.mubr.msk.f32.mxu1 %vm4806_vm1, %v4804_v0 }
 0x2f9   : > { %4173 = vmatmul.mubr.f32.gmra.mrb[30].mxu1 %v1929_v1  ;;  %v1967_v1 = vld [vmem:[%s6746_s5 + $0x188] sm:$0xff] }
 0x2fa   : > { %4175 = vmatprep.mubr.msk.f32.mxu1 %vm4806_vm1, %v4804_v0 }
 0x2fd   : > { %4176 = vmatmul.mubr.f32.gmra.mrb[32].mxu1 %v1930_v2  ;;  %v1968_v2 = vld [vmem:[%s6746_s5 + $0x190] sm:$0xff] }
 0x2fe   : > { %4178 = vmatprep.mubr.msk.f32.mxu1 %vm4806_vm1, %v4804_v0 }
 0x301   : > { %4179 = vmatmul.mubr.f32.gmra.mrb[34].mxu1 %v1931_v3  ;;  %v1969_v3 = vld [vmem:[%s6746_s5 + $0x198] sm:$0xff] }
 0x302   : > { %4181 = vmatprep.mubr.msk.f32.mxu1 %vm4806_vm1, %v4804_v0 }
 0x305   : > { %4182 = vmatmul.mubr.f32.gmra.mrb[36].mxu1 %v1932_v4  ;;  %v1970_v4 = vld [vmem:[%s6746_s5 + $0x1a0] sm:$0xff] }
 0x306   : > { %4184 = vmatprep.mubr.msk.f32.mxu1 %vm4806_vm1, %v4804_v0 }
 0x309   : > { %4185 = vmatmul.mubr.f32.gmra.mrb[38].mxu1 %v1933_v5  ;;  %v1977_v5 = vld [vmem:[%s6747_s6] sm:$0xff] }
 0x30a   : > { %4187 = vmatprep.mubr.msk.f32.mxu1 %vm4806_vm1, %v4804_v0 }
 0x30d   : > { %4188 = vmatmul.mubr.f32.gmra.mrb[40].mxu1 %v1934_v6  ;;  %v1971_v6 = vld [vmem:[%s6746_s5 + $0x1a8] sm:$0xff] }
 0x30e   : > { %4190 = vmatprep.mubr.msk.f32.mxu1 %vm4806_vm1, %v4804_v0 }
 0x311   : > { %4191 = vmatmul.mubr.f32.gmra.mrb[42].mxu1 %v1935_v7 }
 0x312   : > { %4193 = vmatprep.mubr.msk.f32.mxu1 %vm4806_vm1, %v4804_v0 }
 0x315   : > { %4194 = vmatmul.mubr.f32.gmra.mrb[44].mxu1 %v1936_v8 }
 0x316   : > { %4196 = vmatprep.mubr.msk.f32.mxu1 %vm4806_vm1, %v4804_v0 }
 0x319   : > { %4197 = vmatmul.mubr.f32.gmra.mrb[46].mxu1 %v1937_v9 }
 0x31a   : > { %4199 = vmatprep.mubr.msk.f32.mxu1 %vm4806_vm1, %v4804_v0 }
 0x31d   : > { %4200 = vmatmul.mubr.f32.gmra.mrb[48].mxu1 %v1938_v10  ;;  %v1978_v10 = vld [vmem:[%s6747_s6 + $0x8] sm:$0xff] }
 0x31e   : > { %4202 = vmatprep.mubr.msk.f32.mxu1 %vm4806_vm1, %v4804_v0 }
 0x321   : > { %4203 = vmatmul.mubr.f32.gmra.mrb[50].mxu1 %v1939_v11  ;;  %v1972_v11 = vld [vmem:[%s6746_s5 + $0x1b0] sm:$0xff] }
 0x322   : > { %4205 = vmatprep.mubr.msk.f32.mxu1 %vm4806_vm1, %v4804_v0 }
 0x325   : > { %4206 = vmatmul.mubr.f32.gmra.mrb[52].mxu1 %v1940_v12 }
 0x326   : > { %4208 = vmatprep.mubr.msk.f32.mxu1 %vm4806_vm1, %v4804_v0 }
 0x329   : > { %4209 = vmatmul.mubr.f32.gmra.mrb[54].mxu1 %v1941_v13 }
 0x32a   : > { %4211 = vmatprep.mubr.msk.f32.mxu1 %vm4806_vm1, %v4804_v0 }
 0x32d   : > { %4212 = vmatmul.mubr.f32.gmra.mrb[56].mxu1 %v1942_v14 }
 0x32e   : > { %4214 = vmatprep.mubr.msk.f32.mxu1 %vm4806_vm1, %v4804_v0 }
 0x331   : > { %4215 = vmatmul.mubr.f32.gmra.mrb[58].mxu1 %v1943_v15  ;;  %v1979_v15 = vld [vmem:[%s6747_s6 + $0x10] sm:$0xff] }
 0x332   : > { %4217 = vmatprep.mubr.msk.f32.mxu1 %vm4806_vm1, %v4804_v0 }
 0x335   : > { %4218 = vmatmul.mubr.f32.gmra.mrb[60].mxu1 %v1944_v16  ;;  %v1973_v16 = vld [vmem:[%s6746_s5 + $0x1b8] sm:$0xff] }
 0x336   : > { %4220 = vmatprep.mubr.msk.f32.mxu1 %vm4806_vm1, %v4804_v0 }
 0x339   : > { %4221 = vmatmul.mubr.f32.gmra.mrb[62].mxu1 %v1945_v17 }
 0x33a   : > { %4223 = vmatprep.mubr.msk.f32.mxu1 %vm4806_vm1, %v4804_v0 }
 0x33d   : > { %4224 = vmatmul.mubr.f32.gmra.mrb[64].mxu1 %v1946_v18 }
 0x33e   : > { %4226 = vmatprep.mubr.msk.f32.mxu1 %vm4806_vm1, %v4804_v0 }
 0x341   : > { %4227 = vmatmul.mubr.f32.gmra.mrb[66].mxu1 %v1947_v19 }
 0x342   : > { %4229 = vmatprep.mubr.msk.f32.mxu1 %vm4806_vm1, %v4804_v0 }
 0x345   : > { %4230 = vmatmul.mubr.f32.gmra.mrb[68].mxu1 %v1948_v20  ;;  %v1980_v20 = vld [vmem:[%s6747_s6 + $0x18] sm:$0xff] }
 0x346   : > { %4232 = vmatprep.mubr.msk.f32.mxu1 %vm4806_vm1, %v4804_v0 }
 0x349   : > { %4233 = vmatmul.mubr.f32.gmra.mrb[70].mxu1 %v1949_v21  ;;  %v1974_v21 = vld [vmem:[%s6746_s5 + $0x1c0] sm:$0xff] }
 0x34a   : > { %4235 = vmatprep.mubr.msk.f32.mxu1 %vm4806_vm1, %v4804_v0 }
 0x34d   : > { %4236 = vmatmul.mubr.f32.gmra.mrb[72].mxu1 %v1950_v22 }
 0x34e   : > { %4238 = vmatprep.mubr.msk.f32.mxu1 %vm4806_vm1, %v4804_v0 }
 0x351   : > { %4239 = vmatmul.mubr.f32.gmra.mrb[74].mxu1 %v1951_v23 }
 0x352   : > { %4241 = vmatprep.mubr.msk.f32.mxu1 %vm4806_vm1, %v4804_v0 }
 0x355   : > { %4242 = vmatmul.mubr.f32.gmra.mrb[76].mxu1 %v1952_v24 }
 0x356   : > { %4244 = vmatprep.mubr.msk.f32.mxu1 %vm4806_vm1, %v4804_v0 }
 0x359   : > { %4245 = vmatmul.mubr.f32.gmra.mrb[78].mxu1 %v1953_v25  ;;  %v1981_v25 = vld [vmem:[%s6747_s6 + $0x20] sm:$0xff] }
 0x35a   : > { %4247 = vmatprep.mubr.msk.f32.mxu1 %vm4806_vm1, %v4804_v0 }
 0x35d   : > { %4248 = vmatmul.mubr.f32.gmra.mrb[80].mxu1 %v1954_v26  ;;  %v1975_v26 = vld [vmem:[%s6746_s5 + $0x1c8] sm:$0xff] }
 0x35e   : > { %4250 = vmatprep.mubr.msk.f32.mxu1 %vm4806_vm1, %v4804_v0 }
 0x361   : > { %v4097_v30 = vpop.f32.mrb[0].mxu1  ;;  %4251 = vmatmul.mubr.f32.gmra.mrb[82].mxu1 %v1955_v27 }
 0x362   : > { %v1885_v31 = vadd.f32 %v4097_v30, %v1806_v28  ;;  %4253 = vmatprep.mubr.msk.f32.mxu1 %vm4806_vm1, %v4804_v0  ;;  %v1879_v32 = vpop.f32.mrb[1].mxu1  ;;  %v1982_v30 = vld [vmem:[%s6747_s6 + $0x28] sm:$0xff] }
 0x363   : > { %v1880_v34 = vadd.f32 %v1879_v32, %v1805_v29 }
 0x364   : > { %2412 = vperm.xlu1 %4743, %v1885_v31   ;;  %v1976_v31 = vld [vmem:[%s6746_s5 + $0x1d0] sm:$0xff] }
 0x365   : > { %v4100_v36 = vpop.f32.mrb[2].mxu1  ;;  %4254 = vmatmul.mubr.f32.gmra.mrb[84].mxu1 %v1956_v33  ;;  %2407 = vperm.xlu0 %4744, %v1880_v34  }
 0x366   : > { %v1895_v38 = vadd.f32 %v4100_v36, %v1808_v35  ;;  %4256 = vmatprep.mubr.msk.f32.mxu1 %vm4806_vm1, %v4804_v0  ;;  %v1889_v39 = vpop.f32.mrb[3].mxu1  ;;  %v1983_v35 = vld [vmem:[%s6747_s6 + $0x30] sm:$0xff] }
 0x367   : > { %v1890_v41 = vadd.f32 %v1889_v39, %v1807_v37  ;;  %v1984_v39 = vld [vmem:[%s6747_s6 + $0x38] sm:$0xff] }
 0x368   : > { %2422 = vperm.xlu1 %4743, %v1895_v38  }
 0x369   : > { %4257 = vmatmul.mubr.f32.gmra.mrb[86].mxu1 %v1957_v40  ;;  %v4103_v43 = vpop.f32.mrb[4].mxu1 }
 0x36a   : > { %4259 = vmatprep.mubr.msk.f32.mxu1 %vm4806_vm1, %v4804_v0  ;;  %v1899_v45 = vpop.f32.mrb[5].mxu1  ;;  %v1905_v46 = vadd.f32 %v4103_v43, %v1810_v42  ;;  %v1985_v43 = vld [vmem:[%s6747_s6 + $0x40] sm:$0xff] }
 0x36b   : > { %v1900_v51 = vadd.f32 %v1899_v45, %v1809_v47  ;;  %v1986_v47 = vld [vmem:[%s6747_s6 + $0x48] sm:$0xff] }
 0x36c   : > { %2417 = vperm.xlu1 %4743, %v1890_v41  }
 0x36d   : > { %4260 = vmatmul.mubr.f32.gmra.mrb[88].mxu1 %v1958_v44 }
 0x36e   : > { %4262 = vmatprep.mubr.msk.f32.mxu1 %vm4806_vm1, %v4804_v0  ;;  %v4106_v49 = vpop.f32.mrb[6].mxu1 }
 0x36f   : > { %v1909_v50 = vpop.f32.mrb[7].mxu1  ;;  %v1915_v54 = vadd.f32 %v4106_v49, %v1812_v52 }
 0x370   : > { %2432 = vperm.xlu1 %4743, %v1905_v46   ;;  %v1910_v57 = vadd.f32 %v1909_v50, %v1811_v55  ;;  %v1988_v55 = vld [vmem:[%s6747_s6 + $0x58] sm:$0xff] }
 0x371   : > { %4263 = vmatmul.mubr.f32.gmra.mrb[90].mxu1 %v1959_v48 }
 0x372   : > { %4265 = vmatprep.mubr.msk.f32.mxu1 %vm4806_vm1, %v4804_v0 }
 0x374   : > { %2427 = vperm.xlu1 %4743, %v1900_v51   ;;  %v1987_v51 = vld [vmem:[%s6747_s6 + $0x50] sm:$0xff] }
 0x375   : > { %4266 = vmatmul.mubr.f32.gmra.mrb[92].mxu1 %v1960_v53 }
 0x376   : > { %4268 = vmatprep.mubr.msk.f32.mxu1 %vm4806_vm1, %v4804_v0 }
 0x378   : > { %2442 = vperm.xlu1 %4743, %v1915_v54  }
 0x379   : > { %4269 = vmatmul.mubr.f32.gmra.mrb[94].mxu1 %v1961_v56 }
 0x37a   : > { %4271 = vmatprep.mubr.msk.f32.mxu1 %vm4806_vm1, %v4804_v0 }
 0x37c   : > { %2437 = vperm.xlu1 %4743, %v1910_v57  }
 0x37d   : > { %4272 = vmatmul.mubr.f32.gmra.mrb[96].mxu1 %v1962_v58 }
 0x37e   : > { %4274 = vmatprep.mubr.msk.f32.mxu1 %vm4806_vm1, %v4804_v0 }
 0x381   : > { %4275 = vmatmul.mubr.f32.gmra.mrb[98].mxu1 %v1963_v60  ;;  %v1989_v60 = vld [vmem:[%s6747_s6 + $0x60] sm:$0xff] }
 0x382   : > { %4277 = vmatprep.mubr.msk.f32.mxu1 %vm4806_vm1, %v4804_v0 }
 0x385   : > { %4278 = vmatmul.mubr.f32.gmra.mrb[100].mxu1 %v1964_v61 }
 0x386   : > { %4280 = vmatprep.mubr.msk.f32.mxu1 %vm4806_vm1, %v4804_v0 }
 0x389   : > { %4281 = vmatmul.mubr.f32.gmra.mrb[102].mxu1 %v1965_v62 }
 0x38a   : > { %4283 = vmatprep.mubr.msk.f32.mxu1 %vm4806_vm1, %v4804_v0 }
 0x38d   : > { %4284 = vmatmul.mubr.f32.gmra.mrb[104].mxu1 %v1966_v63 }
 0x38e   : > { %4286 = vmatprep.mubr.msk.f32.mxu1 %vm4806_vm1, %v4804_v0 }
 0x391   : > { %4287 = vmatmul.mubr.f32.gmra.mrb[106].mxu1 %v1967_v1  ;;  %v1990_v1 = vld [vmem:[%s6747_s6 + $0x68] sm:$0xff] }
 0x392   : > { %4289 = vmatprep.mubr.msk.f32.mxu1 %vm4806_vm1, %v4804_v0 }
 0x395   : > { %4290 = vmatmul.mubr.f32.gmra.mrb[108].mxu1 %v1968_v2 }
 0x396   : > { %4292 = vmatprep.mubr.msk.f32.mxu1 %vm4806_vm1, %v4804_v0 }
 0x399   : > { %4293 = vmatmul.mubr.f32.gmra.mrb[110].mxu1 %v1969_v3 }
 0x39a   : > { %4295 = vmatprep.mubr.msk.f32.mxu1 %vm4806_vm1, %v4804_v0 }
 0x39d   : > { %4296 = vmatmul.mubr.f32.gmra.mrb[112].mxu1 %v1970_v4 }
 0x39e   : > { %4298 = vmatprep.mubr.msk.f32.mxu1 %vm4806_vm1, %v4804_v0 }
 0x3a0   : > { %v2102_v7 = vpop.f32.mrb[8].mxu1 }
 0x3a1   : > { %v2103_v8 = vadd.f32 %v2102_v7, %v1977_v5  ;;  %v4141_v9 = vpop.f32.mrb[9].mxu1  ;;  %4299 = vmatmul.mubr.f32.gmra.mrb[114].mxu1 %v1971_v6  ;;  %v1991_v5 = vld [vmem:[%s6747_s6 + $0x70] sm:$0xff] }
 0x3a2   : > { %4301 = vmatprep.mubr.msk.f32.mxu1 %vm4806_vm1, %v4804_v0  ;;  %v1992_v9 = vld [vmem:[%s6747_s6 + $0x78] sm:$0xff] }
 0x3a3   : > { %2620 = vperm.xlu1 %4743, %v2103_v8  }
 0x3a4   : > { %v2107_v12 = vpop.f32.mrb[10].mxu1 }
 0x3a5   : > { %v2108_v13 = vadd.f32 %v2107_v12, %v1978_v10  ;;  %v4144_v14 = vpop.f32.mrb[11].mxu1  ;;  %4302 = vmatmul.mubr.f32.gmra.mrb[116].mxu1 %v1972_v11 }
 0x3a6   : > { %4304 = vmatprep.mubr.msk.f32.mxu1 %vm4806_vm1, %v4804_v0 }
 0x3a7   : > { %2625 = vperm.xlu0 %4744, %v2108_v13   ;;  %v1993_v13 = vld [vmem:[%s6747_s6 + $0x80] sm:$0xff] }
 0x3a8   : > { %v2112_v17 = vpop.f32.mrb[12].mxu1 }
 0x3a9   : > { %v2113_v18 = vadd.f32 %v2112_v17, %v1979_v15  ;;  %v4147_v19 = vpop.f32.mrb[13].mxu1  ;;  %4305 = vmatmul.mubr.f32.gmra.mrb[118].mxu1 %v1973_v16  ;;  %v2398_v17 = vld [vmem:[%s6750_s9 + $0x8] sm:$0xff] }
 0x3aa   : > { %4307 = vmatprep.mubr.msk.f32.mxu1 %vm4806_vm1, %v4804_v0  ;;  %v2397_v19 = vld [vmem:[%s6750_s9] sm:$0xff] }
 0x3ab   : > { %2630 = vperm.xlu1 %4743, %v2113_v18   ;;  %v1994_v18 = vld [vmem:[%s6747_s6 + $0x88] sm:$0xff] }
 0x3ac   : > { %v2117_v22 = vpop.f32.mrb[14].mxu1 }
 0x3ad   : > { %v2118_v23 = vadd.f32 %v2117_v22, %v1980_v20  ;;  %v4150_v24 = vpop.f32.mrb[15].mxu1  ;;  %4308 = vmatmul.mubr.f32.gmra.mrb[120].mxu1 %v1974_v21 }
 0x3ae   : > { %4310 = vmatprep.mubr.msk.f32.mxu1 %vm4806_vm1, %v4804_v0 }
 0x3af   : > { %2635 = vperm.xlu0 %4744, %v2118_v23  }
 0x3b0   : > { %v2122_v27 = vpop.f32.mrb[16].mxu1 }
 0x3b1   : > { %v2123_v28 = vadd.f32 %v2122_v27, %v1981_v25  ;;  %v4153_v29 = vpop.f32.mrb[17].mxu1  ;;  %4311 = vmatmul.mubr.f32.gmra.mrb[122].mxu1 %v1975_v26  ;;  %v1995_v27 = vld [vmem:[%s6747_s6 + $0x90] sm:$0xff] }
 0x3b2   : > { %4313 = vmatprep.mubr.msk.f32.mxu1 %vm4806_vm1, %v4804_v0 }
 0x3b3   : > { %2640 = vperm.xlu1 %4743, %v2123_v28   ;;  %v2400_v28 = vld [vmem:[%s6750_s9 + $0x18] sm:$0xff] }
 0x3b4   : > { %v2127_v32 = vpop.f32.mrb[18].mxu1 }
 0x3b5   : > { %v2128_v33 = vadd.f32 %v2127_v32, %v1982_v30  ;;  %v4156_v34 = vpop.f32.mrb[19].mxu1  ;;  %4314 = vmatmul.mubr.f32.gmra.mrb[124].mxu1 %v1976_v31 }
 0x3b6   : > { %4332 = vmatprep.mubr.msk.f32.mxu1 %vm4806_vm1, %v4804_v0  ;;  %v2399_v34 = vld [vmem:[%s6750_s9 + $0x10] sm:$0xff] }
 0x3b7   : > { %2645 = vperm.xlu0 %4744, %v2128_v33  }
 0x3b8   : > { %v2132_v36 = vpop.f32.mrb[20].mxu1 }
 0x3b9   : > { %v2133_v37 = vadd.f32 %v2132_v36, %v1983_v35  ;;  %v4159_v38 = vpop.f32.mrb[21].mxu1  ;;  %v1996_v36 = vld [vmem:[%s6747_s6 + $0x98] sm:$0xff] }
 0x3bb   : > { %2650 = vperm.xlu1 %4743, %v2133_v37  }
 0x3bc   : > { %v2137_v40 = vpop.f32.mrb[22].mxu1 }
 0x3bd   : > { %v2138_v41 = vadd.f32 %v2137_v40, %v1984_v39  ;;  %v4162_v42 = vpop.f32.mrb[23].mxu1 }
 0x3bf   : > { %2655 = vperm.xlu0 %4744, %v2138_v41  }
 0x3c0   : > { %v2142_v44 = vpop.f32.mrb[24].mxu1 }
 0x3c1   : > { %v2143_v45 = vadd.f32 %v2142_v44, %v1985_v43  ;;  %v4165_v46 = vpop.f32.mrb[25].mxu1  ;;  %v1997_v43 = vld [vmem:[%s6747_s6 + $0xa0] sm:$0xff]  ;;  %v2402_v44 = vld [vmem:[%s6750_s9 + $0x28] sm:$0xff] }
 0x3c3   : > { %2660 = vperm.xlu1 %4743, %v2143_v45  }
 0x3c4   : > { %v2147_v48 = vpop.f32.mrb[26].mxu1 }
 0x3c5   : > { %v2148_v49 = vadd.f32 %v2147_v48, %v1986_v47  ;;  %v4168_v50 = vpop.f32.mrb[27].mxu1 }
 0x3c7   : > { %2665 = vperm.xlu0 %4744, %v2148_v49   ;;  %v2401_v49 = vld [vmem:[%s6750_s9 + $0x20] sm:$0xff] }
 0x3c8   : > { %v2152_v52 = vpop.f32.mrb[28].mxu1 }
 0x3c9   : > { %v2153_v53 = vadd.f32 %v2152_v52, %v1987_v51  ;;  %v4171_v54 = vpop.f32.mrb[29].mxu1  ;;  %v1998_v51 = vld [vmem:[%s6747_s6 + $0xa8] sm:$0xff] }
 0x3cb   : > { %2670 = vperm.xlu1 %4743, %v2153_v53  }
 0x3cc   : > { %v2157_v56 = vpop.f32.mrb[30].mxu1 }
 0x3cd   : > { %v2158_v57 = vadd.f32 %v2157_v56, %v1988_v55  ;;  %v4174_v58 = vpop.f32.mrb[31].mxu1 }
 0x3ce   : > { %v1999_v58 = vld [vmem:[%s6747_s6 + $0xb0] sm:$0xff] }
 0x3cf   : > { %2675 = vperm.xlu0 %4744, %v2158_v57  }
 0x3d0   : > { %v2162_v61 = vpop.f32.mrb[32].mxu1 }
 0x3d1   : > { %v2163_v62 = vadd.f32 %v2162_v61, %v1989_v60  ;;  %v4177_v63 = vpop.f32.mrb[33].mxu1  ;;  %v2404_v60 = vld [vmem:[%s6750_s9 + $0x38] sm:$0xff] }
 0x3d3   : > { %2680 = vperm.xlu1 %4743, %v2163_v62  }
 0x3d4   : > { %v2167_v2 = vpop.f32.mrb[34].mxu1 }
 0x3d5   : > { %v2168_v3 = vadd.f32 %v2167_v2, %v1990_v1  ;;  %v4180_v4 = vpop.f32.mrb[35].mxu1  ;;  %v2403_v2 = vld [vmem:[%s6750_s9 + $0x30] sm:$0xff] }
 0x3d6   : > { %v2000_v4 = vld [vmem:[%s6747_s6 + $0xb8] sm:$0xff] }
 0x3d7   : > { %2685 = vperm.xlu0 %4744, %v2168_v3  }
 0x3d8   : > { %v2172_v6 = vpop.f32.mrb[36].mxu1 }
 0x3d9   : > { %v2173_v7 = vadd.f32 %v2172_v6, %v1991_v5  ;;  %v4183_v8 = vpop.f32.mrb[37].mxu1 }
 0x3db   : > { %2690 = vperm.xlu1 %4743, %v2173_v7  }
 0x3dc   : > { %v2177_v10 = vpop.f32.mrb[38].mxu1 }
 0x3dd   : > { %v2178_v11 = vadd.f32 %v2177_v10, %v1992_v9  ;;  %v4186_v12 = vpop.f32.mrb[39].mxu1 }
 0x3df   : > { %2695 = vperm.xlu0 %4744, %v2178_v11   ;;  %v2001_v11 = vld [vmem:[%s6747_s6 + $0xc0] sm:$0xff] }
 0x3e0   : > { %v2182_v14 = vpop.f32.mrb[40].mxu1 }
 0x3e1   : > { %v2183_v15 = vadd.f32 %v2182_v14, %v1993_v13  ;;  %v4189_v16 = vpop.f32.mrb[41].mxu1 }
 0x3e3   : > { %v2413_v20 = vpop.permute.xlu1 %2412  ;;  %2700 = vperm.xlu1 %4743, %v2183_v15   ;;  %v2002_v15 = vld [vmem:[%s6747_s6 + $0xc8] sm:$0xff] }
 0x3e4   : > { %v2446_v21 = vmul.f32 %v2413_v20, %v2398_v17  ;;  %v2187_v22 = vpop.f32.mrb[42].mxu1  ;;  %v2408_v23 = vpop.permute.xlu0 %2407 }
 0x3e5   : > { %v2188_v24 = vadd.f32 %v2187_v22, %v1994_v18  ;;  %v4192_v25 = vpop.f32.mrb[43].mxu1  ;;  %v2445_v26 = vmul.f32 %v2408_v23, %v2397_v19  ;;  %v2003_v19 = vld [vmem:[%s6747_s6 + $0xd0] sm:$0xff]  ;;  %v2004_v23 = vld [vmem:[%s6747_s6 + $0xd8] sm:$0xff] }
 0x3e7   : > { %v2423_v29 = vpop.permute.xlu1 %2422  ;;  %2705 = vperm.xlu0 %4744, %v2188_v24   ;;  %v4535_v30 = vpack.c.bf16 %v2446_v21, %v2445_v26 }
 0x3e8   : > { %v2192_v31 = vpop.f32.mrb[44].mxu1  ;;  %v2448_v35 = vmul.f32 %v2423_v29, %v2400_v28 }
 0x3e9   : > { %v2193_v32 = vadd.f32 %v2192_v31, %v1995_v27  ;;  %v4195_v33 = vpop.f32.mrb[45].mxu1  ;;  %4536 = vmatpush3.bf16.msra.mxu1 %v4535_v30  ;;  %v2005_v27 = vld [vmem:[%s6747_s6 + $0xe0] sm:$0xff]  ;;  %v2006_v31 = vld [vmem:[%s6747_s6 + $0xe8] sm:$0xff] }
 0x3ea   : > { %4537 = vmatprep.subr.bf16.mxu1 %v4805_v59 }
 0x3eb   : > { %2710 = vperm.xlu1 %4743, %v2193_v32   ;;  %v2418_v37 = vpop.permute.xlu1 %2417 }
 0x3ec   : > { %v2447_v38 = vmul.f32 %v2418_v37, %v2399_v34  ;;  %v2197_v39 = vpop.f32.mrb[46].mxu1 }
 0x3ed   : > { %v2198_v40 = vadd.f32 %v2197_v39, %v1996_v36  ;;  %v4198_v41 = vpop.f32.mrb[47].mxu1  ;;  %v2008_v39 = vld [vmem:[%s6747_s6 + $0xf8] sm:$0xff] }
 0x3ee   : > { %v4538_v42 = vpack.c.bf16 %v2448_v35, %v2447_v38  ;;  %v2007_v35 = vld [vmem:[%s6747_s6 + $0xf0] sm:$0xff] }
 0x3ef   : > { %v2433_v45 = vpop.permute.xlu1 %2432  ;;  %2715 = vperm.xlu0 %4744, %v2198_v40  }
 0x3f0   : > { %v2202_v46 = vpop.f32.mrb[48].mxu1  ;;  %4539 = vmatpush3.bf16.msra.mxu1 %v4538_v42  ;;  %v2450_v50 = vmul.f32 %v2433_v45, %v2402_v44 }
 0x3f1   : > { %v2203_v47 = vadd.f32 %v2202_v46, %v1997_v43  ;;  %v4201_v48 = vpop.f32.mrb[49].mxu1  ;;  %4540 = vmatprep.subr.bf16.mxu1 %v4805_v59  ;;  %v2009_v43 = vld [vmem:[%s6747_s6 + $0x100] sm:$0xff] }
 0x3f3   : > { %2720 = vperm.xlu1 %4743, %v2203_v47   ;;  %v2428_v52 = vpop.permute.xlu1 %2427  ;;  %v2010_v47 = vld [vmem:[%s6747_s6 + $0x108] sm:$0xff] }
 0x3f4   : > { %v2449_v53 = vmul.f32 %v2428_v52, %v2401_v49  ;;  %v2207_v54 = vpop.f32.mrb[50].mxu1 }
 0x3f5   : > { %v2208_v55 = vadd.f32 %v2207_v54, %v1998_v51  ;;  %v4204_v56 = vpop.f32.mrb[51].mxu1  ;;  %v2011_v51 = vld [vmem:[%s6747_s6 + $0x110] sm:$0xff] }
 0x3f6   : > { %v4541_v57 = vpack.c.bf16 %v2450_v50, %v2449_v53  ;;  %v2396_v56 = vld [vmem:[%s6748_s7] sm:$0xff] }
 0x3f7   : > { %v2443_v61 = vpop.permute.xlu1 %2442  ;;  %2725 = vperm.xlu0 %4744, %v2208_v55   ;;  %v2012_v55 = vld [vmem:[%s6747_s6 + $0x118] sm:$0xff] }
 0x3f8   : > { %v2212_v62 = vpop.f32.mrb[52].mxu1  ;;  %4542 = vmatpush3.bf16.msra.mxu1 %v4541_v57  ;;  %v2452_v3 = vmul.f32 %v2443_v61, %v2404_v60  ;;  %v2013_v61 = vld [vmem:[%s6747_s6 + $0x120] sm:$0xff] }
 0x3f9   : > { %v2213_v63 = vadd.f32 %v2212_v62, %v1999_v58  ;;  %v4207_v1 = vpop.f32.mrb[53].mxu1  ;;  %4543 = vmatprep.subr.bf16.mxu1 %v4805_v59 }
 0x3fb   : > { %2730 = vperm.xlu1 %4743, %v2213_v63   ;;  %v2438_v5 = vpop.permute.xlu1 %2437 }
 0x3fc   : > { %v2451_v6 = vmul.f32 %v2438_v5, %v2403_v2  ;;  %v2217_v7 = vpop.f32.mrb[54].mxu1  ;;  %v2014_v2 = vld [vmem:[%s6747_s6 + $0x128] sm:$0xff] }
 0x3fd   : > { %v2218_v8 = vadd.f32 %v2217_v7, %v2000_v4  ;;  %v4210_v9 = vpop.f32.mrb[55].mxu1 }
 0x3fe   : > { %v4544_v10 = vpack.c.bf16 %v2452_v3, %v2451_v6  ;;  %v2015_v6 = vld [vmem:[%s6747_s6 + $0x130] sm:$0xff] }
 0x3ff   : > { %2735 = vperm.xlu0 %4744, %v2218_v8  }
 0x400   : > { %v2222_v12 = vpop.f32.mrb[56].mxu1  ;;  %4545 = vmatpush3.bf16.msra.mxu1 %v4544_v10  ;;  %v2016_v10 = vld [vmem:[%s6747_s6 + $0x138] sm:$0xff] }
 0x401   : > { %v2223_v13 = vadd.f32 %v2222_v12, %v2001_v11  ;;  %v4213_v14 = vpop.f32.mrb[57].mxu1  ;;  %4578 = vmatprep.subr.bf16.mxu1 %v4805_v59 }
 0x402   : > { %v2017_v14 = vld [vmem:[%s6747_s6 + $0x140] sm:$0xff] }
 0x403   : > { %2740 = vperm.xlu1 %4743, %v2223_v13   ;;  %4333 = vmatmul.mubr.msk.f32.vlgmr.msra.gmra.mrb[126].mxu1 %vm2453_vm2, %v2396_v56 }
 0x404   : > { %v2227_v16 = vpop.f32.mrb[58].mxu1 }
 0x405   : > { %v2228_v17 = vadd.f32 %v2227_v16, %v2002_v15  ;;  %v4216_v18 = vpop.f32.mrb[59].mxu1 }
 0x406   : > { %v2018_v18 = vld [vmem:[%s6747_s6 + $0x148] sm:$0xff] }
 0x407   : > { %2745 = vperm.xlu0 %4744, %v2228_v17  }
 0x408   : > { %v2232_v20 = vpop.f32.mrb[60].mxu1 }
 0x409   : > { %v2233_v21 = vadd.f32 %v2232_v20, %v2003_v19  ;;  %v4219_v22 = vpop.f32.mrb[61].mxu1 }
 0x40b   : > { %2750 = vperm.xlu1 %4743, %v2233_v21  }
 0x40c   : > { %v2237_v24 = vpop.f32.mrb[62].mxu1 }
 0x40d   : > { %v2238_v25 = vadd.f32 %v2237_v24, %v2004_v23  ;;  %v4222_v26 = vpop.f32.mrb[63].mxu1  ;;  %v2019_v24 = vld [vmem:[%s6747_s6 + $0x150] sm:$0xff] }
 0x40f   : > { %2755 = vperm.xlu0 %4744, %v2238_v25  }
 0x410   : > { %v2242_v28 = vpop.f32.mrb[64].mxu1 }
 0x411   : > { %v2243_v29 = vadd.f32 %v2242_v28, %v2005_v27  ;;  %v4225_v30 = vpop.f32.mrb[65].mxu1 }
 0x412   : > { %v2020_v30 = vld [vmem:[%s6747_s6 + $0x158] sm:$0xff] }
 0x413   : > { %2760 = vperm.xlu1 %4743, %v2243_v29  }
 0x414   : > { %v2247_v32 = vpop.f32.mrb[66].mxu1 }
 0x415   : > { %v2248_v33 = vadd.f32 %v2247_v32, %v2006_v31  ;;  %v4228_v34 = vpop.f32.mrb[67].mxu1 }
 0x417   : > { %2765 = vperm.xlu0 %4744, %v2248_v33  }
 0x418   : > { %v2252_v36 = vpop.f32.mrb[68].mxu1 }
 0x419   : > { %v2253_v37 = vadd.f32 %v2252_v36, %v2007_v35  ;;  %v4231_v38 = vpop.f32.mrb[69].mxu1  ;;  %v2021_v36 = vld [vmem:[%s6747_s6 + $0x160] sm:$0xff] }
 0x41b   : > { %2770 = vperm.xlu1 %4743, %v2253_v37  }
 0x41c   : > { %v2257_v40 = vpop.f32.mrb[70].mxu1 }
 0x41d   : > { %v2258_v41 = vadd.f32 %v2257_v40, %v2008_v39  ;;  %v4234_v42 = vpop.f32.mrb[71].mxu1 }
 0x41e   : > { %v2022_v42 = vld [vmem:[%s6747_s6 + $0x168] sm:$0xff] }
 0x41f   : > { %2775 = vperm.xlu0 %4744, %v2258_v41  }
 0x420   : > { %v2262_v44 = vpop.f32.mrb[72].mxu1 }
 0x421   : > { %v2263_v45 = vadd.f32 %v2262_v44, %v2009_v43  ;;  %v4237_v46 = vpop.f32.mrb[73].mxu1 }
 0x422   : > { %v6249_v19 = vpop.permute.xlu1 %2620 }
 0x423   : > { %2780 = vperm.xlu1 %4743, %v2263_v45  }
 0x424   : > { %v2267_v48 = vpop.f32.mrb[74].mxu1 }
 0x425   : > { %v2268_v49 = vadd.f32 %v2267_v48, %v2010_v47  ;;  %v4240_v50 = vpop.f32.mrb[75].mxu1  ;;  %v2023_v48 = vld [vmem:[%s6747_s6 + $0x170] sm:$0xff] }
 0x426   : > { %v2626_v23 = vpop.permute.xlu0 %2625 }
 0x427   : > { %2785 = vperm.xlu0 %4744, %v2268_v49  }
 0x428   : > { %v2272_v52 = vpop.f32.mrb[76].mxu1 }
 0x429   : > { %v2273_v53 = vadd.f32 %v2272_v52, %v2011_v51  ;;  %v4243_v54 = vpop.f32.mrb[77].mxu1 }
 0x42a   : > { %v6254_v25 = vpop.permute.xlu1 %2630  ;;  %v2024_v54 = vld [vmem:[%s6747_s6 + $0x178] sm:$0xff] }
 0x42b   : > { %2790 = vperm.xlu1 %4743, %v2273_v53  }
 0x42c   : > { %v2277_v57 = vpop.f32.mrb[78].mxu1 }
 0x42d   : > { %v2278_v58 = vadd.f32 %v2277_v57, %v2012_v55  ;;  %v4246_v60 = vpop.f32.mrb[79].mxu1 }
 0x42e   : > { %v6256_v29 = vpop.permute.xlu0 %2635 }
 0x42f   : > { %2795 = vperm.xlu0 %4744, %v2278_v58  }
 0x430   : > { %v2282_v62 = vpop.f32.mrb[80].mxu1 }
 0x431   : > { %v2283_v63 = vadd.f32 %v2282_v62, %v2013_v61  ;;  %v4249_v1 = vpop.f32.mrb[81].mxu1  ;;  %v2025_v61 = vld [vmem:[%s6747_s6 + $0x180] sm:$0xff] }
 0x432   : > { %v6261_v31 = vpop.permute.xlu1 %2640 }
 0x433   : > { %2800 = vperm.xlu1 %4743, %v2283_v63  }
 0x434   : > { %v2287_v3 = vpop.f32.mrb[82].mxu1 }
 0x435   : > { %v2288_v4 = vadd.f32 %v2287_v3, %v2014_v2  ;;  %v4252_v5 = vpop.f32.mrb[83].mxu1 }
 0x436   : > { %v6263_v35 = vpop.permute.xlu0 %2645  ;;  %v2560_v5 = vld [vmem:[%s6752_s11 + $0x8] sm:$0xff] }
 0x437   : > { %2805 = vperm.xlu0 %4744, %v2288_v4   ;;  %v2026_v4 = vld [vmem:[%s6747_s6 + $0x188] sm:$0xff] }
 0x438   : > { %v2292_v7 = vpop.f32.mrb[84].mxu1 }
 0x439   : > { %v2293_v8 = vadd.f32 %v2292_v7, %v2015_v6  ;;  %v4255_v9 = vpop.f32.mrb[85].mxu1  ;;  %v2575_v6 = vld [vmem:[%s6752_s11 + $0x80] sm:$0xff] }
 0x43a   : > { %v6268_v37 = vpop.permute.xlu1 %2650  ;;  %v2576_v9 = vld [vmem:[%s6752_s11 + $0x88] sm:$0xff] }
 0x43b   : > { %2810 = vperm.xlu1 %4743, %v2293_v8  }
 0x43c   : > { %v2297_v11 = vpop.f32.mrb[86].mxu1 }
 0x43d   : > { %v2298_v12 = vadd.f32 %v2297_v11, %v2016_v10  ;;  %v4258_v13 = vpop.f32.mrb[87].mxu1  ;;  %v2559_v10 = vld [vmem:[%s6752_s11] sm:$0xff] }
 0x43e   : > { %v6270_v41 = vpop.permute.xlu0 %2655  ;;  %v2914_v13 = vmul.f32 %v2626_v23, %v2560_v5  ;;  %v2562_v23 = vld [vmem:[%s6752_s11 + $0x18] sm:$0xff]  ;;  %v2031_v5 = vld [vmem:[%s6747_s6 + $0x1b0] sm:$0xff] }
 0x43f   : > { %2815 = vperm.xlu0 %4744, %v2298_v12  }
 0x440   : > { %v2302_v15 = vpop.f32.mrb[88].mxu1 }
 0x441   : > { %v2303_v16 = vadd.f32 %v2302_v15, %v2017_v14  ;;  %v4261_v17 = vpop.f32.mrb[89].mxu1  ;;  %v2027_v15 = vld [vmem:[%s6747_s6 + $0x190] sm:$0xff] }
 0x442   : > { %v6275_v43 = vpop.permute.xlu1 %2660 }
 0x443   : > { %2820 = vperm.xlu1 %4743, %v2303_v16  }
 0x444   : > { %v2307_v20 = vpop.f32.mrb[90].mxu1 }
 0x445   : > { %v2308_v21 = vadd.f32 %v2307_v20, %v2018_v18  ;;  %v4264_v22 = vpop.f32.mrb[91].mxu1  ;;  %v2913_v18 = vmul.f32 %v6249_v19, %v2559_v10 }
 0x446   : > { %v6277_v47 = vpop.permute.xlu0 %2665 }
 0x447   : > { %2825 = vperm.xlu0 %4744, %v2308_v21  }
 0x448   : > { %v2312_v26 = vpop.f32.mrb[92].mxu1 }
 0x449   : > { %v2313_v27 = vadd.f32 %v2312_v26, %v2019_v24  ;;  %v4267_v28 = vpop.f32.mrb[93].mxu1  ;;  %v4548_v26 = vpack.c.bf16 %v2914_v13, %v2913_v18  ;;  %v2565_v18 = vld [vmem:[%s6752_s11 + $0x30] sm:$0xff] }
 0x44a   : > { %v6282_v49 = vpop.permute.xlu1 %2670  ;;  %v2577_v28 = vld [vmem:[%s6752_s11 + $0x90] sm:$0xff] }
 0x44b   : > { %2830 = vperm.xlu1 %4743, %v2313_v27   ;;  %v2028_v27 = vld [vmem:[%s6747_s6 + $0x198] sm:$0xff] }
 0x44c   : > { %v2317_v32 = vpop.f32.mrb[94].mxu1 }
 0x44d   : > { %v2318_v33 = vadd.f32 %v2317_v32, %v2020_v30  ;;  %v4270_v34 = vpop.f32.mrb[95].mxu1  ;;  %v2578_v32 = vld [vmem:[%s6752_s11 + $0x98] sm:$0xff] }
 0x44e   : > { %v6284_v53 = vpop.permute.xlu0 %2675 }
 0x44f   : > { %2835 = vperm.xlu0 %4744, %v2318_v33   ;;  %v2561_v33 = vld [vmem:[%s6752_s11 + $0x10] sm:$0xff] }
 0x450   : > { %v2322_v38 = vpop.f32.mrb[96].mxu1 }
 0x451   : > { %v2323_v39 = vadd.f32 %v2322_v38, %v2021_v36  ;;  %v4273_v40 = vpop.f32.mrb[97].mxu1  ;;  %v2916_v38 = vmul.f32 %v6256_v29, %v2562_v23  ;;  %v2564_v29 = vld [vmem:[%s6752_s11 + $0x28] sm:$0xff] }
 0x452   : > { %v6289_v55 = vpop.permute.xlu1 %2680  ;;  %v2029_v40 = vld [vmem:[%s6747_s6 + $0x1a0] sm:$0xff] }
 0x453   : > { %2840 = vperm.xlu1 %4743, %v2323_v39  }
 0x454   : > { %v2327_v44 = vpop.f32.mrb[98].mxu1 }
 0x455   : > { %v2328_v45 = vadd.f32 %v2327_v44, %v2022_v42  ;;  %v4276_v46 = vpop.f32.mrb[99].mxu1 }
 0x456   : > { %v6291_v60 = vpop.permute.xlu0 %2685 }
 0x457   : > { %2845 = vperm.xlu0 %4744, %v2328_v45   ;;  %v2915_v45 = vmul.f32 %v6254_v25, %v2561_v33 }
 0x458   : > { %v2332_v50 = vpop.f32.mrb[100].mxu1 }
 0x459   : > { %v2333_v51 = vadd.f32 %v2332_v50, %v2023_v48  ;;  %v4279_v52 = vpop.f32.mrb[101].mxu1 }
 0x45a   : > { %v6296_v62 = vpop.permute.xlu1 %2690  ;;  %v4552_v52 = vpack.c.bf16 %v2916_v38, %v2915_v45  ;;  %v2583_v38 = vld [vmem:[%s6752_s11 + $0xc0] sm:$0xff] }
 0x45b   : > { %2850 = vperm.xlu1 %4743, %v2333_v51  }
 0x45c   : > { %v2337_v56 = vpop.f32.mrb[102].mxu1 }
 0x45d   : > { %v2338_v57 = vadd.f32 %v2337_v56, %v2024_v54  ;;  %v4282_v58 = vpop.f32.mrb[103].mxu1  ;;  %v2030_v54 = vld [vmem:[%s6747_s6 + $0x1a8] sm:$0xff]  ;;  %v2579_v56 = vld [vmem:[%s6752_s11 + $0xa0] sm:$0xff] }
 0x45e   : > { %v6298_v3 = vpop.permute.xlu0 %2695  ;;  %v2580_v58 = vld [vmem:[%s6752_s11 + $0xa8] sm:$0xff] }
 0x45f   : > { %2855 = vperm.xlu0 %4744, %v2338_v57  }
 0x460   : > { %v2342_v63 = vpop.f32.mrb[104].mxu1 }
 0x461   : > { %v2343_v1 = vadd.f32 %v2342_v63, %v2025_v61  ;;  %v4285_v2 = vpop.f32.mrb[105].mxu1  ;;  %v2563_v61 = vld [vmem:[%s6752_s11 + $0x20] sm:$0xff] }
 0x462   : > { %v2701_v7 = vpop.permute.xlu1 %2700  ;;  %v2918_v2 = vmul.f32 %v6263_v35, %v2564_v29  ;;  %v2566_v35 = vld [vmem:[%s6752_s11 + $0x38] sm:$0xff] }
 0x463   : > { %2860 = vperm.xlu1 %4743, %v2343_v1   ;;  %v2929_v16 = vmul.f32 %v2701_v7, %v2575_v6 }
 0x464   : > { %v2347_v8 = vpop.f32.mrb[106].mxu1 }
 0x465   : > { %v2348_v11 = vadd.f32 %v2347_v8, %v2026_v4  ;;  %v4288_v12 = vpop.f32.mrb[107].mxu1  ;;  %v2917_v8 = vmul.f32 %v6261_v31, %v2563_v61  ;;  %v2570_v61 = vld [vmem:[%s6752_s11 + $0x58] sm:$0xff] }
 0x466   : > { %v2706_v14 = vpop.permute.xlu0 %2705 }
 0x467   : > { %v2930_v17 = vmul.f32 %v2706_v14, %v2576_v9  ;;  %2865 = vperm.xlu0 %4744, %v2348_v11   ;;  %v4556_v13 = vpack.c.bf16 %v2918_v2, %v2917_v8  ;;  %v2032_v14 = vld [vmem:[%s6747_s6 + $0x1b8] sm:$0xff]  ;;  %v2569_v2 = vld [vmem:[%s6752_s11 + $0x50] sm:$0xff] }
 0x468   : > { %v2352_v20 = vpop.f32.mrb[108].mxu1  ;;  %v2530_v8 = vld [vmem:[%s6751_s10 + $0x18] sm:$0xff] }
 0x469   : > { %v4546_v21 = vpack.c.bf16 %v2930_v17, %v2929_v16  ;;  %v2353_v22 = vadd.f32 %v2352_v20, %v2027_v15  ;;  %v4291_v24 = vpop.f32.mrb[109].mxu1  ;;  %v2581_v15 = vld [vmem:[%s6752_s11 + $0xb0] sm:$0xff]  ;;  %v2582_v17 = vld [vmem:[%s6752_s11 + $0xb8] sm:$0xff]  ;;  %3833 = vmatprep.mubr.msk.f32.mxu1 %vm2972_vm3, %v2530_v8 }
 0x46a   : > { %v2711_v19 = vpop.permute.xlu1 %2710 }
 0x46b   : > { %2870 = vperm.xlu1 %4743, %v2353_v22   ;;  %4547 = vmatprep.subr.bf16.mxu0 %v4546_v21  ;;  %v2931_v42 = vmul.f32 %v2711_v19, %v2577_v28  ;;  %v2920_v22 = vmul.f32 %v6270_v41, %v2566_v35  ;;  %v2919_v28 = vmul.f32 %v6268_v37, %v2565_v18  ;;  %v2568_v41 = vld [vmem:[%s6752_s11 + $0x48] sm:$0xff] }
 0x46c   : > { %v2357_v30 = vpop.f32.mrb[110].mxu1  ;;  %4549 = vmatpush3.bf16.msra.mxu0 %v4548_v26  ;;  %v2033_v26 = vld [vmem:[%s6747_s6 + $0x1c0] sm:$0xff] }
 0x46d   : > { %v2358_v34 = vadd.f32 %v2357_v30, %v2028_v27  ;;  %v4294_v36 = vpop.f32.mrb[111].mxu1 }
 0x46e   : > { %v2716_v39 = vpop.permute.xlu0 %2715  ;;  %v2034_v36 = vld [vmem:[%s6747_s6 + $0x1c8] sm:$0xff] }
 0x46f   : > { %v2932_v44 = vmul.f32 %v2716_v39, %v2578_v32  ;;  %2875 = vperm.xlu0 %4744, %v2358_v34   ;;  %v4560_v34 = vpack.c.bf16 %v2920_v22, %v2919_v28  ;;  %v2589_v22 = vld [vmem:[%s6752_s11 + $0xf0] sm:$0xff] }
 0x470   : > { %v2362_v46 = vpop.f32.mrb[112].mxu1 }
 0x471   : > { %v4550_v48 = vpack.c.bf16 %v2932_v44, %v2931_v42  ;;  %v2363_v50 = vadd.f32 %v2362_v46, %v2029_v40  ;;  %v4297_v51 = vpop.f32.mrb[113].mxu1  ;;  %v2584_v40 = vld [vmem:[%s6752_s11 + $0xc8] sm:$0xff]  ;;  %v2567_v42 = vld [vmem:[%s6752_s11 + $0x40] sm:$0xff]  ;;  %v2922_v46 = vmul.f32 %v6277_v47, %v2568_v41 }
 0x472   : > { %v2721_v25 = vpop.permute.xlu1 %2720  ;;  %v2528_v47 = vld [vmem:[%s6751_s10 + $0x8] sm:$0xff] }
 0x473   : > { %2880 = vperm.xlu1 %4743, %v2363_v50   ;;  %4551 = vmatprep.subr.bf16.mxu0 %v4550_v48  ;;  %v2933_v6 = vmul.f32 %v2721_v25, %v2579_v56  ;;  %v2035_v50 = vld [vmem:[%s6747_s6 + $0x1d0] sm:$0xff] }
 0x474   : > { %v2367_v57 = vpop.f32.mrb[114].mxu1  ;;  %4553 = vmatpush3.bf16.msra.mxu0 %v4552_v52  ;;  %3061 = vmatprep.mubr.f32.mxu0 %v2528_v47  ;;  %v2543_v47 = vld [vmem:[%s6751_s10 + $0x80] sm:$0xff] }
 0x475   : > { %v2368_v63 = vadd.f32 %v2367_v57, %v2030_v54  ;;  %v4300_v1 = vpop.f32.mrb[115].mxu1  ;;  %v2921_v54 = vmul.f32 %v6275_v43, %v2567_v42  ;;  %v2536_v42 = vld [vmem:[%s6751_s10 + $0x48] sm:$0xff] }
 0x476   : > { %v2726_v4 = vpop.permute.xlu0 %2725  ;;  %v2586_v1 = vld [vmem:[%s6752_s11 + $0xd8] sm:$0xff] }
 0x477   : > { %v2934_v7 = vmul.f32 %v2726_v4, %v2580_v58  ;;  %2885 = vperm.xlu0 %4744, %v2368_v63   ;;  %v4564_v58 = vpack.c.bf16 %v2922_v46, %v2921_v54  ;;  %v2585_v63 = vld [vmem:[%s6752_s11 + $0xd0] sm:$0xff]  ;;  %v2924_v4 = vmul.f32 %v6284_v53, %v2570_v61  ;;  %v2587_v53 = vld [vmem:[%s6752_s11 + $0xe0] sm:$0xff]  ;;  %v2594_v46 = vld [vmem:[%s6752_s11 + $0x118] sm:$0xff] }
 0x478   : > { %v2372_v9 = vpop.f32.mrb[116].mxu1  ;;  %v2596_v61 = vld [vmem:[%s6752_s11 + $0x128] sm:$0xff] }
 0x479   : > { %v4554_v10 = vpack.c.bf16 %v2934_v7, %v2933_v6  ;;  %v2373_v11 = vadd.f32 %v2372_v9, %v2031_v5  ;;  %v4303_v12 = vpop.f32.mrb[117].mxu1  ;;  %v2923_v9 = vmul.f32 %v6282_v49, %v2569_v2  ;;  %v2571_v49 = vld [vmem:[%s6752_s11 + $0x60] sm:$0xff] }
 0x47a   : > { %v2731_v31 = vpop.permute.xlu1 %2730  ;;  %v2572_v12 = vld [vmem:[%s6752_s11 + $0x68] sm:$0xff] }
 0x47b   : > { %2890 = vperm.xlu1 %4743, %v2373_v11   ;;  %4555 = vmatprep.subr.bf16.mxu0 %v4554_v10  ;;  %v2935_v27 = vmul.f32 %v2731_v31, %v2581_v15  ;;  %v4568_v11 = vpack.c.bf16 %v2924_v4, %v2923_v9  ;;  %v2926_v35 = vmul.f32 %v6291_v60, %v2572_v12  ;;  %v2590_v60 = vld [vmem:[%s6752_s11 + $0xf8] sm:$0xff]  ;;  %v2547_v4 = vld [vmem:[%s6751_s10 + $0xa0] sm:$0xff] }
 0x47c   : > { %v2377_v16 = vpop.f32.mrb[118].mxu1  ;;  %4557 = vmatpush3.bf16.msra.mxu0 %v4556_v13  ;;  %v2598_v9 = vld [vmem:[%s6752_s11 + $0x138] sm:$0xff] }
 0x47d   : > { %v2378_v20 = vadd.f32 %v2377_v16, %v2032_v14  ;;  %v4306_v21 = vpop.f32.mrb[119].mxu1  ;;  %v2588_v14 = vld [vmem:[%s6752_s11 + $0xe8] sm:$0xff] }
 0x47e   : > { %v2736_v24 = vpop.permute.xlu0 %2735  ;;  %v2574_v21 = vld [vmem:[%s6752_s11 + $0x78] sm:$0xff] }
 0x47f   : > { %v2936_v23 = vmul.f32 %v2736_v24, %v2582_v17  ;;  %2895 = vperm.xlu0 %4744, %v2378_v20   ;;  %v2925_v17 = vmul.f32 %v6289_v55, %v2571_v49  ;;  %v2573_v55 = vld [vmem:[%s6752_s11 + $0x70] sm:$0xff] }
 0x480   : > { %v2382_v19 = vpop.f32.mrb[120].mxu1 }
 0x481   : > { %v4558_v30 = vpack.c.bf16 %v2936_v23, %v2935_v27  ;;  %v2383_v32 = vadd.f32 %v2382_v19, %v2033_v26  ;;  %v4309_v33 = vpop.f32.mrb[121].mxu1  ;;  %v4572_v20 = vpack.c.bf16 %v2926_v35, %v2925_v17  ;;  %v2928_v26 = vmul.f32 %v6298_v3, %v2574_v21  ;;  %v2527_v3 = vld [vmem:[%s6751_s10] sm:$0xff]  ;;  %v2601_v21 = vld [vmem:[%s6752_s11 + $0x150] sm:$0xff] }
 0x482   : > { %v2741_v37 = vpop.permute.xlu1 %2740  ;;  %v2927_v19 = vmul.f32 %v6296_v62, %v2573_v55  ;;  %v2591_v33 = vld [vmem:[%s6752_s11 + $0x100] sm:$0xff]  ;;  %v2532_v62 = vld [vmem:[%s6751_s10 + $0x28] sm:$0xff] }
 0x483   : > { %2900 = vperm.xlu1 %4743, %v2383_v32   ;;  %4559 = vmatprep.subr.bf16.mxu0 %v4558_v30  ;;  %v2937_v51 = vmul.f32 %v2741_v37, %v2583_v38  ;;  %v2599_v35 = vld [vmem:[%s6752_s11 + $0x140] sm:$0xff] }
 0x484   : > { %v2387_v39 = vpop.f32.mrb[122].mxu1  ;;  %4561 = vmatpush3.bf16.msra.mxu0 %v4560_v34  ;;  %v4576_v32 = vpack.c.bf16 %v2928_v26, %v2927_v19  ;;  %v2604_v19 = vld [vmem:[%s6752_s11 + $0x168] sm:$0xff] }
 0x485   : > { %v2388_v44 = vadd.f32 %v2387_v39, %v2034_v36  ;;  %v4312_v45 = vpop.f32.mrb[123].mxu1  ;;  %v2592_v36 = vld [vmem:[%s6752_s11 + $0x108] sm:$0xff]  ;;  %v2531_v39 = vld [vmem:[%s6751_s10 + $0x20] sm:$0xff] }
 0x486   : > { %v2746_v48 = vpop.permute.xlu0 %2745 }
 0x487   : > { %v2938_v52 = vmul.f32 %v2746_v48, %v2584_v40  ;;  %2905 = vperm.xlu0 %4744, %v2388_v44   ;;  %v2593_v44 = vld [vmem:[%s6752_s11 + $0x110] sm:$0xff]  ;;  %v2535_v48 = vld [vmem:[%s6751_s10 + $0x40] sm:$0xff] }
 0x488   : > { %v2392_v29 = vpop.f32.mrb[124].mxu1 }
 0x489   : > { %v4562_v56 = vpack.c.bf16 %v2938_v52, %v2937_v51  ;;  %v2393_v25 = vadd.f32 %v2392_v29, %v2035_v50  ;;  %v4315_v57 = vpop.f32.mrb[125].mxu1  ;;  %v2540_v50 = vld [vmem:[%s6751_s10 + $0x68] sm:$0xff]  ;;  %v2539_v29 = vld [vmem:[%s6751_s10 + $0x60] sm:$0xff] }
 0x48a   : > { %v2751_v43 = vpop.permute.xlu1 %2750  ;;  %v2595_v57 = vld [vmem:[%s6752_s11 + $0x120] sm:$0xff] }
 0x48b   : > { %2910 = vperm.xlu1 %4743, %v2393_v25   ;;  %4563 = vmatprep.subr.bf16.mxu0 %v4562_v56  ;;  %v2939_v6 = vmul.f32 %v2751_v43, %v2585_v63  ;;  %v2544_v25 = vld [vmem:[%s6751_s10 + $0x88] sm:$0xff] }
 0x48c   : > { %4565 = vmatpush3.bf16.msra.mxu0 %v4564_v58  ;;  %v2548_v63 = vld [vmem:[%s6751_s10 + $0xa8] sm:$0xff] }
 0x48e   : > { %v2756_v5 = vpop.permute.xlu0 %2755 }
 0x48f   : > { %v2940_v7 = vmul.f32 %v2756_v5, %v2586_v1 }
 0x491   : > { %v4566_v10 = vpack.c.bf16 %v2940_v7, %v2939_v6  ;;  %v2552_v6 = vld [vmem:[%s6751_s10 + $0xc8] sm:$0xff]  ;;  %v2597_v7 = vld [vmem:[%s6752_s11 + $0x130] sm:$0xff] }
 0x492   : > { %v2761_v13 = vpop.permute.xlu1 %2760 }
 0x493   : > { %4567 = vmatprep.subr.bf16.mxu0 %v4566_v10  ;;  %v2941_v31 = vmul.f32 %v2761_v13, %v2587_v53  ;;  %v2551_v10 = vld [vmem:[%s6751_s10 + $0xc0] sm:$0xff] }
 0x494   : > { %4569 = vmatpush3.bf16.msra.mxu0 %v4568_v11  ;;  %v2556_v11 = vld [vmem:[%s6751_s10 + $0xe8] sm:$0x7] }
 0x496   : > { %v2766_v15 = vpop.permute.xlu0 %2765 }
 0x497   : > { %v2942_v16 = vmul.f32 %v2766_v15, %v2588_v14  ;;  %v2555_v14 = vld [vmem:[%s6751_s10 + $0xe0] sm:$0x7] }
 0x499   : > { %v4570_v18 = vpack.c.bf16 %v2942_v16, %v2941_v31  ;;  %v2600_v31 = vld [vmem:[%s6752_s11 + $0x148] sm:$0xff] }
 0x49a   : > { %v2771_v24 = vpop.permute.xlu1 %2770 }
 0x49b   : > { %4571 = vmatprep.subr.bf16.mxu0 %v4570_v18  ;;  %v2943_v23 = vmul.f32 %v2771_v24, %v2589_v22  ;;  %v2602_v24 = vld [vmem:[%s6752_s11 + $0x158] sm:$0xff] }
 0x49c   : > { %4573 = vmatpush3.bf16.msra.mxu0 %v4572_v20 }
 0x49e   : > { %v2776_v27 = vpop.permute.xlu0 %2775 }
 0x49f   : > { %v2944_v28 = vmul.f32 %v2776_v27, %v2590_v60 }
 0x4a1   : > { %v4574_v30 = vpack.c.bf16 %v2944_v28, %v2943_v23  ;;  %v2603_v23 = vld [vmem:[%s6752_s11 + $0x160] sm:$0xff] }
 0x4a2   : > { %v2781_v34 = vpop.permute.xlu1 %2780 }
 0x4a3   : > { %4575 = vmatprep.subr.bf16.mxu0 %v4574_v30  ;;  %v2945_v38 = vmul.f32 %v2781_v34, %v2591_v33 }
 0x4a4   : > { %4577 = vmatpush3.bf16.msra.mxu0 %v4576_v32 }
 0x4a6   : > { %v2786_v41 = vpop.permute.xlu0 %2785 }
 0x4a7   : > { %v2946_v37 = vmul.f32 %v2786_v41, %v2592_v36  ;;  %3062 = vmatmul.mubr.f32.vlgmr.msra.gmra.mrb[64].mxu0 %v2527_v3  ;;  %v2605_v36 = vld [vmem:[%s6752_s11 + $0x170] sm:$0xff] }
 0x4a8   : > { %3066 = vmatprep.mubr.f32.mxu0 %v2532_v62  ;;  %v2606_v62 = vld [vmem:[%s6752_s11 + $0x178] sm:$0xff] }
 0x4a9   : > { %v4579_v40 = vpack.c.bf16 %v2946_v37, %v2945_v38 }
 0x4aa   : > { %v2791_v45 = vpop.permute.xlu1 %2790 }
 0x4ab   : > { %4580 = vmatpush1.bf16.msra.mxu1 %v4579_v40  ;;  %3067 = vmatmul.mubr.f32.gmra.mrb[66].mxu0 %v2531_v39  ;;  %v2947_v52 = vmul.f32 %v2791_v45, %v2593_v44  ;;  %v2607_v40 = vld [vmem:[%s6752_s11 + $0x180] sm:$0xff]  ;;  %v2608_v44 = vld [vmem:[%s6752_s11 + $0x188] sm:$0xff] }
 0x4ac   : > { %4581 = vmatprep.subr.bf16.mxu1 %v4805_v59  ;;  %3071 = vmatprep.mubr.f32.mxu0 %v2536_v42 }
 0x4ae   : > { %v2796_v51 = vpop.permute.xlu0 %2795 }
 0x4af   : > { %v2948_v54 = vmul.f32 %v2796_v51, %v2594_v46  ;;  %3072 = vmatmul.mubr.f32.gmra.mrb[68].mxu0 %v2535_v48  ;;  %v2609_v51 = vld [vmem:[%s6752_s11 + $0x190] sm:$0xff] }
 0x4b0   : > { %3076 = vmatprep.mubr.f32.mxu0 %v2540_v50 }
 0x4b1   : > { %v4582_v56 = vpack.c.bf16 %v2948_v54, %v2947_v52  ;;  %v2610_v54 = vld [vmem:[%s6752_s11 + $0x198] sm:$0xff] }
 0x4b2   : > { %v2801_v58 = vpop.permute.xlu1 %2800 }
 0x4b3   : > { %4583 = vmatpush1.bf16.msra.mxu1 %v4582_v56  ;;  %3077 = vmatmul.mubr.f32.gmra.mrb[70].mxu0 %v2539_v29  ;;  %v2949_v1 = vmul.f32 %v2801_v58, %v2595_v57  ;;  %v2611_v58 = vld [vmem:[%s6752_s11 + $0x1a0] sm:$0xff] }
 0x4b4   : > { %4584 = vmatprep.subr.bf16.mxu1 %v4805_v59  ;;  %3081 = vmatprep.mubr.f32.mxu0 %v2544_v25 }
 0x4b6   : > { %v2806_v43 = vpop.permute.xlu0 %2805 }
 0x4b7   : > { %v2950_v2 = vmul.f32 %v2806_v43, %v2596_v61  ;;  %3082 = vmatmul.mubr.f32.gmra.mrb[72].mxu0 %v2543_v47  ;;  %v2612_v47 = vld [vmem:[%s6752_s11 + $0x1a8] sm:$0xff] }
 0x4b8   : > { %3086 = vmatprep.mubr.f32.mxu0 %v2548_v63 }
 0x4b9   : > { %v4585_v5 = vpack.c.bf16 %v2950_v2, %v2949_v1 }
 0x4ba   : > { %v2811_v8 = vpop.permute.xlu1 %2810 }
 0x4bb   : > { %4586 = vmatpush1.bf16.msra.mxu1 %v4585_v5  ;;  %3087 = vmatmul.mubr.f32.gmra.mrb[74].mxu0 %v2547_v4  ;;  %v2951_v53 = vmul.f32 %v2811_v8, %v2597_v7  ;;  %v2613_v4 = vld [vmem:[%s6752_s11 + $0x1b0] sm:$0xff] }
 0x4bc   : > { %4587 = vmatprep.subr.bf16.mxu1 %v4805_v59  ;;  %3091 = vmatprep.mubr.f32.mxu0 %v2552_v6  ;;  %v2614_v6 = vld [vmem:[%s6752_s11 + $0x1b8] sm:$0xff] }
 0x4be   : > { %v2816_v12 = vpop.permute.xlu0 %2815 }
 0x4bf   : > { %v2952_v13 = vmul.f32 %v2816_v12, %v2598_v9  ;;  %3092 = vmatmul.mubr.f32.gmra.mrb[76].mxu0 %v2551_v10 }
 0x4c0   : > { %3096 = vmatprep.mubr.f32.mxu0 %v2556_v11 }
 0x4c1   : > { %v4588_v49 = vpack.c.bf16 %v2952_v13, %v2951_v53 }
 0x4c2   : > { %v2821_v15 = vpop.permute.xlu1 %2820 }
 0x4c3   : > { %4589 = vmatpush1.bf16.msra.mxu1 %v4588_v49  ;;  %3097 = vmatmul.mubr.f32.gmra.mrb[78].mxu0 %v2555_v14  ;;  %v2953_v17 = vmul.f32 %v2821_v15, %v2599_v35  ;;  %v2615_v49 = vld [vmem:[%s6752_s11 + $0x1c0] sm:$0xff]  ;;  %v2616_v15 = vld [vmem:[%s6752_s11 + $0x1c8] sm:$0xff] }
 0x4c4   : > { %4590 = vmatprep.subr.bf16.mxu1 %v4805_v59 }
 0x4c6   : > { %v2826_v16 = vpop.permute.xlu0 %2825 }
 0x4c7   : > { %v2954_v18 = vmul.f32 %v2826_v16, %v2600_v31 }
 0x4c9   : > { %v4591_v20 = vpack.c.bf16 %v2954_v18, %v2953_v17 }
 0x4ca   : > { %v2831_v22 = vpop.permute.xlu1 %2830 }
 0x4cb   : > { %4592 = vmatpush1.bf16.msra.mxu1 %v4591_v20  ;;  %v2955_v55 = vmul.f32 %v2831_v22, %v2601_v21 }
 0x4cc   : > { %4593 = vmatprep.subr.bf16.mxu1 %v4805_v59 }
 0x4ce   : > { %v2836_v60 = vpop.permute.xlu0 %2835 }
 0x4cf   : > { %v2956_v26 = vmul.f32 %v2836_v60, %v2602_v24  ;;  %v2617_v24 = vld [vmem:[%s6752_s11 + $0x1d0] sm:$0xff] }
 0x4d1   : > { %v4594_v27 = vpack.c.bf16 %v2956_v26, %v2955_v55 }
 0x4d2   : > { %v2841_v28 = vpop.permute.xlu1 %2840 }
 0x4d3   : > { %4595 = vmatpush1.bf16.msra.mxu1 %v4594_v27  ;;  %v2957_v32 = vmul.f32 %v2841_v28, %v2603_v23  ;;  %v2534_v23 = vld [vmem:[%s6751_s10 + $0x38] sm:$0xff] }
 0x4d4   : > { %4596 = vmatprep.subr.bf16.mxu1 %v4805_v59 }
 0x4d6   : > { %v2846_v30 = vpop.permute.xlu0 %2845  ;;  %v2523_v10 = vpop.f32.mrb[126].mxu1 }
 0x4d7   : > { %v2958_v33 = vmul.f32 %v2846_v30, %v2604_v19  ;;  %v3208_v11 = vsel %vm3207_vm4, %v2523_v10, -inf  ;;  %v4334_v12 = vpop.f32.mrb[127].mxu1  ;;  %v2533_v19 = vld [vmem:[%s6751_s10 + $0x30] sm:$0xff]  ;;  %v2538_v30 = vld [vmem:[%s6751_s10 + $0x58] sm:$0xff] }
 0x4d8   : > { %v3209_v13 = vrot.slane %v3208_v11, 4 }
 0x4d9   : > { %v4597_v34 = vpack.c.bf16 %v2958_v33, %v2957_v32  ;;  %v2537_v32 = vld [vmem:[%s6751_s10 + $0x50] sm:$0xff]  ;;  %v2542_v33 = vld [vmem:[%s6751_s10 + $0x78] sm:$0xff] }
 0x4da   : > { %v2851_v3 = vpop.permute.xlu1 %2850  ;;  %v3210_v14 = vmax.f32 %v3208_v11, %v3209_v13 }
 0x4db   : > { %4598 = vmatpush1.bf16.msra.mxu1 %v4597_v34  ;;  %v2959_v38 = vmul.f32 %v2851_v3, %v2605_v36  ;;  %v2541_v34 = vld [vmem:[%s6751_s10 + $0x70] sm:$0xff]  ;;  %v2546_v36 = vld [vmem:[%s6751_s10 + $0x98] sm:$0xff] }
 0x4dc   : > { %4599 = vmatprep.subr.bf16.mxu1 %v4805_v59  ;;  %v3211_v31 = vrot.slane %v3210_v14, 2 }
 0x4de   : > { %v2856_v41 = vpop.permute.xlu0 %2855  ;;  %v3212_v20 = vmax.f32 %v3210_v14, %v3211_v31 }
 0x4df   : > { %v2960_v37 = vmul.f32 %v2856_v41, %v2606_v62  ;;  %v2545_v62 = vld [vmem:[%s6751_s10 + $0x90] sm:$0xff]  ;;  %v2550_v41 = vld [vmem:[%s6751_s10 + $0xb8] sm:$0xff] }
 0x4e0   : > { %v3213_v22 = vrot.slane %v3212_v20, 1 }
 0x4e1   : > { %v4600_v39 = vpack.c.bf16 %v2960_v37, %v2959_v38  ;;  %v2549_v38 = vld [vmem:[%s6751_s10 + $0xb0] sm:$0xff]  ;;  %v2554_v37 = vld [vmem:[%s6751_s10 + $0xd8] sm:$0xff] }
 0x4e2   : > { %v2861_v42 = vpop.permute.xlu1 %2860  ;;  %v3214_v55 = vmax.f32 %v3212_v20, %v3213_v22 }
 0x4e3   : > { %4601 = vmatpush1.bf16.msra.mxu1 %v4600_v39  ;;  %v2961_v46 = vmul.f32 %v2861_v42, %v2607_v40  ;;  %v2553_v39 = vld [vmem:[%s6751_s10 + $0xd0] sm:$0xff]  ;;  %v2558_v40 = vld [vmem:[%s6751_s10 + $0xf8] sm:$0x7] }
 0x4e4   : > { %4602 = vmatprep.subr.bf16.mxu1 %v4805_v59  ;;  %v3215_v27 = vsub.f32 %v2523_v10, %v3214_v55  ;;  %v2557_v42 = vld [vmem:[%s6751_s10 + $0xf0] sm:$0x7] }
 0x4e6   : > { %v2866_v45 = vpop.permute.xlu0 %2865  ;;  %v3216_v28 = vmul.f32 1.442695, %v3215_v27 }
 0x4e7   : > { %v2962_v48 = vmul.f32 %v2866_v45, %v2608_v44 }
 0x4e8   : > { %4745 = vpow2.f32 %v3216_v28 }
 0x4e9   : > { %v4603_v50 = vpack.c.bf16 %v2962_v48, %v2961_v46 }
 0x4ea   : > { %v2871_v52 = vpop.permute.xlu1 %2870 }
 0x4eb   : > { %4604 = vmatpush1.bf16.msra.mxu1 %v4603_v50  ;;  %v2963_v56 = vmul.f32 %v2871_v52, %v2609_v51 }
 0x4ec   : > { %4605 = vmatprep.subr.bf16.mxu1 %v4805_v59 }
 0x4ee   : > { %v2876_v29 = vpop.permute.xlu0 %2875 }
 0x4ef   : > { %v2964_v25 = vmul.f32 %v2876_v29, %v2610_v54 }
 0x4f1   : > { %v4606_v57 = vpack.c.bf16 %v2964_v25, %v2963_v56 }
 0x4f2   : > { %v2881_v61 = vpop.permute.xlu1 %2880  ;;  %v6615_v3 = vpop.eup %4745 }
 0x4f3   : > { %4607 = vmatpush1.bf16.msra.mxu1 %v4606_v57  ;;  %v2965_v43 = vmul.f32 %v2881_v61, %v2611_v58  ;;  %4335 = vmatprep.subr.mxu0 %v6615_v3 }
 0x4f4   : > { %4608 = vmatprep.subr.bf16.mxu1 %v4805_v59  ;;  %4336 = vmatpush3.msra.mxu0 %v6615_v3 }
 0x4f5   : > { %4349 = vmatprep.subr.mxu0 %v4804_v0 }
 0x4f6   : > { %v2886_v63 = vpop.permute.xlu0 %2885 }
 0x4f7   : > { %v2966_v1 = vmul.f32 %v2886_v63, %v2612_v47 }
 0x4f9   : > { %v4609_v2 = vpack.c.bf16 %v2966_v1, %v2965_v43 }
 0x4fa   : > { %v2891_v5 = vpop.permute.xlu1 %2890 }
 0x4fb   : > { %4610 = vmatpush1.bf16.msra.mxu1 %v4609_v2  ;;  %v2967_v8 = vmul.f32 %v2891_v5, %v2613_v4 }
 0x4fc   : > { %4611 = vmatprep.subr.bf16.mxu1 %v4805_v59 }
 0x4fe   : > { %v2896_v7 = vpop.permute.xlu0 %2895 }
 0x4ff   : > { %v2968_v9 = vmul.f32 %v2896_v7, %v2614_v6 }
 0x501   : > { %v4612_v53 = vpack.c.bf16 %v2968_v9, %v2967_v8 }
 0x502   : > { %v2901_v35 = vpop.permute.xlu1 %2900 }
 0x503   : > { %4613 = vmatpush1.bf16.msra.mxu1 %v4612_v53  ;;  %v2969_v17 = vmul.f32 %v2901_v35, %v2615_v49 }
 0x504   : > { %4614 = vmatprep.subr.bf16.mxu1 %v4805_v59  ;;  %v2529_v59 = vld [vmem:[%s6751_s10 + $0x10] sm:$0xff] }
 0x506   : > { %v2906_v16 = vpop.permute.xlu0 %2905 }
 0x507   : > { %v2970_v18 = vmul.f32 %v2906_v16, %v2616_v15 }
 0x509   : > { %v4615_v21 = vpack.c.bf16 %v2970_v18, %v2969_v17 }
 0x50a   : > { %v2911_v60 = vpop.permute.xlu1 %2910 }
 0x50b   : > { %4616 = vmatpush1.bf16.msra.mxu1 %v4615_v21  ;;  %v2971_v26 = vmul.f32 %v2911_v60, %v2617_v24 }
 0x50c   : > { %3154 = vmatprep.subr.mxu1 %v4804_v0 }
 0x50f   : > { %3155 = vmatpush1.msra.mxu1 %v2971_v26 }
 0x510   : > { %3167 = vmatmul.mubr.f32.vlgmr.msra.gmra.mrb[128].mxu1 %v2529_v59 }
 0x511   : > { %3834 = vmatprep.mubr.msk.f32.mxu1 %vm2972_vm3, %v2534_v23 }
 0x514   : > { %3172 = vmatmul.mubr.f32.gmra.mrb[130].mxu1 %v2533_v19 }
 0x515   : > { %3835 = vmatprep.mubr.msk.f32.mxu1 %vm2972_vm3, %v2538_v30 }
 0x518   : > { %3177 = vmatmul.mubr.f32.gmra.mrb[132].mxu1 %v2537_v32 }
 0x519   : > { %3836 = vmatprep.mubr.msk.f32.mxu1 %vm2972_vm3, %v2542_v33 }
 0x51c   : > { %3182 = vmatmul.mubr.f32.gmra.mrb[134].mxu1 %v2541_v34 }
 0x51d   : > { %3837 = vmatprep.mubr.msk.f32.mxu1 %vm2972_vm3, %v2546_v36 }
 0x520   : > { %3187 = vmatmul.mubr.f32.gmra.mrb[136].mxu1 %v2545_v62 }
 0x521   : > { %3838 = vmatprep.mubr.msk.f32.mxu1 %vm2972_vm3, %v2550_v41  ;;  %v6655_v41 = vld [vmem:[%s6749_s8] sm:$0xff] }
 0x522   : > { %4617 = vmatprep.subr.mxu1 %v6655_v41 }
 0x523   : > { %4618 = vmatpush3.msra.mxu1 %v6655_v41 }
 0x524   : > { %3192 = vmatmul.mubr.f32.gmra.mrb[138].mxu1 %v2549_v38 }
 0x525   : > { %3839 = vmatprep.mubr.msk.f32.mxu1 %vm2972_vm3, %v2554_v37 }
 0x528   : > { %3197 = vmatmul.mubr.f32.gmra.mrb[140].mxu1 %v2553_v39 }
 0x529   : > { %3840 = vmatprep.mubr.msk.f32.mxu1 %vm2972_vm3, %v2558_v40 }
 0x52c   : > { %3202 = vmatmul.mubr.f32.gmra.mrb[142].mxu1 %v2557_v42 }
 0x57a   : > { %v4010_v44 = vpop.f32.mrb[64].mxu0 }
 0x57b   : > { %v4011_v45 = vpop.f32.mrb[65].mxu0 }
 0x57c   : > { %v4012_v46 = vadd.f32 %v4011_v45, %v4010_v44 }
 0x57e   : > { %v4013_v48 = vpop.f32.mrb[66].mxu0 }
 0x57f   : > { %v4014_v50 = vpop.f32.mrb[67].mxu0 }
 0x580   : > { %v4015_v51 = vadd.f32 %v4014_v50, %v4013_v48 }
 0x582   : > { %v4016_v52 = vpop.f32.mrb[68].mxu0 }
 0x583   : > { %v4017_v54 = vpop.f32.mrb[69].mxu0 }
 0x584   : > { %v4018_v29 = vadd.f32 %v4017_v54, %v4016_v52 }
 0x586   : > { %v4019_v56 = vpop.f32.mrb[70].mxu0 }
 0x587   : > { %v4020_v25 = vpop.f32.mrb[71].mxu0 }
 0x588   : > { %v4021_v57 = vadd.f32 %v4020_v25, %v4019_v56 }
 0x58a   : > { %v4022_v58 = vpop.f32.mrb[72].mxu0 }
 0x58b   : > { %v4023_v61 = vpop.f32.mrb[73].mxu0 }
 0x58c   : > { %v4024_v47 = vadd.f32 %v4023_v61, %v4022_v58 }
 0x58e   : > { %v4025_v63 = vpop.f32.mrb[74].mxu0 }
 0x58f   : > { %v4026_v43 = vpop.f32.mrb[75].mxu0 }
 0x590   : > { %v4027_v1 = vadd.f32 %v4026_v43, %v4025_v63 }
 0x592   : > { %v4028_v2 = vpop.f32.mrb[76].mxu0 }
 0x593   : > { %v4029_v4 = vpop.f32.mrb[77].mxu0 }
 0x594   : > { %v4030_v5 = vadd.f32 %v4029_v4, %v4028_v2 }
 0x596   : > { %v4031_v6 = vpop.f32.mrb[78].mxu0 }
 0x597   : > { %v4032_v7 = vpop.f32.mrb[79].mxu0 }
 0x598   : > { %v4033_v8 = vadd.f32 %v4032_v7, %v4031_v6 }
 0x5e3   : > { %v3168_v9 = vpop.f32.mrb[128].mxu1 }
 0x5e4   : > { %v3169_v10 = vadd.f32 %v4012_v46, %v3168_v9  ;;  %v3170_v11 = vpop.f32.mrb[129].mxu1 }
 0x5e6   : > { %v3218_v12 = vsel %vm3207_vm4, %v3169_v10, -inf }
 0x5e7   : > { %v3173_v53 = vpop.f32.mrb[130].mxu1  ;;  %3219 = vmax.xlane.f32.xlu0 %v3218_v12 }
 0x5e8   : > { %v3174_v13 = vadd.f32 %v4015_v51, %v3173_v53  ;;  %v3175_v14 = vpop.f32.mrb[131].mxu1 }
 0x5ea   : > { %v3221_v49 = vsel %vm3207_vm4, %v3174_v13, -inf }
 0x5eb   : > { %v3178_v35 = vpop.f32.mrb[132].mxu1  ;;  %3222 = vmax.xlane.f32.xlu1 %v3221_v49 }
 0x5ec   : > { %v3179_v15 = vadd.f32 %v4018_v29, %v3178_v35  ;;  %v3180_v31 = vpop.f32.mrb[133].mxu1 }
 0x5ee   : > { %v3224_v16 = vsel %vm3207_vm4, %v3179_v15, -inf }
 0x5ef   : > { %v3183_v17 = vpop.f32.mrb[134].mxu1  ;;  %3225 = vmax.xlane.f32.xlu0 %v3224_v16 }
 0x5f0   : > { %v3184_v18 = vadd.f32 %v4021_v57, %v3183_v17  ;;  %v3185_v20 = vpop.f32.mrb[135].mxu1 }
 0x5f2   : > { %v3227_v21 = vsel %vm3207_vm4, %v3184_v18, -inf }
 0x5f3   : > { %v3188_v22 = vpop.f32.mrb[136].mxu1  ;;  %3228 = vmax.xlane.f32.xlu0 %v3227_v21 }
 0x5f4   : > { %v3189_v24 = vadd.f32 %v4024_v47, %v3188_v22  ;;  %v3190_v60 = vpop.f32.mrb[137].mxu1 }
 0x5f6   : > { %v3230_v55 = vsel %vm3207_vm4, %v3189_v24, -inf }
 0x5f7   : > { %v3193_v26 = vpop.f32.mrb[138].mxu1  ;;  %3231 = vmax.xlane.f32.xlu1 %v3230_v55 }
 0x5f8   : > { %v3194_v59 = vadd.f32 %v4027_v1, %v3193_v26  ;;  %v3195_v27 = vpop.f32.mrb[139].mxu1 }
 0x5f9   : > { %v4779_v27 = vld [vmem:[%s6748_s7] sm:$0xff] }
 0x5fa   : > { %v3233_v23 = vsel %vm3207_vm4, %v3194_v59, -inf }
 0x5fb   : > { %v3198_v28 = vpop.f32.mrb[140].mxu1  ;;  %3234 = vmax.xlane.f32.xlu0 %v3233_v23 }
 0x5fc   : > { %v3199_v19 = vadd.f32 %v4030_v5, %v3198_v28  ;;  %v3200_v30 = vpop.f32.mrb[141].mxu1 }
 0x5fe   : > { %v3236_v32 = vsel %vm3207_vm4, %v3199_v19, -inf }
 0x5ff   : > { %v3203_v33 = vpop.f32.mrb[142].mxu1  ;;  %3237 = vmax.xlane.f32.xlu1 %v3236_v32 }
 0x600   : > { %v3204_v34 = vadd.f32 %v4033_v8, %v3203_v33  ;;  %v3205_v36 = vpop.f32.mrb[143].mxu1 }
 0x602   : > { %v3240_v62 = vsel %vm3239_vm5, %v3204_v34, -inf }
 0x603   : > { %3241 = vmax.xlane.f32.xlu0 %v3240_v62 }
 0x674   : > { %v3220_v38 = vpop.xlane.xlu0 %3219 }
 0x675   : > { %v3243_v37 = vsub.f32 %v3169_v10, %v3220_v38 }
 0x677   : > { %v3251_v39 = vmul.f32 1.442695, %v3243_v37 }
 0x678   : > { %v3223_v40 = vpop.xlane.xlu1 %3222 }
 0x679   : > { %4747 = vpow2.f32 %v3251_v39  ;;  %v3244_v42 = vsub.f32 %v3174_v13, %v3223_v40 }
 0x67b   : > { %v3253_v44 = vmul.f32 1.442695, %v3244_v42 }
 0x67c   : > { %v3226_v45 = vpop.xlane.xlu0 %3225 }
 0x67d   : > { %4749 = vpow2.f32 %v3253_v44  ;;  %v3245_v46 = vsub.f32 %v3179_v15, %v3226_v45 }
 0x67f   : > { %v3255_v48 = vmul.f32 1.442695, %v3245_v46 }
 0x680   : > { %v3229_v50 = vpop.xlane.xlu0 %3228 }
 0x681   : > { %4751 = vpow2.f32 %v3255_v48  ;;  %v3246_v51 = vsub.f32 %v3184_v18, %v3229_v50 }
 0x683   : > { %v4748_v52 = vpop.eup %4747  ;;  %v3257_v54 = vmul.f32 1.442695, %v3246_v51 }
 0x684   : > { %v3232_v29 = vpop.xlane.xlu1 %3231  ;;  %4337 = vmatprep.mubr.msk.f32.mxu0 %vm3207_vm4, %v4748_v52 }
 0x685   : > { %4753 = vpow2.f32 %v3257_v54  ;;  %v3247_v56 = vsub.f32 %v3189_v24, %v3232_v29 }
 0x687   : > { %v6660_v25 = vpop.eup %4749  ;;  %v3259_v57 = vmul.f32 1.442695, %v3247_v56 }
 0x688   : > { %4338 = vmatmul.mubr.msk.f32.vlgmr.msra.gmra.mrb[80].mxu0 %vm3207_vm4, %v6660_v25  ;;  %v3235_v58 = vpop.xlane.xlu0 %3234 }
 0x689   : > { %4755 = vpow2.f32 %v3259_v57  ;;  %v3248_v61 = vsub.f32 %v3194_v59, %v3235_v58  ;;  %4350 = vmatpush3.msra.mxu0 %v6655_v41 }
 0x68b   : > { %v6665_v47 = vpop.eup %4751  ;;  %v3261_v63 = vmul.f32 1.442695, %v3248_v61 }
 0x68c   : > { %v3238_v43 = vpop.xlane.xlu1 %3237  ;;  %4340 = vmatprep.mubr.msk.f32.mxu0 %vm3207_vm4, %v6665_v47 }
 0x68d   : > { %4757 = vpow2.f32 %v3261_v63  ;;  %v3249_v1 = vsub.f32 %v3199_v19, %v3238_v43 }
 0x68f   : > { %v6669_v2 = vpop.eup %4753  ;;  %v3263_v4 = vmul.f32 1.442695, %v3249_v1 }
 0x690   : > { %4341 = vmatmul.mubr.msk.f32.gmra.mrb[82].mxu0 %vm3207_vm4, %v6669_v2  ;;  %v3242_v5 = vpop.xlane.xlu0 %3241 }
 0x691   : > { %4759 = vpow2.f32 %v3263_v4  ;;  %v3250_v6 = vsub.f32 %v3204_v34, %v3242_v5 }
 0x693   : > { %v6673_v7 = vpop.eup %4755  ;;  %v3265_v8 = vmul.f32 1.442695, %v3250_v6 }
 0x694   : > { %4343 = vmatprep.mubr.msk.f32.mxu0 %vm3207_vm4, %v6673_v7 }
 0x695   : > { %4761 = vpow2.f32 %v3265_v8 }
 0x697   : > { %v6677_v9 = vpop.eup %4757 }
 0x698   : > { %4344 = vmatmul.mubr.msk.f32.gmra.mrb[84].mxu0 %vm3207_vm4, %v6677_v9 }
 0x69b   : > { %v6681_v10 = vpop.eup %4759 }
 0x69c   : > { %4346 = vmatprep.mubr.msk.f32.mxu0 %vm3207_vm4, %v6681_v10 }
 0x69f   : > { %v6685_v11 = vpop.eup %4761 }
 0x6a0   : > { %4347 = vmatmul.mubr.msk.f32.gmra.mrb[86].mxu0 %vm3207_vm4, %v6685_v11 }
 0x6a1   : > { %4351 = vmatprep.mubr.msk.f32.mxu0 %vm4806_vm1, %v4804_v0 }
 0x6a4   : > { %4352 = vmatmul.mubr.msk.f32.vlgmr.msra.gmra.mrb[88].mxu0 %vm3207_vm4, %v6615_v3 }
 0x6a5   : > { %4356 = vmatprep.mubr.msk.f32.mxu0 %vm3207_vm4, %v4748_v52 }
 0x75b   : > { %v4339_v12 = vpop.f32.mrb[80].mxu0 }
 0x75c   : > { %v3357_v53 = vpop.f32.mrb[81].mxu0 }
 0x763   : > { %v4342_v13 = vpop.f32.mrb[82].mxu0 }
 0x764   : > { %4763 = vrcp.f32 %v4342_v13  ;;  %v3367_v14 = vpop.f32.mrb[83].mxu0 }
 0x765   : > { %4765 = vrcp.f32 %v3367_v14 }
 0x76b   : > { %v4345_v49 = vpop.f32.mrb[84].mxu0 }
 0x76c   : > { %4767 = vrcp.f32 %v4345_v49  ;;  %v3377_v35 = vpop.f32.mrb[85].mxu0 }
 0x76d   : > { %4769 = vrcp.f32 %v3377_v35 }
 0x76e   : > { %v4764_v15 = vpop.eup %4763  ;;  %4771 = vrcp.f32 %v3357_v53 }
 0x76f   : > { %v4766_v31 = vpop.eup %4765  ;;  %v3407_v16 = vmul.f32 %v4764_v15, %v4342_v13  ;;  %4773 = vrcp.f32 %v4339_v12 }
 0x770   : > { %v3406_v17 = vmul.f32 %v4766_v31, %v3367_v14 }
 0x771   : > { %v3415_v0 = vsub.f32 2.0, %v3407_v16 }
 0x772   : > { %v3414_v18 = vsub.f32 2.0, %v3406_v17 }
 0x773   : > { %v4348_v3 = vpop.f32.mrb[86].mxu0  ;;  %v3423_v22 = vmul.f32 %v4764_v15, %v3415_v0 }
 0x774   : > { %v3422_v20 = vmul.f32 %v4766_v31, %v3414_v18  ;;  %4775 = vrcp.f32 %v4348_v3  ;;  %v3387_v21 = vpop.f32.mrb[87].mxu0 }
 0x775   : > { %4777 = vrcp.f32 %v3387_v21 }
 0x776   : > { %v4768_v24 = vpop.eup %4767  ;;  %4373 = vmatprep.mubr.msk.f32.mxu1 %vm3207_vm4, %v3422_v20 }
 0x777   : > { %v4770_v60 = vpop.eup %4769  ;;  %v3409_v55 = vmul.f32 %v4768_v24, %v4345_v49  ;;  %v3498_v26 = vpop.f32.mrb[88].mxu0  ;;  %4374 = vmatmul.mubr.msk.f32.vlgmr.msra.gmra.mrb[144].mxu1 %vm3207_vm4, %v3423_v22 }
 0x778   : > { %v3408_v59 = vmul.f32 %v4770_v60, %v3377_v35  ;;  %v3502_v23 = vmul.f32 %v4779_v27, %v3498_v26  ;;  %v4353_v28 = vpop.f32.mrb[89].mxu0  ;;  %v4772_v32 = vpop.eup %4771 }
 0x779   : > { %v3417_v19 = vsub.f32 2.0, %v3409_v55  ;;  %v4774_v34 = vpop.eup %4773  ;;  %v3404_v37 = vmul.f32 %v4772_v32, %v3357_v53 }
 0x77a   : > { %v3416_v30 = vsub.f32 2.0, %v3408_v59  ;;  %4354 = vmatprep.subr.mxu0 %v3502_v23  ;;  %v3405_v44 = vmul.f32 %v4774_v34, %v4339_v12 }
 0x77b   : > { %4355 = vmatpush3.msra.mxu0 %v3502_v23  ;;  %v3425_v36 = vmul.f32 %v4768_v24, %v3417_v19  ;;  %v3412_v46 = vsub.f32 2.0, %v3404_v37 }
 0x77c   : > { %v3424_v33 = vmul.f32 %v4770_v60, %v3416_v30  ;;  %4357 = vmatmul.mubr.msk.f32.vlgmr.msra.gmra.mrb[90].mxu0 %vm3207_vm4, %v6660_v25  ;;  %4368 = vmatprep.subr.mxu0 %v6655_v41  ;;  %v3413_v50 = vsub.f32 2.0, %v3405_v44 }
 0x77d   : > { %4359 = vmatprep.mubr.msk.f32.mxu0 %vm3207_vm4, %v6665_v47  ;;  %4369 = vmatpush3.msra.mxu0 %v6655_v41  ;;  %v3420_v51 = vmul.f32 %v4772_v32, %v3412_v46 }
 0x77e   : > { %v4776_v62 = vpop.eup %4775  ;;  %4376 = vmatprep.mubr.msk.f32.mxu1 %vm3207_vm4, %v3424_v33  ;;  %v3421_v52 = vmul.f32 %v4774_v34, %v3413_v50 }
 0x77f   : > { %v4778_v38 = vpop.eup %4777  ;;  %v3411_v39 = vmul.f32 %v4776_v62, %v4348_v3  ;;  %4377 = vmatmul.mubr.msk.f32.gmra.mrb[146].mxu1 %vm3207_vm4, %v3425_v36 }
 0x780   : > { %v3410_v40 = vmul.f32 %v4778_v38, %v3387_v21  ;;  %4360 = vmatmul.mubr.msk.f32.gmra.mrb[92].mxu0 %vm3207_vm4, %v6669_v2 }
 0x781   : > { %v3419_v42 = vsub.f32 2.0, %v3411_v39  ;;  %4362 = vmatprep.mubr.msk.f32.mxu0 %vm3207_vm4, %v6673_v7 }
 0x782   : > { %v3418_v45 = vsub.f32 2.0, %v3410_v40 }
 0x783   : > { %v3427_v48 = vmul.f32 %v4776_v62, %v3419_v42 }
 0x784   : > { %v3426_v41 = vmul.f32 %v4778_v38, %v3418_v45  ;;  %4363 = vmatmul.mubr.msk.f32.gmra.mrb[94].mxu0 %vm3207_vm4, %v6677_v9 }
 0x785   : > { %4365 = vmatprep.mubr.msk.f32.mxu0 %vm3207_vm4, %v6681_v10 }
 0x786   : > { %4379 = vmatprep.mubr.msk.f32.mxu1 %vm3207_vm4, %v3426_v41 }
 0x787   : > { %4380 = vmatmul.mubr.msk.f32.gmra.mrb[148].mxu1 %vm3207_vm4, %v3427_v48 }
 0x788   : > { %4366 = vmatmul.mubr.msk.f32.gmra.mrb[96].mxu0 %vm3207_vm4, %v6685_v11 }
 0x789   : > { %4370 = vmatprep.mubr.msk.f32.mxu0 %vm3207_vm4, %v3420_v51 }
 0x78c   : > { %4371 = vmatmul.mubr.msk.f32.vlgmr.msra.gmra.mrb[98].mxu0 %vm3207_vm4, %v3421_v52 }
 0x84a   : > { %v4375_v54 = vpop.f32.mrb[144].mxu1 }
 0x84b   : > { %v3708_v29 = vpop.f32.mrb[145].mxu1 }
 0x84f   : > { %v4358_v56 = vpop.f32.mrb[90].mxu0 }
 0x850   : > { %v3569_v25 = vpop.f32.mrb[91].mxu0 }
 0x852   : > { %v4378_v57 = vpop.f32.mrb[146].mxu1 }
 0x853   : > { %v4361_v58 = vpop.f32.mrb[92].mxu0  ;;  %v3718_v61 = vpop.f32.mrb[147].mxu1 }
 0x854   : > { %v3740_v47 = vmul.f32 %v4375_v54, %v4361_v58  ;;  %v3579_v63 = vpop.f32.mrb[93].mxu0 }
 0x855   : > { %v3739_v43 = vmul.f32 %v3708_v29, %v3579_v63 }
 0x856   : > { %3748 = vst.msk [vmem:[%s441_s26 + $0x18] sm:$0xff] %vm2453_vm2, %v3740_v47 }
 0x857   : > { %3747 = vst.msk [vmem:[%s441_s26 + $0x10] sm:$0xff] %vm2453_vm2, %v3739_v43  ;;  %v4364_v1 = vpop.f32.mrb[94].mxu0 }
 0x858   : > { %v3742_v2 = vmul.f32 %v4378_v57, %v4364_v1  ;;  %v3589_v4 = vpop.f32.mrb[95].mxu0 }
 0x859   : > { %v3741_v5 = vmul.f32 %v3718_v61, %v3589_v4 }
 0x85a   : > { %3750 = vst.msk [vmem:[%s441_s26 + $0x28] sm:$0xff] %vm2453_vm2, %v3742_v2  ;;  %v4381_v6 = vpop.f32.mrb[148].mxu1 }
 0x85b   : > { %3749 = vst.msk [vmem:[%s441_s26 + $0x20] sm:$0xff] %vm2453_vm2, %v3741_v5  ;;  %v4367_v7 = vpop.f32.mrb[96].mxu0  ;;  %v3728_v8 = vpop.f32.mrb[149].mxu1 }
 0x85c   : > { %v3744_v9 = vmul.f32 %v4381_v6, %v4367_v7  ;;  %v3599_v10 = vpop.f32.mrb[97].mxu0 }
 0x85d   : > { %v3743_v11 = vmul.f32 %v3728_v8, %v3599_v10 }
 0x85e   : > { %3753 = vst.msk [vmem:[%s441_s26 + $0x38] sm:$0x7] %vm3752_vm6, %v3744_v9 }
 0x85f   : > { %3751 = vst.msk [vmem:[%s441_s26 + $0x30] sm:$0xff] %vm2453_vm2, %v3743_v11  ;;  %v4372_v12 = vpop.f32.mrb[98].mxu0 }
 0x860   : > { %v3738_v53 = vmul.f32 %v4372_v12, %v4358_v56  ;;  %v3698_v13 = vpop.f32.mrb[99].mxu0 }
 0x861   : > { %v3737_v14 = vmul.f32 %v3698_v13, %v3569_v25 }
 0x862   : > { %3746 = vst.msk [vmem:[%s441_s26 + $0x8] sm:$0xff] %vm2453_vm2, %v3738_v53 }
 0x863   : > { %3745 = vst.msk [vmem:[%s441_s26] sm:$0xff] %vm2453_vm2, %v3737_v14 }
 0x864 PF: > { %s22_s23 = sadd.s32 1, %s4802_s23   ;;  %s6754_s21 = smov %s4798_s22 }
 0x865   : > { %p19_p5 = scmp.ge.s32.totalorder %s22_s23, 4   ;;  %s6755_s22 = smov %s6757_s24 }
 0x867   :  { %21 = sbr.rel (!%p19_p5) target bundleno = 2 (0x2), region = 106 }

</bundles_post_ra>
